<compile_context>
chip_gen: v7x
topology: tpu7x:2x2x1
jax: 0.10.0
libtpu: 0.0.40
codegen_flags: <defaults>
</compile_context>

<pallas_src>
import functools

import jax
import jax.numpy as jnp
import numpy as np
from jax.experimental import pallas as pl
from jax.experimental.pallas import tpu as pltpu

EPS = 1e-5


def _round_up(v, m):
    return (v + m - 1) // m * m


def _memblock_kernel(x_ref, ys_ref, rbg_ref, rbb_ref, rbw_ref,
                     ggr_ref, gbr_ref, gwr_ref, ggy_ref, gby_ref, gwy_ref,
                     out_ref, im2col_ref, *, h, w):
    CP, NL = x_ref.shape            # C_pad sublanes, NL = n*h*w lanes
    R = rbw_ref.shape[0]            # num_resblock
    M = ys_ref.shape[0]             # num_memblock (len(ys))
    KP = im2col_ref.shape[0]        # padded wide-K (>= 9*CP, multiple of 16)
    L = h * w

    # ---- hoisted position masks, computed once, shape (1, NL) --------------
    pos = jax.lax.broadcasted_iota(jnp.int32, (1, NL), 1)
    l_id = pos % L                  # flat position inside one image
    col = pos % w                   # column inside one image row
    vmask = {-1: l_id >= w,         # row above exists inside the image
             +1: (l_id + w) < L}    # row below exists inside the image
    hmask = {-1: col >= 1,          # column to the left exists
             +1: (col + 1) < w}     # column to the right exists

    def bn_relu(t, gamma, beta):
        # training-mode BatchNorm2d: per-channel batch stats (biased variance).
        mean = jnp.mean(t, axis=1, keepdims=True)
        centered = t - mean                              # reused for var + norm
        var = jnp.mean(centered * centered, axis=1, keepdims=True)
        y = centered * jax.lax.rsqrt(var + EPS) * gamma + beta
        return jnp.maximum(y, 0.0)

    def conv3x3(t, w2):
        # Zero-padded "same" 3x3 conv as ONE wide-K matmul (CP, KP) @ (KP, NL).
        # Taps are staged into the persistent bf16 im2col scratch two at a time
        # (16-row aligned stores), so at most 2 taps are live simultaneously.
        pending = None
        pend_idx = 0
        k = 0
        for oy in (-1, 0, 1):
            if oy == 0:
                tv = t
            else:
                tv = jnp.where(vmask[oy],
                               pltpu.roll(t, (-oy * w) % NL, 1), 0.0)
            for ox in (-1, 0, 1):
                if ox == 0:
                    tap = tv
                else:
                    tap = jnp.where(hmask[ox],
                                    pltpu.roll(tv, (-ox) % NL, 1), 0.0)
                if pending is None:
                    pending, pend_idx = tap, k
                else:
                    blk = jnp.concatenate([pending, tap], axis=0)
                    im2col_ref[pend_idx * CP:(pend_idx + 2) * CP, :] = (
                        blk.astype(jnp.bfloat16))
                    pending = None
                k += 1
        if pending is not None:                      # odd tap count (9)
            tail = KP - pend_idx * CP
            if tail >= 2 * CP:                       # pad with zero rows to a
                blk = jnp.concatenate(               # full 16-row aligned store
                    [pending, jnp.zeros_like(pending)], axis=0)
            else:
                blk = pending
            im2col_ref[pend_idx * CP:pend_idx * CP + blk.shape[0], :] = (
                blk.astype(jnp.bfloat16))
        return jnp.dot(w2, im2col_ref[...], preferred_element_type=jnp.float32)

    cur = x_ref[...].astype(jnp.float32)
    gate = jnp.zeros((CP, NL), jnp.float32)

    # TODO(synk): convert to lax.fori_loop with r-indexed weight loads if R or
    # the NL tile grows (bounds vreg live ranges); at R=3 unrolled is fine.
    for r in range(R):                        # recursive unit: ResidualBlocks
        residual = cur
        t = cur
        for u in range(2):                    # BN -> ReLU -> Conv3x3, twice
            a = bn_relu(t, rbg_ref[r, u], rbb_ref[r, u])
            t = conv3x3(a, rbw_ref[r, u])
        cur = t + residual
        # gate-unit contribution of short-term memory xs[r], folded in here so
        # the R intermediate (CP, NL) slabs are never simultaneously live.
        ga = bn_relu(cur, ggr_ref[r], gbr_ref[r])
        gate = gate + jnp.dot(gwr_ref[r], ga,
                              preferred_element_type=jnp.float32)

    # long-term memories ys: BN per segment, then ONE batched gate matmul
    ys_bn = [bn_relu(ys_ref[m].astype(jnp.float32), ggy_ref[m], gby_ref[m])
             for m in range(M)]
    ys_stack = jnp.concatenate(ys_bn, axis=0)          # (M*CP, NL), 8-aligned
    gate = gate + jnp.dot(gwy_ref[...], ys_stack,
                          preferred_element_type=jnp.float32)

    out_ref[...] = gate                                 # lane-dense (CP, NL)


def memory_block_forward(x_nchw, ys_nchw, params):
    """x_nchw: (N,C,H,W); ys_nchw: (M,N,C,H,W). Returns gate_out in NCHW."""
    N, C, H, W = x_nchw.shape
    M = ys_nchw.shape[0]
    NL = N * H * W
    R = params['rb_w'].shape[0]
    CP = _round_up(C, 8)                   # f32 sublane tile
    KP = _round_up(9 * CP, 16)             # bf16 sublane tile for im2col K

    # lane-dense layout (channels -> sublanes), channel zero-pad, bf16 stream
    x_cl = jnp.transpose(x_nchw, (1, 0, 2, 3)).reshape(C, NL)
    x_cl = jnp.pad(x_cl, ((0, CP - C), (0, 0))).astype(jnp.bfloat16)
    ys_cl = jnp.transpose(ys_nchw, (0, 2, 1, 3, 4)).reshape(M, C, NL)
    ys_cl = jnp.pad(ys_cl, ((0, 0), (0, CP - C), (0, 0))).astype(jnp.bfloat16)

    # conv3x3 weights (R,2,3,3,Cin,Cout) -> channel-pad -> (R,2,CPout,9*CPin)
    # -> K-pad to KP with zero columns, bf16 MXU operand
    rw = jnp.pad(params['rb_w'],
                 ((0, 0), (0, 0), (0, 0), (0, 0), (0, CP - C), (0, CP - C)))
    rw = jnp.transpose(rw, (0, 1, 5, 2, 3, 4)).reshape(R, 2, CP, 9 * CP)
    rw = jnp.pad(rw, ((0, 0), (0, 0), (0, 0), (0, KP - 9 * CP)))
    rw = rw.astype(jnp.bfloat16)

    # BN affine params, padded channels get beta = 0 so they stay exactly zero
    rbg = jnp.pad(params['rb_gamma'], ((0, 0), (0, 0), (0, CP - C)))[..., None]
    rbb = jnp.pad(params['rb_beta'], ((0, 0), (0, 0), (0, CP - C)))[..., None]
    gg = jnp.pad(params['gate_gamma'], ((0, 0), (0, CP - C)))[..., None]
    gb = jnp.pad(params['gate_beta'], ((0, 0), (0, CP - C)))[..., None]

    # gate 1x1 conv, per concatenated segment: (G,Cin,Cout) -> (G,Cout,Cin),
    # channel-padded; ys segments are fused into one (CP, M*CP) operand (f32)
    gw = jnp.pad(jnp.transpose(params['gate_w'], (0, 2, 1)),
                 ((0, 0), (0, CP - C), (0, CP - C)))
    gwr = gw[:R]                                             # (R, CP, CP)
    gwy = jnp.transpose(gw[R:], (1, 0, 2)).reshape(CP, M * CP)

    kernel = functools.partial(_memblock_kernel, h=H, w=W)
    vmem = pl.BlockSpec(memory_space=pltpu.MemorySpace.VMEM)
    out_cl = pl.pallas_call(
        kernel,
        out_shape=jax.ShapeDtypeStruct((CP, NL), jnp.float32),
        in_specs=[vmem] * 11,
        out_specs=vmem,
        scratch_shapes=[pltpu.VMEM((KP, NL), jnp.bfloat16)],   # im2col buffer
        compiler_params=pltpu.CompilerParams(
            vmem_limit_bytes=32 * 1024 * 1024),
    )(x_cl, ys_cl, rbg, rbb, rw, gg[:R], gb[:R], gwr, gg[R:], gb[R:], gwy)

    return jnp.transpose(out_cl[:C].reshape(C, N, H, W), (1, 0, 2, 3))


def init_params(key, C, R, M):
    """Deterministic synthetic parameters (shapes from MemoryBlock.__init__)."""
    G = R + M
    ks = jax.random.split(key, 6)
    rb_gamma = 1.0 + 0.1 * jax.random.normal(ks[0], (R, 2, C), jnp.float32)
    rb_beta = 0.1 * jax.random.normal(ks[1], (R, 2, C), jnp.float32)
    # conv3x3 weights stored HWIO-like: (R, 2, kh, kw, Cin, Cout)
    rb_w = jax.random.normal(ks[2], (R, 2, 3, 3, C, C), jnp.float32) * np.sqrt(2.0 / (9 * C))
    gate_gamma = 1.0 + 0.1 * jax.random.normal(ks[3], (G, C), jnp.float32)
    gate_beta = 0.1 * jax.random.normal(ks[4], (G, C), jnp.float32)
    # 1x1 gate conv, split per concatenated segment: (G, Cin_per_seg, Cout)
    gate_w = jax.random.normal(ks[5], (G, C, C), jnp.float32) * np.sqrt(2.0 / (G * C))
    return dict(rb_gamma=rb_gamma, rb_beta=rb_beta, rb_w=rb_w,
                gate_gamma=gate_gamma, gate_beta=gate_beta, gate_w=gate_w)


def ref_forward(x, ys, p):
    """Pure-JAX NHWC reference matching the PyTorch forward (training-mode BN)."""
    R = p['rb_w'].shape[0]
    M = ys.shape[0]
    C = x.shape[-1]

    def bn_relu(t, gamma, beta):
        mean = jnp.mean(t, axis=(0, 1, 2), keepdims=True)
        var = jnp.mean((t - mean) ** 2, axis=(0, 1, 2), keepdims=True)
        return jnp.maximum((t - mean) / jnp.sqrt(var + EPS) * gamma + beta, 0.0)

    cur = x
    xs = []
    for r in range(R):
        res = cur
        t = cur
        for u in range(2):
            a = bn_relu(t, p['rb_gamma'][r, u], p['rb_beta'][r, u])
            t = jax.lax.conv_general_dilated(
                a, p['rb_w'][r, u], (1, 1), ((1, 1), (1, 1)),
                dimension_numbers=('NHWC', 'HWIO', 'NHWC'),
                precision=jax.lax.Precision.HIGHEST)
        cur = t + res
        xs.append(cur)
    cat = jnp.concatenate(xs + [ys[m] for m in range(M)], axis=-1)
    gamma_full = p['gate_gamma'].reshape(-1)
    beta_full = p['gate_beta'].reshape(-1)
    a = bn_relu(cat, gamma_full, beta_full)
    w_full = p['gate_w'].reshape(-1, C)
    return jnp.einsum('nhwc,cd->nhwd', a, w_full,
                      precision=jax.lax.Precision.HIGHEST)


if __name__ == "__main__":
    N, C, H, W = 2, 4, 16, 16
    R, M = 3, 2            # num_resblock, num_memblock (== len(ys))

    key = jax.random.PRNGKey(0)
    kx, ky, kp = jax.random.split(key, 3)
    x_nchw = jax.random.normal(kx, (N, C, H, W), jnp.float32)       # PyTorch layout
    ys_nchw = jax.random.normal(ky, (M, N, C, H, W), jnp.float32)   # long-term memories
    params = init_params(kp, C, R, M)

    gate_out_nchw = memory_block_forward(x_nchw, ys_nchw, params)
    gate_out_nchw = jax.block_until_ready(gate_out_nchw)
    assert gate_out_nchw.shape == (N, C, H, W)

    # reproduce the PyTorch side-effect: ys.append(gate_out)
    ys_updated = [ys_nchw[m] for m in range(M)] + [gate_out_nchw]
    assert len(ys_updated) == M + 1

    # pure-JAX NHWC reference, fed the same bf16-rounded inputs the kernel sees
    # so the tolerance only covers the bf16 MXU staging inside the kernel.
    x_q = x_nchw.astype(jnp.bfloat16).astype(jnp.float32)
    ys_q = ys_nchw.astype(jnp.bfloat16).astype(jnp.float32)
    x_nhwc = jnp.transpose(x_q, (0, 2, 3, 1))
    ys_nhwc = jnp.transpose(ys_q, (0, 1, 3, 4, 2))
    ref_nhwc = ref_forward(x_nhwc, ys_nhwc, params)
    got_nhwc = jnp.transpose(gate_out_nchw, (0, 2, 3, 1))
    np.testing.assert_allclose(np.asarray(got_nhwc), np.asarray(ref_nhwc),
                               rtol=3e-2, atol=3e-2)
    print("KERNEL_OK")
</pallas_src>

<mosaic_0001>
module attributes {stable_mosaic.version = 11 : i64} {
  func.func @_memblock_kernel(%arg0: memref<8x512xbf16, #tpu.memory_space<vmem>>, %arg1: memref<2x8x512xbf16, #tpu.memory_space<vmem>>, %arg2: memref<3x2x8x1xf32, #tpu.memory_space<vmem>>, %arg3: memref<3x2x8x1xf32, #tpu.memory_space<vmem>>, %arg4: memref<3x2x8x80xbf16, #tpu.memory_space<vmem>>, %arg5: memref<3x8x1xf32, #tpu.memory_space<vmem>>, %arg6: memref<3x8x1xf32, #tpu.memory_space<vmem>>, %arg7: memref<3x8x8xf32, #tpu.memory_space<vmem>>, %arg8: memref<2x8x1xf32, #tpu.memory_space<vmem>>, %arg9: memref<2x8x1xf32, #tpu.memory_space<vmem>>, %arg10: memref<8x16xf32, #tpu.memory_space<vmem>>, %arg11: memref<8x512xf32, #tpu.memory_space<vmem>>, %arg12: memref<80x512xbf16, #tpu.memory_space<vmem>>) attributes {dimension_semantics = [], scalar_prefetch = 0 : i64, scratch_operands = 1 : i64, tpu.core_type = #tpu.core_type<tc>} {
    %0 = tpu.iota {dimensions = array<i32: 1>} : vector<1x512xi32>
    %c256_i32 = arith.constant 256 : i32
    %c0_i32 = arith.constant 0 : i32
    %1 = arith.cmpi eq, %c256_i32, %c0_i32 : i32
    %c1_i32 = arith.constant 1 : i32
    %2 = arith.select %1, %c1_i32, %c256_i32 : i32
    %3 = vector.broadcast %2 : i32 to vector<1x512xi32>
    %4 = arith.remsi %0, %3 : vector<1x512xi32>
    %c0_i32_0 = arith.constant 0 : i32
    %5 = vector.broadcast %c0_i32_0 : i32 to vector<1x512xi32>
    %6 = arith.cmpi ne, %4, %5 : vector<1x512xi32>
    %c0_i32_1 = arith.constant 0 : i32
    %7 = vector.broadcast %c0_i32_1 : i32 to vector<1x512xi32>
    %8 = arith.cmpi slt, %4, %7 : vector<1x512xi32>
    %c0_i32_2 = arith.constant 0 : i32
    %9 = arith.cmpi slt, %2, %c0_i32_2 : i32
    %10 = vector.broadcast %9 : i1 to vector<1x512xi1>
    %11 = vector.broadcast %10 : vector<1x512xi1> to vector<1x512xi1>
    %12 = arith.xori %8, %11 : vector<1x512xi1>
    %13 = arith.andi %12, %6 : vector<1x512xi1>
    %14 = vector.broadcast %2 : i32 to vector<1x512xi32>
    %15 = arith.addi %4, %14 : vector<1x512xi32>
    %16 = arith.select %13, %15, %4 : vector<1x512xi1>, vector<1x512xi32>
    %c16_i32 = arith.constant 16 : i32
    %c0_i32_3 = arith.constant 0 : i32
    %17 = arith.cmpi eq, %c16_i32, %c0_i32_3 : i32
    %c1_i32_4 = arith.constant 1 : i32
    %18 = arith.select %17, %c1_i32_4, %c16_i32 : i32
    %19 = vector.broadcast %18 : i32 to vector<1x512xi32>
    %20 = arith.remsi %0, %19 : vector<1x512xi32>
    %c0_i32_5 = arith.constant 0 : i32
    %21 = vector.broadcast %c0_i32_5 : i32 to vector<1x512xi32>
    %22 = arith.cmpi ne, %20, %21 : vector<1x512xi32>
    %c0_i32_6 = arith.constant 0 : i32
    %23 = vector.broadcast %c0_i32_6 : i32 to vector<1x512xi32>
    %24 = arith.cmpi slt, %20, %23 : vector<1x512xi32>
    %c0_i32_7 = arith.constant 0 : i32
    %25 = arith.cmpi slt, %18, %c0_i32_7 : i32
    %26 = vector.broadcast %25 : i1 to vector<1x512xi1>
    %27 = vector.broadcast %26 : vector<1x512xi1> to vector<1x512xi1>
    %28 = arith.xori %24, %27 : vector<1x512xi1>
    %29 = arith.andi %28, %22 : vector<1x512xi1>
    %30 = vector.broadcast %18 : i32 to vector<1x512xi32>
    %31 = arith.addi %20, %30 : vector<1x512xi32>
    %32 = arith.select %29, %31, %20 : vector<1x512xi1>, vector<1x512xi32>
    %c16_i32_8 = arith.constant 16 : i32
    %33 = vector.broadcast %c16_i32_8 : i32 to vector<1x512xi32>
    %34 = arith.cmpi sge, %16, %33 : vector<1x512xi32>
    %c16_i32_9 = arith.constant 16 : i32
    %35 = vector.broadcast %c16_i32_9 : i32 to vector<1x512xi32>
    %36 = arith.addi %16, %35 : vector<1x512xi32>
    %c256_i32_10 = arith.constant 256 : i32
    %37 = vector.broadcast %c256_i32_10 : i32 to vector<1x512xi32>
    %38 = arith.cmpi slt, %36, %37 : vector<1x512xi32>
    %c1_i32_11 = arith.constant 1 : i32
    %39 = vector.broadcast %c1_i32_11 : i32 to vector<1x512xi32>
    %40 = arith.cmpi sge, %32, %39 : vector<1x512xi32>
    %c1_i32_12 = arith.constant 1 : i32
    %41 = vector.broadcast %c1_i32_12 : i32 to vector<1x512xi32>
    %42 = arith.addi %32, %41 : vector<1x512xi32>
    %c16_i32_13 = arith.constant 16 : i32
    %43 = vector.broadcast %c16_i32_13 : i32 to vector<1x512xi32>
    %44 = arith.cmpi slt, %42, %43 : vector<1x512xi32>
    %c0 = arith.constant 0 : index
    %c0_14 = arith.constant 0 : index
    %45 = vector.load %arg0[%c0, %c0_14] : memref<8x512xbf16, #tpu.memory_space<vmem>>, vector<8x512xbf16>
    %46 = arith.extf %45 : vector<8x512xbf16> to vector<8x512xf32>
    %cst = arith.constant 0.000000e+00 : f32
    %47 = vector.broadcast %cst : f32 to vector<8x512xf32>
    %c0_15 = arith.constant 0 : index
    %c0_16 = arith.constant 0 : index
    %c0_17 = arith.constant 0 : index
    %c0_18 = arith.constant 0 : index
    %48 = vector.load %arg2[%c0_15, %c0_16, %c0_17, %c0_18] : memref<3x2x8x1xf32, #tpu.memory_space<vmem>>, vector<1x1x8x1xf32>
    %49 = vector.shape_cast %48 : vector<1x1x8x1xf32> to vector<8x1xf32>
    %c0_19 = arith.constant 0 : index
    %c0_20 = arith.constant 0 : index
    %c0_21 = arith.constant 0 : index
    %c0_22 = arith.constant 0 : index
    %50 = vector.load %arg3[%c0_19, %c0_20, %c0_21, %c0_22] : memref<3x2x8x1xf32, #tpu.memory_space<vmem>>, vector<1x1x8x1xf32>
    %51 = vector.shape_cast %50 : vector<1x1x8x1xf32> to vector<8x1xf32>
    %cst_23 = arith.constant dense<0.000000e+00> : vector<8xf32>
    %52 = vector.multi_reduction <add>, %46, %cst_23 [1] : vector<8x512xf32> to vector<8xf32>
    %53 = vector.shape_cast %52 : vector<8xf32> to vector<8x1xf32>
    %cst_24 = arith.constant 5.120000e+02 : f32
    %54 = vector.broadcast %cst_24 : f32 to vector<8x1xf32>
    %55 = arith.divf %53, %54 : vector<8x1xf32>
    %56 = vector.broadcast %55 : vector<8x1xf32> to vector<8x512xf32>
    %57 = arith.subf %46, %56 : vector<8x512xf32>
    %58 = arith.mulf %57, %57 : vector<8x512xf32>
    %cst_25 = arith.constant dense<0.000000e+00> : vector<8xf32>
    %59 = vector.multi_reduction <add>, %58, %cst_25 [1] : vector<8x512xf32> to vector<8xf32>
    %60 = vector.shape_cast %59 : vector<8xf32> to vector<8x1xf32>
    %cst_26 = arith.constant 5.120000e+02 : f32
    %61 = vector.broadcast %cst_26 : f32 to vector<8x1xf32>
    %62 = arith.divf %60, %61 : vector<8x1xf32>
    %cst_27 = arith.constant 9.99999974E-6 : f32
    %63 = vector.broadcast %cst_27 : f32 to vector<8x1xf32>
    %64 = arith.addf %62, %63 : vector<8x1xf32>
    %65 = math.rsqrt %64 : vector<8x1xf32>
    %66 = vector.broadcast %65 : vector<8x1xf32> to vector<8x512xf32>
    %67 = arith.mulf %57, %66 : vector<8x512xf32>
    %68 = vector.broadcast %49 : vector<8x1xf32> to vector<8x512xf32>
    %69 = arith.mulf %67, %68 : vector<8x512xf32>
    %70 = vector.broadcast %51 : vector<8x1xf32> to vector<8x512xf32>
    %71 = arith.addf %69, %70 : vector<8x512xf32>
    %cst_28 = arith.constant 0.000000e+00 : f32
    %72 = vector.broadcast %cst_28 : f32 to vector<8x512xf32>
    %73 = arith.maximumf %71, %72 : vector<8x512xf32>
    %c0_29 = arith.constant 0 : index
    %c0_30 = arith.constant 0 : index
    %c0_31 = arith.constant 0 : index
    %c0_32 = arith.constant 0 : index
    %74 = vector.load %arg4[%c0_29, %c0_30, %c0_31, %c0_32] : memref<3x2x8x80xbf16, #tpu.memory_space<vmem>>, vector<1x1x8x80xbf16>
    %75 = vector.shape_cast %74 : vector<1x1x8x80xbf16> to vector<8x80xbf16>
    %c16_i32_33 = arith.constant 16 : i32
    %76 = tpu.dynamic_rotate %73 by %c16_i32_33 dim 1 : vector<8x512xf32>, i32 -> vector<8x512xf32>
    %cst_34 = arith.constant 0.000000e+00 : f32
    %77 = vector.shape_cast %34 : vector<1x512xi1> to vector<1x512xi1>
    %78 = vector.broadcast %77 : vector<1x512xi1> to vector<8x512xi1>
    %79 = vector.broadcast %cst_34 : f32 to vector<8x512xf32>
    %80 = arith.select %78, %76, %79 : vector<8x512xi1>, vector<8x512xf32>
    %c1_i32_35 = arith.constant 1 : i32
    %81 = tpu.dynamic_rotate %80 by %c1_i32_35 dim 1 : vector<8x512xf32>, i32 -> vector<8x512xf32>
    %cst_36 = arith.constant 0.000000e+00 : f32
    %82 = vector.shape_cast %40 : vector<1x512xi1> to vector<1x512xi1>
    %83 = vector.broadcast %82 : vector<1x512xi1> to vector<8x512xi1>
    %84 = vector.broadcast %cst_36 : f32 to vector<8x512xf32>
    %85 = arith.select %83, %81, %84 : vector<8x512xi1>, vector<8x512xf32>
    %86 = tpu.concatenate %85, %80 in 0 : vector<8x512xf32>, vector<8x512xf32> -> vector<16x512xf32>
    %87 = arith.truncf %86 : vector<16x512xf32> to vector<16x512xbf16>
    %c0_37 = arith.constant 0 : index
    %c0_38 = arith.constant 0 : index
    %88 = vector.load %arg12[%c0_37, %c0_38] : memref<80x512xbf16, #tpu.memory_space<vmem>>, vector<16x512xbf16>
    tpu.vector_store %arg12[%c0_37, %c0_38], %87 {strides = array<i32>} : memref<80x512xbf16, #tpu.memory_space<vmem>>, vector<16x512xbf16>,
    %c511_i32 = arith.constant 511 : i32
    %89 = tpu.dynamic_rotate %80 by %c511_i32 dim 1 : vector<8x512xf32>, i32 -> vector<8x512xf32>
    %cst_39 = arith.constant 0.000000e+00 : f32
    %90 = vector.shape_cast %44 : vector<1x512xi1> to vector<1x512xi1>
    %91 = vector.broadcast %90 : vector<1x512xi1> to vector<8x512xi1>
    %92 = vector.broadcast %cst_39 : f32 to vector<8x512xf32>
    %93 = arith.select %91, %89, %92 : vector<8x512xi1>, vector<8x512xf32>
    %c1_i32_40 = arith.constant 1 : i32
    %94 = tpu.dynamic_rotate %73 by %c1_i32_40 dim 1 : vector<8x512xf32>, i32 -> vector<8x512xf32>
    %cst_41 = arith.constant 0.000000e+00 : f32
    %95 = vector.shape_cast %40 : vector<1x512xi1> to vector<1x512xi1>
    %96 = vector.broadcast %95 : vector<1x512xi1> to vector<8x512xi1>
    %97 = vector.broadcast %cst_41 : f32 to vector<8x512xf32>
    %98 = arith.select %96, %94, %97 : vector<8x512xi1>, vector<8x512xf32>
    %99 = tpu.concatenate %93, %98 in 0 : vector<8x512xf32>, vector<8x512xf32> -> vector<16x512xf32>
    %100 = arith.truncf %99 : vector<16x512xf32> to vector<16x512xbf16>
    %c16 = arith.constant 16 : index
    %c0_42 = arith.constant 0 : index
    %101 = vector.load %arg12[%c16, %c0_42] : memref<80x512xbf16, #tpu.memory_space<vmem>>, vector<16x512xbf16>
    tpu.vector_store %arg12[%c16, %c0_42], %100 {strides = array<i32>} : memref<80x512xbf16, #tpu.memory_space<vmem>>, vector<16x512xbf16>,
    %c511_i32_43 = arith.constant 511 : i32
    %102 = tpu.dynamic_rotate %73 by %c511_i32_43 dim 1 : vector<8x512xf32>, i32 -> vector<8x512xf32>
    %cst_44 = arith.constant 0.000000e+00 : f32
    %103 = vector.shape_cast %44 : vector<1x512xi1> to vector<1x512xi1>
    %104 = vector.broadcast %103 : vector<1x512xi1> to vector<8x512xi1>
    %105 = vector.broadcast %cst_44 : f32 to vector<8x512xf32>
    %106 = arith.select %104, %102, %105 : vector<8x512xi1>, vector<8x512xf32>
    %107 = tpu.concatenate %73, %106 in 0 : vector<8x512xf32>, vector<8x512xf32> -> vector<16x512xf32>
    %108 = arith.truncf %107 : vector<16x512xf32> to vector<16x512xbf16>
    %c32 = arith.constant 32 : index
    %c0_45 = arith.constant 0 : index
    %109 = vector.load %arg12[%c32, %c0_45] : memref<80x512xbf16, #tpu.memory_space<vmem>>, vector<16x512xbf16>
    tpu.vector_store %arg12[%c32, %c0_45], %108 {strides = array<i32>} : memref<80x512xbf16, #tpu.memory_space<vmem>>, vector<16x512xbf16>,
    %c496_i32 = arith.constant 496 : i32
    %110 = tpu.dynamic_rotate %73 by %c496_i32 dim 1 : vector<8x512xf32>, i32 -> vector<8x512xf32>
    %cst_46 = arith.constant 0.000000e+00 : f32
    %111 = vector.shape_cast %38 : vector<1x512xi1> to vector<1x512xi1>
    %112 = vector.broadcast %111 : vector<1x512xi1> to vector<8x512xi1>
    %113 = vector.broadcast %cst_46 : f32 to vector<8x512xf32>
    %114 = arith.select %112, %110, %113 : vector<8x512xi1>, vector<8x512xf32>
    %c1_i32_47 = arith.constant 1 : i32
    %115 = tpu.dynamic_rotate %114 by %c1_i32_47 dim 1 : vector<8x512xf32>, i32 -> vector<8x512xf32>
    %cst_48 = arith.constant 0.000000e+00 : f32
    %116 = vector.shape_cast %40 : vector<1x512xi1> to vector<1x512xi1>
    %117 = vector.broadcast %116 : vector<1x512xi1> to vector<8x512xi1>
    %118 = vector.broadcast %cst_48 : f32 to vector<8x512xf32>
    %119 = arith.select %117, %115, %118 : vector<8x512xi1>, vector<8x512xf32>
    %120 = tpu.concatenate %119, %114 in 0 : vector<8x512xf32>, vector<8x512xf32> -> vector<16x512xf32>
    %121 = arith.truncf %120 : vector<16x512xf32> to vector<16x512xbf16>
    %c48 = arith.constant 48 : index
    %c0_49 = arith.constant 0 : index
    %122 = vector.load %arg12[%c48, %c0_49] : memref<80x512xbf16, #tpu.memory_space<vmem>>, vector<16x512xbf16>
    tpu.vector_store %arg12[%c48, %c0_49], %121 {strides = array<i32>} : memref<80x512xbf16, #tpu.memory_space<vmem>>, vector<16x512xbf16>,
    %c511_i32_50 = arith.constant 511 : i32
    %123 = tpu.dynamic_rotate %114 by %c511_i32_50 dim 1 : vector<8x512xf32>, i32 -> vector<8x512xf32>
    %cst_51 = arith.constant 0.000000e+00 : f32
    %124 = vector.shape_cast %44 : vector<1x512xi1> to vector<1x512xi1>
    %125 = vector.broadcast %124 : vector<1x512xi1> to vector<8x512xi1>
    %126 = vector.broadcast %cst_51 : f32 to vector<8x512xf32>
    %127 = arith.select %125, %123, %126 : vector<8x512xi1>, vector<8x512xf32>
    %cst_52 = arith.constant 0.000000e+00 : f32
    %128 = vector.broadcast %cst_52 : f32 to vector<8x512xf32>
    %129 = tpu.concatenate %127, %128 in 0 : vector<8x512xf32>, vector<8x512xf32> -> vector<16x512xf32>
    %130 = arith.truncf %129 : vector<16x512xf32> to vector<16x512xbf16>
    %c64 = arith.constant 64 : index
    %c0_53 = arith.constant 0 : index
    %131 = vector.load %arg12[%c64, %c0_53] : memref<80x512xbf16, #tpu.memory_space<vmem>>, vector<16x512xbf16>
    tpu.vector_store %arg12[%c64, %c0_53], %130 {strides = array<i32>} : memref<80x512xbf16, #tpu.memory_space<vmem>>, vector<16x512xbf16>,
    %c0_54 = arith.constant 0 : index
    %c0_55 = arith.constant 0 : index
    %132 = vector.load %arg12[%c0_54, %c0_55] : memref<80x512xbf16, #tpu.memory_space<vmem>>, vector<80x512xbf16>
    %cst_56 = arith.constant dense<0.000000e+00> : vector<8x512xf32>
    %133 = tpu.matmul %75, %132, %cst_56 {dimension_numbers = #tpu.dot_dimension_numbers<[1], [0], [0], [1], [0, 0, 1, 1], [], []>} : vector<8x80xbf16>, vector<80x512xbf16>, vector<8x512xf32> -> vector<8x512xf32>
    %c0_57 = arith.constant 0 : index
    %c1 = arith.constant 1 : index
    %c0_58 = arith.constant 0 : index
    %c0_59 = arith.constant 0 : index
    %134 = vector.load %arg2[%c0_57, %c1, %c0_58, %c0_59] : memref<3x2x8x1xf32, #tpu.memory_space<vmem>>, vector<1x1x8x1xf32>
    %135 = vector.shape_cast %134 : vector<1x1x8x1xf32> to vector<8x1xf32>
    %c0_60 = arith.constant 0 : index
    %c1_61 = arith.constant 1 : index
    %c0_62 = arith.constant 0 : index
    %c0_63 = arith.constant 0 : index
    %136 = vector.load %arg3[%c0_60, %c1_61, %c0_62, %c0_63] : memref<3x2x8x1xf32, #tpu.memory_space<vmem>>, vector<1x1x8x1xf32>
    %137 = vector.shape_cast %136 : vector<1x1x8x1xf32> to vector<8x1xf32>
    %cst_64 = arith.constant dense<0.000000e+00> : vector<8xf32>
    %138 = vector.multi_reduction <add>, %133, %cst_64 [1] : vector<8x512xf32> to vector<8xf32>
    %139 = vector.shape_cast %138 : vector<8xf32> to vector<8x1xf32>
    %cst_65 = arith.constant 5.120000e+02 : f32
    %140 = vector.broadcast %cst_65 : f32 to vector<8x1xf32>
    %141 = arith.divf %139, %140 : vector<8x1xf32>
    %142 = vector.broadcast %141 : vector<8x1xf32> to vector<8x512xf32>
    %143 = arith.subf %133, %142 : vector<8x512xf32>
    %144 = arith.mulf %143, %143 : vector<8x512xf32>
    %cst_66 = arith.constant dense<0.000000e+00> : vector<8xf32>
    %145 = vector.multi_reduction <add>, %144, %cst_66 [1] : vector<8x512xf32> to vector<8xf32>
    %146 = vector.shape_cast %145 : vector<8xf32> to vector<8x1xf32>
    %cst_67 = arith.constant 5.120000e+02 : f32
    %147 = vector.broadcast %cst_67 : f32 to vector<8x1xf32>
    %148 = arith.divf %146, %147 : vector<8x1xf32>
    %cst_68 = arith.constant 9.99999974E-6 : f32
    %149 = vector.broadcast %cst_68 : f32 to vector<8x1xf32>
    %150 = arith.addf %148, %149 : vector<8x1xf32>
    %151 = math.rsqrt %150 : vector<8x1xf32>
    %152 = vector.broadcast %151 : vector<8x1xf32> to vector<8x512xf32>
    %153 = arith.mulf %143, %152 : vector<8x512xf32>
    %154 = vector.broadcast %135 : vector<8x1xf32> to vector<8x512xf32>
    %155 = arith.mulf %153, %154 : vector<8x512xf32>
    %156 = vector.broadcast %137 : vector<8x1xf32> to vector<8x512xf32>
    %157 = arith.addf %155, %156 : vector<8x512xf32>
    %cst_69 = arith.constant 0.000000e+00 : f32
    %158 = vector.broadcast %cst_69 : f32 to vector<8x512xf32>
    %159 = arith.maximumf %157, %158 : vector<8x512xf32>
    %c0_70 = arith.constant 0 : index
    %c1_71 = arith.constant 1 : index
    %c0_72 = arith.constant 0 : index
    %c0_73 = arith.constant 0 : index
    %160 = vector.load %arg4[%c0_70, %c1_71, %c0_72, %c0_73] : memref<3x2x8x80xbf16, #tpu.memory_space<vmem>>, vector<1x1x8x80xbf16>
    %161 = vector.shape_cast %160 : vector<1x1x8x80xbf16> to vector<8x80xbf16>
    %c16_i32_74 = arith.constant 16 : i32
    %162 = tpu.dynamic_rotate %159 by %c16_i32_74 dim 1 : vector<8x512xf32>, i32 -> vector<8x512xf32>
    %cst_75 = arith.constant 0.000000e+00 : f32
    %163 = vector.shape_cast %34 : vector<1x512xi1> to vector<1x512xi1>
    %164 = vector.broadcast %163 : vector<1x512xi1> to vector<8x512xi1>
    %165 = vector.broadcast %cst_75 : f32 to vector<8x512xf32>
    %166 = arith.select %164, %162, %165 : vector<8x512xi1>, vector<8x512xf32>
    %c1_i32_76 = arith.constant 1 : i32
    %167 = tpu.dynamic_rotate %166 by %c1_i32_76 dim 1 : vector<8x512xf32>, i32 -> vector<8x512xf32>
    %cst_77 = arith.constant 0.000000e+00 : f32
    %168 = vector.shape_cast %40 : vector<1x512xi1> to vector<1x512xi1>
    %169 = vector.broadcast %168 : vector<1x512xi1> to vector<8x512xi1>
    %170 = vector.broadcast %cst_77 : f32 to vector<8x512xf32>
    %171 = arith.select %169, %167, %170 : vector<8x512xi1>, vector<8x512xf32>
    %172 = tpu.concatenate %171, %166 in 0 : vector<8x512xf32>, vector<8x512xf32> -> vector<16x512xf32>
    %173 = arith.truncf %172 : vector<16x512xf32> to vector<16x512xbf16>
    %c0_78 = arith.constant 0 : index
    %c0_79 = arith.constant 0 : index
    %174 = vector.load %arg12[%c0_78, %c0_79] : memref<80x512xbf16, #tpu.memory_space<vmem>>, vector<16x512xbf16>
    tpu.vector_store %arg12[%c0_78, %c0_79], %173 {strides = array<i32>} : memref<80x512xbf16, #tpu.memory_space<vmem>>, vector<16x512xbf16>,
    %c511_i32_80 = arith.constant 511 : i32
    %175 = tpu.dynamic_rotate %166 by %c511_i32_80 dim 1 : vector<8x512xf32>, i32 -> vector<8x512xf32>
    %cst_81 = arith.constant 0.000000e+00 : f32
    %176 = vector.shape_cast %44 : vector<1x512xi1> to vector<1x512xi1>
    %177 = vector.broadcast %176 : vector<1x512xi1> to vector<8x512xi1>
    %178 = vector.broadcast %cst_81 : f32 to vector<8x512xf32>
    %179 = arith.select %177, %175, %178 : vector<8x512xi1>, vector<8x512xf32>
    %c1_i32_82 = arith.constant 1 : i32
    %180 = tpu.dynamic_rotate %159 by %c1_i32_82 dim 1 : vector<8x512xf32>, i32 -> vector<8x512xf32>
    %cst_83 = arith.constant 0.000000e+00 : f32
    %181 = vector.shape_cast %40 : vector<1x512xi1> to vector<1x512xi1>
    %182 = vector.broadcast %181 : vector<1x512xi1> to vector<8x512xi1>
    %183 = vector.broadcast %cst_83 : f32 to vector<8x512xf32>
    %184 = arith.select %182, %180, %183 : vector<8x512xi1>, vector<8x512xf32>
    %185 = tpu.concatenate %179, %184 in 0 : vector<8x512xf32>, vector<8x512xf32> -> vector<16x512xf32>
    %186 = arith.truncf %185 : vector<16x512xf32> to vector<16x512xbf16>
    %c16_84 = arith.constant 16 : index
    %c0_85 = arith.constant 0 : index
    %187 = vector.load %arg12[%c16_84, %c0_85] : memref<80x512xbf16, #tpu.memory_space<vmem>>, vector<16x512xbf16>
    tpu.vector_store %arg12[%c16_84, %c0_85], %186 {strides = array<i32>} : memref<80x512xbf16, #tpu.memory_space<vmem>>, vector<16x512xbf16>,
    %c511_i32_86 = arith.constant 511 : i32
    %188 = tpu.dynamic_rotate %159 by %c511_i32_86 dim 1 : vector<8x512xf32>, i32 -> vector<8x512xf32>
    %cst_87 = arith.constant 0.000000e+00 : f32
    %189 = vector.shape_cast %44 : vector<1x512xi1> to vector<1x512xi1>
    %190 = vector.broadcast %189 : vector<1x512xi1> to vector<8x512xi1>
    %191 = vector.broadcast %cst_87 : f32 to vector<8x512xf32>
    %192 = arith.select %190, %188, %191 : vector<8x512xi1>, vector<8x512xf32>
    %193 = tpu.concatenate %159, %192 in 0 : vector<8x512xf32>, vector<8x512xf32> -> vector<16x512xf32>
    %194 = arith.truncf %193 : vector<16x512xf32> to vector<16x512xbf16>
    %c32_88 = arith.constant 32 : index
    %c0_89 = arith.constant 0 : index
    %195 = vector.load %arg12[%c32_88, %c0_89] : memref<80x512xbf16, #tpu.memory_space<vmem>>, vector<16x512xbf16>
    tpu.vector_store %arg12[%c32_88, %c0_89], %194 {strides = array<i32>} : memref<80x512xbf16, #tpu.memory_space<vmem>>, vector<16x512xbf16>,
    %c496_i32_90 = arith.constant 496 : i32
    %196 = tpu.dynamic_rotate %159 by %c496_i32_90 dim 1 : vector<8x512xf32>, i32 -> vector<8x512xf32>
    %cst_91 = arith.constant 0.000000e+00 : f32
    %197 = vector.shape_cast %38 : vector<1x512xi1> to vector<1x512xi1>
    %198 = vector.broadcast %197 : vector<1x512xi1> to vector<8x512xi1>
    %199 = vector.broadcast %cst_91 : f32 to vector<8x512xf32>
    %200 = arith.select %198, %196, %199 : vector<8x512xi1>, vector<8x512xf32>
    %c1_i32_92 = arith.constant 1 : i32
    %201 = tpu.dynamic_rotate %200 by %c1_i32_92 dim 1 : vector<8x512xf32>, i32 -> vector<8x512xf32>
    %cst_93 = arith.constant 0.000000e+00 : f32
    %202 = vector.shape_cast %40 : vector<1x512xi1> to vector<1x512xi1>
    %203 = vector.broadcast %202 : vector<1x512xi1> to vector<8x512xi1>
    %204 = vector.broadcast %cst_93 : f32 to vector<8x512xf32>
    %205 = arith.select %203, %201, %204 : vector<8x512xi1>, vector<8x512xf32>
    %206 = tpu.concatenate %205, %200 in 0 : vector<8x512xf32>, vector<8x512xf32> -> vector<16x512xf32>
    %207 = arith.truncf %206 : vector<16x512xf32> to vector<16x512xbf16>
    %c48_94 = arith.constant 48 : index
    %c0_95 = arith.constant 0 : index
    %208 = vector.load %arg12[%c48_94, %c0_95] : memref<80x512xbf16, #tpu.memory_space<vmem>>, vector<16x512xbf16>
    tpu.vector_store %arg12[%c48_94, %c0_95], %207 {strides = array<i32>} : memref<80x512xbf16, #tpu.memory_space<vmem>>, vector<16x512xbf16>,
    %c511_i32_96 = arith.constant 511 : i32
    %209 = tpu.dynamic_rotate %200 by %c511_i32_96 dim 1 : vector<8x512xf32>, i32 -> vector<8x512xf32>
    %cst_97 = arith.constant 0.000000e+00 : f32
    %210 = vector.shape_cast %44 : vector<1x512xi1> to vector<1x512xi1>
    %211 = vector.broadcast %210 : vector<1x512xi1> to vector<8x512xi1>
    %212 = vector.broadcast %cst_97 : f32 to vector<8x512xf32>
    %213 = arith.select %211, %209, %212 : vector<8x512xi1>, vector<8x512xf32>
    %cst_98 = arith.constant 0.000000e+00 : f32
    %214 = vector.broadcast %cst_98 : f32 to vector<8x512xf32>
    %215 = tpu.concatenate %213, %214 in 0 : vector<8x512xf32>, vector<8x512xf32> -> vector<16x512xf32>
    %216 = arith.truncf %215 : vector<16x512xf32> to vector<16x512xbf16>
    %c64_99 = arith.constant 64 : index
    %c0_100 = arith.constant 0 : index
    %217 = vector.load %arg12[%c64_99, %c0_100] : memref<80x512xbf16, #tpu.memory_space<vmem>>, vector<16x512xbf16>
    tpu.vector_store %arg12[%c64_99, %c0_100], %216 {strides = array<i32>} : memref<80x512xbf16, #tpu.memory_space<vmem>>, vector<16x512xbf16>,
    %c0_101 = arith.constant 0 : index
    %c0_102 = arith.constant 0 : index
    %218 = vector.load %arg12[%c0_101, %c0_102] : memref<80x512xbf16, #tpu.memory_space<vmem>>, vector<80x512xbf16>
    %cst_103 = arith.constant dense<0.000000e+00> : vector<8x512xf32>
    %219 = tpu.matmul %161, %218, %cst_103 {dimension_numbers = #tpu.dot_dimension_numbers<[1], [0], [0], [1], [0, 0, 1, 1], [], []>} : vector<8x80xbf16>, vector<80x512xbf16>, vector<8x512xf32> -> vector<8x512xf32>
    %220 = arith.addf %219, %46 : vector<8x512xf32>
    %c0_104 = arith.constant 0 : index
    %c0_105 = arith.constant 0 : index
    %c0_106 = arith.constant 0 : index
    %221 = vector.load %arg5[%c0_104, %c0_105, %c0_106] : memref<3x8x1xf32, #tpu.memory_space<vmem>>, vector<1x8x1xf32>
    %222 = vector.shape_cast %221 : vector<1x8x1xf32> to vector<8x1xf32>
    %c0_107 = arith.constant 0 : index
    %c0_108 = arith.constant 0 : index
    %c0_109 = arith.constant 0 : index
    %223 = vector.load %arg6[%c0_107, %c0_108, %c0_109] : memref<3x8x1xf32, #tpu.memory_space<vmem>>, vector<1x8x1xf32>
    %224 = vector.shape_cast %223 : vector<1x8x1xf32> to vector<8x1xf32>
    %cst_110 = arith.constant dense<0.000000e+00> : vector<8xf32>
    %225 = vector.multi_reduction <add>, %220, %cst_110 [1] : vector<8x512xf32> to vector<8xf32>
    %226 = vector.shape_cast %225 : vector<8xf32> to vector<8x1xf32>
    %cst_111 = arith.constant 5.120000e+02 : f32
    %227 = vector.broadcast %cst_111 : f32 to vector<8x1xf32>
    %228 = arith.divf %226, %227 : vector<8x1xf32>
    %229 = vector.broadcast %228 : vector<8x1xf32> to vector<8x512xf32>
    %230 = arith.subf %220, %229 : vector<8x512xf32>
    %231 = arith.mulf %230, %230 : vector<8x512xf32>
    %cst_112 = arith.constant dense<0.000000e+00> : vector<8xf32>
    %232 = vector.multi_reduction <add>, %231, %cst_112 [1] : vector<8x512xf32> to vector<8xf32>
    %233 = vector.shape_cast %232 : vector<8xf32> to vector<8x1xf32>
    %cst_113 = arith.constant 5.120000e+02 : f32
    %234 = vector.broadcast %cst_113 : f32 to vector<8x1xf32>
    %235 = arith.divf %233, %234 : vector<8x1xf32>
    %cst_114 = arith.constant 9.99999974E-6 : f32
    %236 = vector.broadcast %cst_114 : f32 to vector<8x1xf32>
    %237 = arith.addf %235, %236 : vector<8x1xf32>
    %238 = math.rsqrt %237 : vector<8x1xf32>
    %239 = vector.broadcast %238 : vector<8x1xf32> to vector<8x512xf32>
    %240 = arith.mulf %230, %239 : vector<8x512xf32>
    %241 = vector.broadcast %222 : vector<8x1xf32> to vector<8x512xf32>
    %242 = arith.mulf %240, %241 : vector<8x512xf32>
    %243 = vector.broadcast %224 : vector<8x1xf32> to vector<8x512xf32>
    %244 = arith.addf %242, %243 : vector<8x512xf32>
    %cst_115 = arith.constant 0.000000e+00 : f32
    %245 = vector.broadcast %cst_115 : f32 to vector<8x512xf32>
    %246 = arith.maximumf %244, %245 : vector<8x512xf32>
    %c0_116 = arith.constant 0 : index
    %c0_117 = arith.constant 0 : index
    %c0_118 = arith.constant 0 : index
    %247 = vector.load %arg7[%c0_116, %c0_117, %c0_118] : memref<3x8x8xf32, #tpu.memory_space<vmem>>, vector<1x8x8xf32>
    %248 = vector.shape_cast %247 : vector<1x8x8xf32> to vector<8x8xf32>
    %cst_119 = arith.constant dense<0.000000e+00> : vector<8x512xf32>
    %249 = tpu.matmul %248, %246, %cst_119 {dimension_numbers = #tpu.dot_dimension_numbers<[1], [0], [0], [1], [0, 0, 1, 1], [], []>} : vector<8x8xf32>, vector<8x512xf32>, vector<8x512xf32> -> vector<8x512xf32>
    %250 = arith.addf %47, %249 : vector<8x512xf32>
    %c1_120 = arith.constant 1 : index
    %c0_121 = arith.constant 0 : index
    %c0_122 = arith.constant 0 : index
    %c0_123 = arith.constant 0 : index
    %251 = vector.load %arg2[%c1_120, %c0_121, %c0_122, %c0_123] : memref<3x2x8x1xf32, #tpu.memory_space<vmem>>, vector<1x1x8x1xf32>
    %252 = vector.shape_cast %251 : vector<1x1x8x1xf32> to vector<8x1xf32>
    %c1_124 = arith.constant 1 : index
    %c0_125 = arith.constant 0 : index
    %c0_126 = arith.constant 0 : index
    %c0_127 = arith.constant 0 : index
    %253 = vector.load %arg3[%c1_124, %c0_125, %c0_126, %c0_127] : memref<3x2x8x1xf32, #tpu.memory_space<vmem>>, vector<1x1x8x1xf32>
    %254 = vector.shape_cast %253 : vector<1x1x8x1xf32> to vector<8x1xf32>
    %cst_128 = arith.constant dense<0.000000e+00> : vector<8xf32>
    %255 = vector.multi_reduction <add>, %220, %cst_128 [1] : vector<8x512xf32> to vector<8xf32>
    %256 = vector.shape_cast %255 : vector<8xf32> to vector<8x1xf32>
    %cst_129 = arith.constant 5.120000e+02 : f32
    %257 = vector.broadcast %cst_129 : f32 to vector<8x1xf32>
    %258 = arith.divf %256, %257 : vector<8x1xf32>
    %259 = vector.broadcast %258 : vector<8x1xf32> to vector<8x512xf32>
    %260 = arith.subf %220, %259 : vector<8x512xf32>
    %261 = arith.mulf %260, %260 : vector<8x512xf32>
    %cst_130 = arith.constant dense<0.000000e+00> : vector<8xf32>
    %262 = vector.multi_reduction <add>, %261, %cst_130 [1] : vector<8x512xf32> to vector<8xf32>
    %263 = vector.shape_cast %262 : vector<8xf32> to vector<8x1xf32>
    %cst_131 = arith.constant 5.120000e+02 : f32
    %264 = vector.broadcast %cst_131 : f32 to vector<8x1xf32>
    %265 = arith.divf %263, %264 : vector<8x1xf32>
    %cst_132 = arith.constant 9.99999974E-6 : f32
    %266 = vector.broadcast %cst_132 : f32 to vector<8x1xf32>
    %267 = arith.addf %265, %266 : vector<8x1xf32>
    %268 = math.rsqrt %267 : vector<8x1xf32>
    %269 = vector.broadcast %268 : vector<8x1xf32> to vector<8x512xf32>
    %270 = arith.mulf %260, %269 : vector<8x512xf32>
    %271 = vector.broadcast %252 : vector<8x1xf32> to vector<8x512xf32>
    %272 = arith.mulf %270, %271 : vector<8x512xf32>
    %273 = vector.broadcast %254 : vector<8x1xf32> to vector<8x512xf32>
    %274 = arith.addf %272, %273 : vector<8x512xf32>
    %cst_133 = arith.constant 0.000000e+00 : f32
    %275 = vector.broadcast %cst_133 : f32 to vector<8x512xf32>
    %276 = arith.maximumf %274, %275 : vector<8x512xf32>
    %c1_134 = arith.constant 1 : index
    %c0_135 = arith.constant 0 : index
    %c0_136 = arith.constant 0 : index
    %c0_137 = arith.constant 0 : index
    %277 = vector.load %arg4[%c1_134, %c0_135, %c0_136, %c0_137] : memref<3x2x8x80xbf16, #tpu.memory_space<vmem>>, vector<1x1x8x80xbf16>
    %278 = vector.shape_cast %277 : vector<1x1x8x80xbf16> to vector<8x80xbf16>
    %c16_i32_138 = arith.constant 16 : i32
    %279 = tpu.dynamic_rotate %276 by %c16_i32_138 dim 1 : vector<8x512xf32>, i32 -> vector<8x512xf32>
    %cst_139 = arith.constant 0.000000e+00 : f32
    %280 = vector.shape_cast %34 : vector<1x512xi1> to vector<1x512xi1>
    %281 = vector.broadcast %280 : vector<1x512xi1> to vector<8x512xi1>
    %282 = vector.broadcast %cst_139 : f32 to vector<8x512xf32>
    %283 = arith.select %281, %279, %282 : vector<8x512xi1>, vector<8x512xf32>
    %c1_i32_140 = arith.constant 1 : i32
    %284 = tpu.dynamic_rotate %283 by %c1_i32_140 dim 1 : vector<8x512xf32>, i32 -> vector<8x512xf32>
    %cst_141 = arith.constant 0.000000e+00 : f32
    %285 = vector.shape_cast %40 : vector<1x512xi1> to vector<1x512xi1>
    %286 = vector.broadcast %285 : vector<1x512xi1> to vector<8x512xi1>
    %287 = vector.broadcast %cst_141 : f32 to vector<8x512xf32>
    %288 = arith.select %286, %284, %287 : vector<8x512xi1>, vector<8x512xf32>
    %289 = tpu.concatenate %288, %283 in 0 : vector<8x512xf32>, vector<8x512xf32> -> vector<16x512xf32>
    %290 = arith.truncf %289 : vector<16x512xf32> to vector<16x512xbf16>
    %c0_142 = arith.constant 0 : index
    %c0_143 = arith.constant 0 : index
    %291 = vector.load %arg12[%c0_142, %c0_143] : memref<80x512xbf16, #tpu.memory_space<vmem>>, vector<16x512xbf16>
    tpu.vector_store %arg12[%c0_142, %c0_143], %290 {strides = array<i32>} : memref<80x512xbf16, #tpu.memory_space<vmem>>, vector<16x512xbf16>,
    %c511_i32_144 = arith.constant 511 : i32
    %292 = tpu.dynamic_rotate %283 by %c511_i32_144 dim 1 : vector<8x512xf32>, i32 -> vector<8x512xf32>
    %cst_145 = arith.constant 0.000000e+00 : f32
    %293 = vector.shape_cast %44 : vector<1x512xi1> to vector<1x512xi1>
    %294 = vector.broadcast %293 : vector<1x512xi1> to vector<8x512xi1>
    %295 = vector.broadcast %cst_145 : f32 to vector<8x512xf32>
    %296 = arith.select %294, %292, %295 : vector<8x512xi1>, vector<8x512xf32>
    %c1_i32_146 = arith.constant 1 : i32
    %297 = tpu.dynamic_rotate %276 by %c1_i32_146 dim 1 : vector<8x512xf32>, i32 -> vector<8x512xf32>
    %cst_147 = arith.constant 0.000000e+00 : f32
    %298 = vector.shape_cast %40 : vector<1x512xi1> to vector<1x512xi1>
    %299 = vector.broadcast %298 : vector<1x512xi1> to vector<8x512xi1>
    %300 = vector.broadcast %cst_147 : f32 to vector<8x512xf32>
    %301 = arith.select %299, %297, %300 : vector<8x512xi1>, vector<8x512xf32>
    %302 = tpu.concatenate %296, %301 in 0 : vector<8x512xf32>, vector<8x512xf32> -> vector<16x512xf32>
    %303 = arith.truncf %302 : vector<16x512xf32> to vector<16x512xbf16>
    %c16_148 = arith.constant 16 : index
    %c0_149 = arith.constant 0 : index
    %304 = vector.load %arg12[%c16_148, %c0_149] : memref<80x512xbf16, #tpu.memory_space<vmem>>, vector<16x512xbf16>
    tpu.vector_store %arg12[%c16_148, %c0_149], %303 {strides = array<i32>} : memref<80x512xbf16, #tpu.memory_space<vmem>>, vector<16x512xbf16>,
    %c511_i32_150 = arith.constant 511 : i32
    %305 = tpu.dynamic_rotate %276 by %c511_i32_150 dim 1 : vector<8x512xf32>, i32 -> vector<8x512xf32>
    %cst_151 = arith.constant 0.000000e+00 : f32
    %306 = vector.shape_cast %44 : vector<1x512xi1> to vector<1x512xi1>
    %307 = vector.broadcast %306 : vector<1x512xi1> to vector<8x512xi1>
    %308 = vector.broadcast %cst_151 : f32 to vector<8x512xf32>
    %309 = arith.select %307, %305, %308 : vector<8x512xi1>, vector<8x512xf32>
    %310 = tpu.concatenate %276, %309 in 0 : vector<8x512xf32>, vector<8x512xf32> -> vector<16x512xf32>
    %311 = arith.truncf %310 : vector<16x512xf32> to vector<16x512xbf16>
    %c32_152 = arith.constant 32 : index
    %c0_153 = arith.constant 0 : index
    %312 = vector.load %arg12[%c32_152, %c0_153] : memref<80x512xbf16, #tpu.memory_space<vmem>>, vector<16x512xbf16>
    tpu.vector_store %arg12[%c32_152, %c0_153], %311 {strides = array<i32>} : memref<80x512xbf16, #tpu.memory_space<vmem>>, vector<16x512xbf16>,
    %c496_i32_154 = arith.constant 496 : i32
    %313 = tpu.dynamic_rotate %276 by %c496_i32_154 dim 1 : vector<8x512xf32>, i32 -> vector<8x512xf32>
    %cst_155 = arith.constant 0.000000e+00 : f32
    %314 = vector.shape_cast %38 : vector<1x512xi1> to vector<1x512xi1>
    %315 = vector.broadcast %314 : vector<1x512xi1> to vector<8x512xi1>
    %316 = vector.broadcast %cst_155 : f32 to vector<8x512xf32>
    %317 = arith.select %315, %313, %316 : vector<8x512xi1>, vector<8x512xf32>
    %c1_i32_156 = arith.constant 1 : i32
    %318 = tpu.dynamic_rotate %317 by %c1_i32_156 dim 1 : vector<8x512xf32>, i32 -> vector<8x512xf32>
    %cst_157 = arith.constant 0.000000e+00 : f32
    %319 = vector.shape_cast %40 : vector<1x512xi1> to vector<1x512xi1>
    %320 = vector.broadcast %319 : vector<1x512xi1> to vector<8x512xi1>
    %321 = vector.broadcast %cst_157 : f32 to vector<8x512xf32>
    %322 = arith.select %320, %318, %321 : vector<8x512xi1>, vector<8x512xf32>
    %323 = tpu.concatenate %322, %317 in 0 : vector<8x512xf32>, vector<8x512xf32> -> vector<16x512xf32>
    %324 = arith.truncf %323 : vector<16x512xf32> to vector<16x512xbf16>
    %c48_158 = arith.constant 48 : index
    %c0_159 = arith.constant 0 : index
    %325 = vector.load %arg12[%c48_158, %c0_159] : memref<80x512xbf16, #tpu.memory_space<vmem>>, vector<16x512xbf16>
    tpu.vector_store %arg12[%c48_158, %c0_159], %324 {strides = array<i32>} : memref<80x512xbf16, #tpu.memory_space<vmem>>, vector<16x512xbf16>,
    %c511_i32_160 = arith.constant 511 : i32
    %326 = tpu.dynamic_rotate %317 by %c511_i32_160 dim 1 : vector<8x512xf32>, i32 -> vector<8x512xf32>
    %cst_161 = arith.constant 0.000000e+00 : f32
    %327 = vector.shape_cast %44 : vector<1x512xi1> to vector<1x512xi1>
    %328 = vector.broadcast %327 : vector<1x512xi1> to vector<8x512xi1>
    %329 = vector.broadcast %cst_161 : f32 to vector<8x512xf32>
    %330 = arith.select %328, %326, %329 : vector<8x512xi1>, vector<8x512xf32>
    %cst_162 = arith.constant 0.000000e+00 : f32
    %331 = vector.broadcast %cst_162 : f32 to vector<8x512xf32>
    %332 = tpu.concatenate %330, %331 in 0 : vector<8x512xf32>, vector<8x512xf32> -> vector<16x512xf32>
    %333 = arith.truncf %332 : vector<16x512xf32> to vector<16x512xbf16>
    %c64_163 = arith.constant 64 : index
    %c0_164 = arith.constant 0 : index
    %334 = vector.load %arg12[%c64_163, %c0_164] : memref<80x512xbf16, #tpu.memory_space<vmem>>, vector<16x512xbf16>
    tpu.vector_store %arg12[%c64_163, %c0_164], %333 {strides = array<i32>} : memref<80x512xbf16, #tpu.memory_space<vmem>>, vector<16x512xbf16>,
    %c0_165 = arith.constant 0 : index
    %c0_166 = arith.constant 0 : index
    %335 = vector.load %arg12[%c0_165, %c0_166] : memref<80x512xbf16, #tpu.memory_space<vmem>>, vector<80x512xbf16>
    %cst_167 = arith.constant dense<0.000000e+00> : vector<8x512xf32>
    %336 = tpu.matmul %278, %335, %cst_167 {dimension_numbers = #tpu.dot_dimension_numbers<[1], [0], [0], [1], [0, 0, 1, 1], [], []>} : vector<8x80xbf16>, vector<80x512xbf16>, vector<8x512xf32> -> vector<8x512xf32>
    %c1_168 = arith.constant 1 : index
    %c1_169 = arith.constant 1 : index
    %c0_170 = arith.constant 0 : index
    %c0_171 = arith.constant 0 : index
    %337 = vector.load %arg2[%c1_168, %c1_169, %c0_170, %c0_171] : memref<3x2x8x1xf32, #tpu.memory_space<vmem>>, vector<1x1x8x1xf32>
    %338 = vector.shape_cast %337 : vector<1x1x8x1xf32> to vector<8x1xf32>
    %c1_172 = arith.constant 1 : index
    %c1_173 = arith.constant 1 : index
    %c0_174 = arith.constant 0 : index
    %c0_175 = arith.constant 0 : index
    %339 = vector.load %arg3[%c1_172, %c1_173, %c0_174, %c0_175] : memref<3x2x8x1xf32, #tpu.memory_space<vmem>>, vector<1x1x8x1xf32>
    %340 = vector.shape_cast %339 : vector<1x1x8x1xf32> to vector<8x1xf32>
    %cst_176 = arith.constant dense<0.000000e+00> : vector<8xf32>
    %341 = vector.multi_reduction <add>, %336, %cst_176 [1] : vector<8x512xf32> to vector<8xf32>
    %342 = vector.shape_cast %341 : vector<8xf32> to vector<8x1xf32>
    %cst_177 = arith.constant 5.120000e+02 : f32
    %343 = vector.broadcast %cst_177 : f32 to vector<8x1xf32>
    %344 = arith.divf %342, %343 : vector<8x1xf32>
    %345 = vector.broadcast %344 : vector<8x1xf32> to vector<8x512xf32>
    %346 = arith.subf %336, %345 : vector<8x512xf32>
    %347 = arith.mulf %346, %346 : vector<8x512xf32>
    %cst_178 = arith.constant dense<0.000000e+00> : vector<8xf32>
    %348 = vector.multi_reduction <add>, %347, %cst_178 [1] : vector<8x512xf32> to vector<8xf32>
    %349 = vector.shape_cast %348 : vector<8xf32> to vector<8x1xf32>
    %cst_179 = arith.constant 5.120000e+02 : f32
    %350 = vector.broadcast %cst_179 : f32 to vector<8x1xf32>
    %351 = arith.divf %349, %350 : vector<8x1xf32>
    %cst_180 = arith.constant 9.99999974E-6 : f32
    %352 = vector.broadcast %cst_180 : f32 to vector<8x1xf32>
    %353 = arith.addf %351, %352 : vector<8x1xf32>
    %354 = math.rsqrt %353 : vector<8x1xf32>
    %355 = vector.broadcast %354 : vector<8x1xf32> to vector<8x512xf32>
    %356 = arith.mulf %346, %355 : vector<8x512xf32>
    %357 = vector.broadcast %338 : vector<8x1xf32> to vector<8x512xf32>
    %358 = arith.mulf %356, %357 : vector<8x512xf32>
    %359 = vector.broadcast %340 : vector<8x1xf32> to vector<8x512xf32>
    %360 = arith.addf %358, %359 : vector<8x512xf32>
    %cst_181 = arith.constant 0.000000e+00 : f32
    %361 = vector.broadcast %cst_181 : f32 to vector<8x512xf32>
    %362 = arith.maximumf %360, %361 : vector<8x512xf32>
    %c1_182 = arith.constant 1 : index
    %c1_183 = arith.constant 1 : index
    %c0_184 = arith.constant 0 : index
    %c0_185 = arith.constant 0 : index
    %363 = vector.load %arg4[%c1_182, %c1_183, %c0_184, %c0_185] : memref<3x2x8x80xbf16, #tpu.memory_space<vmem>>, vector<1x1x8x80xbf16>
    %364 = vector.shape_cast %363 : vector<1x1x8x80xbf16> to vector<8x80xbf16>
    %c16_i32_186 = arith.constant 16 : i32
    %365 = tpu.dynamic_rotate %362 by %c16_i32_186 dim 1 : vector<8x512xf32>, i32 -> vector<8x512xf32>
    %cst_187 = arith.constant 0.000000e+00 : f32
    %366 = vector.shape_cast %34 : vector<1x512xi1> to vector<1x512xi1>
    %367 = vector.broadcast %366 : vector<1x512xi1> to vector<8x512xi1>
    %368 = vector.broadcast %cst_187 : f32 to vector<8x512xf32>
    %369 = arith.select %367, %365, %368 : vector<8x512xi1>, vector<8x512xf32>
    %c1_i32_188 = arith.constant 1 : i32
    %370 = tpu.dynamic_rotate %369 by %c1_i32_188 dim 1 : vector<8x512xf32>, i32 -> vector<8x512xf32>
    %cst_189 = arith.constant 0.000000e+00 : f32
    %371 = vector.shape_cast %40 : vector<1x512xi1> to vector<1x512xi1>
    %372 = vector.broadcast %371 : vector<1x512xi1> to vector<8x512xi1>
    %373 = vector.broadcast %cst_189 : f32 to vector<8x512xf32>
    %374 = arith.select %372, %370, %373 : vector<8x512xi1>, vector<8x512xf32>
    %375 = tpu.concatenate %374, %369 in 0 : vector<8x512xf32>, vector<8x512xf32> -> vector<16x512xf32>
    %376 = arith.truncf %375 : vector<16x512xf32> to vector<16x512xbf16>
    %c0_190 = arith.constant 0 : index
    %c0_191 = arith.constant 0 : index
    %377 = vector.load %arg12[%c0_190, %c0_191] : memref<80x512xbf16, #tpu.memory_space<vmem>>, vector<16x512xbf16>
    tpu.vector_store %arg12[%c0_190, %c0_191], %376 {strides = array<i32>} : memref<80x512xbf16, #tpu.memory_space<vmem>>, vector<16x512xbf16>,
    %c511_i32_192 = arith.constant 511 : i32
    %378 = tpu.dynamic_rotate %369 by %c511_i32_192 dim 1 : vector<8x512xf32>, i32 -> vector<8x512xf32>
    %cst_193 = arith.constant 0.000000e+00 : f32
    %379 = vector.shape_cast %44 : vector<1x512xi1> to vector<1x512xi1>
    %380 = vector.broadcast %379 : vector<1x512xi1> to vector<8x512xi1>
    %381 = vector.broadcast %cst_193 : f32 to vector<8x512xf32>
    %382 = arith.select %380, %378, %381 : vector<8x512xi1>, vector<8x512xf32>
    %c1_i32_194 = arith.constant 1 : i32
    %383 = tpu.dynamic_rotate %362 by %c1_i32_194 dim 1 : vector<8x512xf32>, i32 -> vector<8x512xf32>
    %cst_195 = arith.constant 0.000000e+00 : f32
    %384 = vector.shape_cast %40 : vector<1x512xi1> to vector<1x512xi1>
    %385 = vector.broadcast %384 : vector<1x512xi1> to vector<8x512xi1>
    %386 = vector.broadcast %cst_195 : f32 to vector<8x512xf32>
    %387 = arith.select %385, %383, %386 : vector<8x512xi1>, vector<8x512xf32>
    %388 = tpu.concatenate %382, %387 in 0 : vector<8x512xf32>, vector<8x512xf32> -> vector<16x512xf32>
    %389 = arith.truncf %388 : vector<16x512xf32> to vector<16x512xbf16>
    %c16_196 = arith.constant 16 : index
    %c0_197 = arith.constant 0 : index
    %390 = vector.load %arg12[%c16_196, %c0_197] : memref<80x512xbf16, #tpu.memory_space<vmem>>, vector<16x512xbf16>
    tpu.vector_store %arg12[%c16_196, %c0_197], %389 {strides = array<i32>} : memref<80x512xbf16, #tpu.memory_space<vmem>>, vector<16x512xbf16>,
    %c511_i32_198 = arith.constant 511 : i32
    %391 = tpu.dynamic_rotate %362 by %c511_i32_198 dim 1 : vector<8x512xf32>, i32 -> vector<8x512xf32>
    %cst_199 = arith.constant 0.000000e+00 : f32
    %392 = vector.shape_cast %44 : vector<1x512xi1> to vector<1x512xi1>
    %393 = vector.broadcast %392 : vector<1x512xi1> to vector<8x512xi1>
    %394 = vector.broadcast %cst_199 : f32 to vector<8x512xf32>
    %395 = arith.select %393, %391, %394 : vector<8x512xi1>, vector<8x512xf32>
    %396 = tpu.concatenate %362, %395 in 0 : vector<8x512xf32>, vector<8x512xf32> -> vector<16x512xf32>
    %397 = arith.truncf %396 : vector<16x512xf32> to vector<16x512xbf16>
    %c32_200 = arith.constant 32 : index
    %c0_201 = arith.constant 0 : index
    %398 = vector.load %arg12[%c32_200, %c0_201] : memref<80x512xbf16, #tpu.memory_space<vmem>>, vector<16x512xbf16>
    tpu.vector_store %arg12[%c32_200, %c0_201], %397 {strides = array<i32>} : memref<80x512xbf16, #tpu.memory_space<vmem>>, vector<16x512xbf16>,
    %c496_i32_202 = arith.constant 496 : i32
    %399 = tpu.dynamic_rotate %362 by %c496_i32_202 dim 1 : vector<8x512xf32>, i32 -> vector<8x512xf32>
    %cst_203 = arith.constant 0.000000e+00 : f32
    %400 = vector.shape_cast %38 : vector<1x512xi1> to vector<1x512xi1>
    %401 = vector.broadcast %400 : vector<1x512xi1> to vector<8x512xi1>
    %402 = vector.broadcast %cst_203 : f32 to vector<8x512xf32>
    %403 = arith.select %401, %399, %402 : vector<8x512xi1>, vector<8x512xf32>
    %c1_i32_204 = arith.constant 1 : i32
    %404 = tpu.dynamic_rotate %403 by %c1_i32_204 dim 1 : vector<8x512xf32>, i32 -> vector<8x512xf32>
    %cst_205 = arith.constant 0.000000e+00 : f32
    %405 = vector.shape_cast %40 : vector<1x512xi1> to vector<1x512xi1>
    %406 = vector.broadcast %405 : vector<1x512xi1> to vector<8x512xi1>
    %407 = vector.broadcast %cst_205 : f32 to vector<8x512xf32>
    %408 = arith.select %406, %404, %407 : vector<8x512xi1>, vector<8x512xf32>
    %409 = tpu.concatenate %408, %403 in 0 : vector<8x512xf32>, vector<8x512xf32> -> vector<16x512xf32>
    %410 = arith.truncf %409 : vector<16x512xf32> to vector<16x512xbf16>
    %c48_206 = arith.constant 48 : index
    %c0_207 = arith.constant 0 : index
    %411 = vector.load %arg12[%c48_206, %c0_207] : memref<80x512xbf16, #tpu.memory_space<vmem>>, vector<16x512xbf16>
    tpu.vector_store %arg12[%c48_206, %c0_207], %410 {strides = array<i32>} : memref<80x512xbf16, #tpu.memory_space<vmem>>, vector<16x512xbf16>,
    %c511_i32_208 = arith.constant 511 : i32
    %412 = tpu.dynamic_rotate %403 by %c511_i32_208 dim 1 : vector<8x512xf32>, i32 -> vector<8x512xf32>
    %cst_209 = arith.constant 0.000000e+00 : f32
    %413 = vector.shape_cast %44 : vector<1x512xi1> to vector<1x512xi1>
    %414 = vector.broadcast %413 : vector<1x512xi1> to vector<8x512xi1>
    %415 = vector.broadcast %cst_209 : f32 to vector<8x512xf32>
    %416 = arith.select %414, %412, %415 : vector<8x512xi1>, vector<8x512xf32>
    %cst_210 = arith.constant 0.000000e+00 : f32
    %417 = vector.broadcast %cst_210 : f32 to vector<8x512xf32>
    %418 = tpu.concatenate %416, %417 in 0 : vector<8x512xf32>, vector<8x512xf32> -> vector<16x512xf32>
    %419 = arith.truncf %418 : vector<16x512xf32> to vector<16x512xbf16>
    %c64_211 = arith.constant 64 : index
    %c0_212 = arith.constant 0 : index
    %420 = vector.load %arg12[%c64_211, %c0_212] : memref<80x512xbf16, #tpu.memory_space<vmem>>, vector<16x512xbf16>
    tpu.vector_store %arg12[%c64_211, %c0_212], %419 {strides = array<i32>} : memref<80x512xbf16, #tpu.memory_space<vmem>>, vector<16x512xbf16>,
    %c0_213 = arith.constant 0 : index
    %c0_214 = arith.constant 0 : index
    %421 = vector.load %arg12[%c0_213, %c0_214] : memref<80x512xbf16, #tpu.memory_space<vmem>>, vector<80x512xbf16>
    %cst_215 = arith.constant dense<0.000000e+00> : vector<8x512xf32>
    %422 = tpu.matmul %364, %421, %cst_215 {dimension_numbers = #tpu.dot_dimension_numbers<[1], [0], [0], [1], [0, 0, 1, 1], [], []>} : vector<8x80xbf16>, vector<80x512xbf16>, vector<8x512xf32> -> vector<8x512xf32>
    %423 = arith.addf %422, %220 : vector<8x512xf32>
    %c1_216 = arith.constant 1 : index
    %c0_217 = arith.constant 0 : index
    %c0_218 = arith.constant 0 : index
    %424 = vector.load %arg5[%c1_216, %c0_217, %c0_218] : memref<3x8x1xf32, #tpu.memory_space<vmem>>, vector<1x8x1xf32>
    %425 = vector.shape_cast %424 : vector<1x8x1xf32> to vector<8x1xf32>
    %c1_219 = arith.constant 1 : index
    %c0_220 = arith.constant 0 : index
    %c0_221 = arith.constant 0 : index
    %426 = vector.load %arg6[%c1_219, %c0_220, %c0_221] : memref<3x8x1xf32, #tpu.memory_space<vmem>>, vector<1x8x1xf32>
    %427 = vector.shape_cast %426 : vector<1x8x1xf32> to vector<8x1xf32>
    %cst_222 = arith.constant dense<0.000000e+00> : vector<8xf32>
    %428 = vector.multi_reduction <add>, %423, %cst_222 [1] : vector<8x512xf32> to vector<8xf32>
    %429 = vector.shape_cast %428 : vector<8xf32> to vector<8x1xf32>
    %cst_223 = arith.constant 5.120000e+02 : f32
    %430 = vector.broadcast %cst_223 : f32 to vector<8x1xf32>
    %431 = arith.divf %429, %430 : vector<8x1xf32>
    %432 = vector.broadcast %431 : vector<8x1xf32> to vector<8x512xf32>
    %433 = arith.subf %423, %432 : vector<8x512xf32>
    %434 = arith.mulf %433, %433 : vector<8x512xf32>
    %cst_224 = arith.constant dense<0.000000e+00> : vector<8xf32>
    %435 = vector.multi_reduction <add>, %434, %cst_224 [1] : vector<8x512xf32> to vector<8xf32>
    %436 = vector.shape_cast %435 : vector<8xf32> to vector<8x1xf32>
    %cst_225 = arith.constant 5.120000e+02 : f32
    %437 = vector.broadcast %cst_225 : f32 to vector<8x1xf32>
    %438 = arith.divf %436, %437 : vector<8x1xf32>
    %cst_226 = arith.constant 9.99999974E-6 : f32
    %439 = vector.broadcast %cst_226 : f32 to vector<8x1xf32>
    %440 = arith.addf %438, %439 : vector<8x1xf32>
    %441 = math.rsqrt %440 : vector<8x1xf32>
    %442 = vector.broadcast %441 : vector<8x1xf32> to vector<8x512xf32>
    %443 = arith.mulf %433, %442 : vector<8x512xf32>
    %444 = vector.broadcast %425 : vector<8x1xf32> to vector<8x512xf32>
    %445 = arith.mulf %443, %444 : vector<8x512xf32>
    %446 = vector.broadcast %427 : vector<8x1xf32> to vector<8x512xf32>
    %447 = arith.addf %445, %446 : vector<8x512xf32>
    %cst_227 = arith.constant 0.000000e+00 : f32
    %448 = vector.broadcast %cst_227 : f32 to vector<8x512xf32>
    %449 = arith.maximumf %447, %448 : vector<8x512xf32>
    %c1_228 = arith.constant 1 : index
    %c0_229 = arith.constant 0 : index
    %c0_230 = arith.constant 0 : index
    %450 = vector.load %arg7[%c1_228, %c0_229, %c0_230] : memref<3x8x8xf32, #tpu.memory_space<vmem>>, vector<1x8x8xf32>
    %451 = vector.shape_cast %450 : vector<1x8x8xf32> to vector<8x8xf32>
    %cst_231 = arith.constant dense<0.000000e+00> : vector<8x512xf32>
    %452 = tpu.matmul %451, %449, %cst_231 {dimension_numbers = #tpu.dot_dimension_numbers<[1], [0], [0], [1], [0, 0, 1, 1], [], []>} : vector<8x8xf32>, vector<8x512xf32>, vector<8x512xf32> -> vector<8x512xf32>
    %453 = arith.addf %250, %452 : vector<8x512xf32>
    %c2 = arith.constant 2 : index
    %c0_232 = arith.constant 0 : index
    %c0_233 = arith.constant 0 : index
    %c0_234 = arith.constant 0 : index
    %454 = vector.load %arg2[%c2, %c0_232, %c0_233, %c0_234] : memref<3x2x8x1xf32, #tpu.memory_space<vmem>>, vector<1x1x8x1xf32>
    %455 = vector.shape_cast %454 : vector<1x1x8x1xf32> to vector<8x1xf32>
    %c2_235 = arith.constant 2 : index
    %c0_236 = arith.constant 0 : index
    %c0_237 = arith.constant 0 : index
    %c0_238 = arith.constant 0 : index
    %456 = vector.load %arg3[%c2_235, %c0_236, %c0_237, %c0_238] : memref<3x2x8x1xf32, #tpu.memory_space<vmem>>, vector<1x1x8x1xf32>
    %457 = vector.shape_cast %456 : vector<1x1x8x1xf32> to vector<8x1xf32>
    %cst_239 = arith.constant dense<0.000000e+00> : vector<8xf32>
    %458 = vector.multi_reduction <add>, %423, %cst_239 [1] : vector<8x512xf32> to vector<8xf32>
    %459 = vector.shape_cast %458 : vector<8xf32> to vector<8x1xf32>
    %cst_240 = arith.constant 5.120000e+02 : f32
    %460 = vector.broadcast %cst_240 : f32 to vector<8x1xf32>
    %461 = arith.divf %459, %460 : vector<8x1xf32>
    %462 = vector.broadcast %461 : vector<8x1xf32> to vector<8x512xf32>
    %463 = arith.subf %423, %462 : vector<8x512xf32>
    %464 = arith.mulf %463, %463 : vector<8x512xf32>
    %cst_241 = arith.constant dense<0.000000e+00> : vector<8xf32>
    %465 = vector.multi_reduction <add>, %464, %cst_241 [1] : vector<8x512xf32> to vector<8xf32>
    %466 = vector.shape_cast %465 : vector<8xf32> to vector<8x1xf32>
    %cst_242 = arith.constant 5.120000e+02 : f32
    %467 = vector.broadcast %cst_242 : f32 to vector<8x1xf32>
    %468 = arith.divf %466, %467 : vector<8x1xf32>
    %cst_243 = arith.constant 9.99999974E-6 : f32
    %469 = vector.broadcast %cst_243 : f32 to vector<8x1xf32>
    %470 = arith.addf %468, %469 : vector<8x1xf32>
    %471 = math.rsqrt %470 : vector<8x1xf32>
    %472 = vector.broadcast %471 : vector<8x1xf32> to vector<8x512xf32>
    %473 = arith.mulf %463, %472 : vector<8x512xf32>
    %474 = vector.broadcast %455 : vector<8x1xf32> to vector<8x512xf32>
    %475 = arith.mulf %473, %474 : vector<8x512xf32>
    %476 = vector.broadcast %457 : vector<8x1xf32> to vector<8x512xf32>
    %477 = arith.addf %475, %476 : vector<8x512xf32>
    %cst_244 = arith.constant 0.000000e+00 : f32
    %478 = vector.broadcast %cst_244 : f32 to vector<8x512xf32>
    %479 = arith.maximumf %477, %478 : vector<8x512xf32>
    %c2_245 = arith.constant 2 : index
    %c0_246 = arith.constant 0 : index
    %c0_247 = arith.constant 0 : index
    %c0_248 = arith.constant 0 : index
    %480 = vector.load %arg4[%c2_245, %c0_246, %c0_247, %c0_248] : memref<3x2x8x80xbf16, #tpu.memory_space<vmem>>, vector<1x1x8x80xbf16>
    %481 = vector.shape_cast %480 : vector<1x1x8x80xbf16> to vector<8x80xbf16>
    %c16_i32_249 = arith.constant 16 : i32
    %482 = tpu.dynamic_rotate %479 by %c16_i32_249 dim 1 : vector<8x512xf32>, i32 -> vector<8x512xf32>
    %cst_250 = arith.constant 0.000000e+00 : f32
    %483 = vector.shape_cast %34 : vector<1x512xi1> to vector<1x512xi1>
    %484 = vector.broadcast %483 : vector<1x512xi1> to vector<8x512xi1>
    %485 = vector.broadcast %cst_250 : f32 to vector<8x512xf32>
    %486 = arith.select %484, %482, %485 : vector<8x512xi1>, vector<8x512xf32>
    %c1_i32_251 = arith.constant 1 : i32
    %487 = tpu.dynamic_rotate %486 by %c1_i32_251 dim 1 : vector<8x512xf32>, i32 -> vector<8x512xf32>
    %cst_252 = arith.constant 0.000000e+00 : f32
    %488 = vector.shape_cast %40 : vector<1x512xi1> to vector<1x512xi1>
    %489 = vector.broadcast %488 : vector<1x512xi1> to vector<8x512xi1>
    %490 = vector.broadcast %cst_252 : f32 to vector<8x512xf32>
    %491 = arith.select %489, %487, %490 : vector<8x512xi1>, vector<8x512xf32>
    %492 = tpu.concatenate %491, %486 in 0 : vector<8x512xf32>, vector<8x512xf32> -> vector<16x512xf32>
    %493 = arith.truncf %492 : vector<16x512xf32> to vector<16x512xbf16>
    %c0_253 = arith.constant 0 : index
    %c0_254 = arith.constant 0 : index
    %494 = vector.load %arg12[%c0_253, %c0_254] : memref<80x512xbf16, #tpu.memory_space<vmem>>, vector<16x512xbf16>
    tpu.vector_store %arg12[%c0_253, %c0_254], %493 {strides = array<i32>} : memref<80x512xbf16, #tpu.memory_space<vmem>>, vector<16x512xbf16>,
    %c511_i32_255 = arith.constant 511 : i32
    %495 = tpu.dynamic_rotate %486 by %c511_i32_255 dim 1 : vector<8x512xf32>, i32 -> vector<8x512xf32>
    %cst_256 = arith.constant 0.000000e+00 : f32
    %496 = vector.shape_cast %44 : vector<1x512xi1> to vector<1x512xi1>
    %497 = vector.broadcast %496 : vector<1x512xi1> to vector<8x512xi1>
    %498 = vector.broadcast %cst_256 : f32 to vector<8x512xf32>
    %499 = arith.select %497, %495, %498 : vector<8x512xi1>, vector<8x512xf32>
    %c1_i32_257 = arith.constant 1 : i32
    %500 = tpu.dynamic_rotate %479 by %c1_i32_257 dim 1 : vector<8x512xf32>, i32 -> vector<8x512xf32>
    %cst_258 = arith.constant 0.000000e+00 : f32
    %501 = vector.shape_cast %40 : vector<1x512xi1> to vector<1x512xi1>
    %502 = vector.broadcast %501 : vector<1x512xi1> to vector<8x512xi1>
    %503 = vector.broadcast %cst_258 : f32 to vector<8x512xf32>
    %504 = arith.select %502, %500, %503 : vector<8x512xi1>, vector<8x512xf32>
    %505 = tpu.concatenate %499, %504 in 0 : vector<8x512xf32>, vector<8x512xf32> -> vector<16x512xf32>
    %506 = arith.truncf %505 : vector<16x512xf32> to vector<16x512xbf16>
    %c16_259 = arith.constant 16 : index
    %c0_260 = arith.constant 0 : index
    %507 = vector.load %arg12[%c16_259, %c0_260] : memref<80x512xbf16, #tpu.memory_space<vmem>>, vector<16x512xbf16>
    tpu.vector_store %arg12[%c16_259, %c0_260], %506 {strides = array<i32>} : memref<80x512xbf16, #tpu.memory_space<vmem>>, vector<16x512xbf16>,
    %c511_i32_261 = arith.constant 511 : i32
    %508 = tpu.dynamic_rotate %479 by %c511_i32_261 dim 1 : vector<8x512xf32>, i32 -> vector<8x512xf32>
    %cst_262 = arith.constant 0.000000e+00 : f32
    %509 = vector.shape_cast %44 : vector<1x512xi1> to vector<1x512xi1>
    %510 = vector.broadcast %509 : vector<1x512xi1> to vector<8x512xi1>
    %511 = vector.broadcast %cst_262 : f32 to vector<8x512xf32>
    %512 = arith.select %510, %508, %511 : vector<8x512xi1>, vector<8x512xf32>
    %513 = tpu.concatenate %479, %512 in 0 : vector<8x512xf32>, vector<8x512xf32> -> vector<16x512xf32>
    %514 = arith.truncf %513 : vector<16x512xf32> to vector<16x512xbf16>
    %c32_263 = arith.constant 32 : index
    %c0_264 = arith.constant 0 : index
    %515 = vector.load %arg12[%c32_263, %c0_264] : memref<80x512xbf16, #tpu.memory_space<vmem>>, vector<16x512xbf16>
    tpu.vector_store %arg12[%c32_263, %c0_264], %514 {strides = array<i32>} : memref<80x512xbf16, #tpu.memory_space<vmem>>, vector<16x512xbf16>,
    %c496_i32_265 = arith.constant 496 : i32
    %516 = tpu.dynamic_rotate %479 by %c496_i32_265 dim 1 : vector<8x512xf32>, i32 -> vector<8x512xf32>
    %cst_266 = arith.constant 0.000000e+00 : f32
    %517 = vector.shape_cast %38 : vector<1x512xi1> to vector<1x512xi1>
    %518 = vector.broadcast %517 : vector<1x512xi1> to vector<8x512xi1>
    %519 = vector.broadcast %cst_266 : f32 to vector<8x512xf32>
    %520 = arith.select %518, %516, %519 : vector<8x512xi1>, vector<8x512xf32>
    %c1_i32_267 = arith.constant 1 : i32
    %521 = tpu.dynamic_rotate %520 by %c1_i32_267 dim 1 : vector<8x512xf32>, i32 -> vector<8x512xf32>
    %cst_268 = arith.constant 0.000000e+00 : f32
    %522 = vector.shape_cast %40 : vector<1x512xi1> to vector<1x512xi1>
    %523 = vector.broadcast %522 : vector<1x512xi1> to vector<8x512xi1>
    %524 = vector.broadcast %cst_268 : f32 to vector<8x512xf32>
    %525 = arith.select %523, %521, %524 : vector<8x512xi1>, vector<8x512xf32>
    %526 = tpu.concatenate %525, %520 in 0 : vector<8x512xf32>, vector<8x512xf32> -> vector<16x512xf32>
    %527 = arith.truncf %526 : vector<16x512xf32> to vector<16x512xbf16>
    %c48_269 = arith.constant 48 : index
    %c0_270 = arith.constant 0 : index
    %528 = vector.load %arg12[%c48_269, %c0_270] : memref<80x512xbf16, #tpu.memory_space<vmem>>, vector<16x512xbf16>
    tpu.vector_store %arg12[%c48_269, %c0_270], %527 {strides = array<i32>} : memref<80x512xbf16, #tpu.memory_space<vmem>>, vector<16x512xbf16>,
    %c511_i32_271 = arith.constant 511 : i32
    %529 = tpu.dynamic_rotate %520 by %c511_i32_271 dim 1 : vector<8x512xf32>, i32 -> vector<8x512xf32>
    %cst_272 = arith.constant 0.000000e+00 : f32
    %530 = vector.shape_cast %44 : vector<1x512xi1> to vector<1x512xi1>
    %531 = vector.broadcast %530 : vector<1x512xi1> to vector<8x512xi1>
    %532 = vector.broadcast %cst_272 : f32 to vector<8x512xf32>
    %533 = arith.select %531, %529, %532 : vector<8x512xi1>, vector<8x512xf32>
    %cst_273 = arith.constant 0.000000e+00 : f32
    %534 = vector.broadcast %cst_273 : f32 to vector<8x512xf32>
    %535 = tpu.concatenate %533, %534 in 0 : vector<8x512xf32>, vector<8x512xf32> -> vector<16x512xf32>
    %536 = arith.truncf %535 : vector<16x512xf32> to vector<16x512xbf16>
    %c64_274 = arith.constant 64 : index
    %c0_275 = arith.constant 0 : index
    %537 = vector.load %arg12[%c64_274, %c0_275] : memref<80x512xbf16, #tpu.memory_space<vmem>>, vector<16x512xbf16>
    tpu.vector_store %arg12[%c64_274, %c0_275], %536 {strides = array<i32>} : memref<80x512xbf16, #tpu.memory_space<vmem>>, vector<16x512xbf16>,
    %c0_276 = arith.constant 0 : index
    %c0_277 = arith.constant 0 : index
    %538 = vector.load %arg12[%c0_276, %c0_277] : memref<80x512xbf16, #tpu.memory_space<vmem>>, vector<80x512xbf16>
    %cst_278 = arith.constant dense<0.000000e+00> : vector<8x512xf32>
    %539 = tpu.matmul %481, %538, %cst_278 {dimension_numbers = #tpu.dot_dimension_numbers<[1], [0], [0], [1], [0, 0, 1, 1], [], []>} : vector<8x80xbf16>, vector<80x512xbf16>, vector<8x512xf32> -> vector<8x512xf32>
    %c2_279 = arith.constant 2 : index
    %c1_280 = arith.constant 1 : index
    %c0_281 = arith.constant 0 : index
    %c0_282 = arith.constant 0 : index
    %540 = vector.load %arg2[%c2_279, %c1_280, %c0_281, %c0_282] : memref<3x2x8x1xf32, #tpu.memory_space<vmem>>, vector<1x1x8x1xf32>
    %541 = vector.shape_cast %540 : vector<1x1x8x1xf32> to vector<8x1xf32>
    %c2_283 = arith.constant 2 : index
    %c1_284 = arith.constant 1 : index
    %c0_285 = arith.constant 0 : index
    %c0_286 = arith.constant 0 : index
    %542 = vector.load %arg3[%c2_283, %c1_284, %c0_285, %c0_286] : memref<3x2x8x1xf32, #tpu.memory_space<vmem>>, vector<1x1x8x1xf32>
    %543 = vector.shape_cast %542 : vector<1x1x8x1xf32> to vector<8x1xf32>
    %cst_287 = arith.constant dense<0.000000e+00> : vector<8xf32>
    %544 = vector.multi_reduction <add>, %539, %cst_287 [1] : vector<8x512xf32> to vector<8xf32>
    %545 = vector.shape_cast %544 : vector<8xf32> to vector<8x1xf32>
    %cst_288 = arith.constant 5.120000e+02 : f32
    %546 = vector.broadcast %cst_288 : f32 to vector<8x1xf32>
    %547 = arith.divf %545, %546 : vector<8x1xf32>
    %548 = vector.broadcast %547 : vector<8x1xf32> to vector<8x512xf32>
    %549 = arith.subf %539, %548 : vector<8x512xf32>
    %550 = arith.mulf %549, %549 : vector<8x512xf32>
    %cst_289 = arith.constant dense<0.000000e+00> : vector<8xf32>
    %551 = vector.multi_reduction <add>, %550, %cst_289 [1] : vector<8x512xf32> to vector<8xf32>
    %552 = vector.shape_cast %551 : vector<8xf32> to vector<8x1xf32>
    %cst_290 = arith.constant 5.120000e+02 : f32
    %553 = vector.broadcast %cst_290 : f32 to vector<8x1xf32>
    %554 = arith.divf %552, %553 : vector<8x1xf32>
    %cst_291 = arith.constant 9.99999974E-6 : f32
    %555 = vector.broadcast %cst_291 : f32 to vector<8x1xf32>
    %556 = arith.addf %554, %555 : vector<8x1xf32>
    %557 = math.rsqrt %556 : vector<8x1xf32>
    %558 = vector.broadcast %557 : vector<8x1xf32> to vector<8x512xf32>
    %559 = arith.mulf %549, %558 : vector<8x512xf32>
    %560 = vector.broadcast %541 : vector<8x1xf32> to vector<8x512xf32>
    %561 = arith.mulf %559, %560 : vector<8x512xf32>
    %562 = vector.broadcast %543 : vector<8x1xf32> to vector<8x512xf32>
    %563 = arith.addf %561, %562 : vector<8x512xf32>
    %cst_292 = arith.constant 0.000000e+00 : f32
    %564 = vector.broadcast %cst_292 : f32 to vector<8x512xf32>
    %565 = arith.maximumf %563, %564 : vector<8x512xf32>
    %c2_293 = arith.constant 2 : index
    %c1_294 = arith.constant 1 : index
    %c0_295 = arith.constant 0 : index
    %c0_296 = arith.constant 0 : index
    %566 = vector.load %arg4[%c2_293, %c1_294, %c0_295, %c0_296] : memref<3x2x8x80xbf16, #tpu.memory_space<vmem>>, vector<1x1x8x80xbf16>
    %567 = vector.shape_cast %566 : vector<1x1x8x80xbf16> to vector<8x80xbf16>
    %c16_i32_297 = arith.constant 16 : i32
    %568 = tpu.dynamic_rotate %565 by %c16_i32_297 dim 1 : vector<8x512xf32>, i32 -> vector<8x512xf32>
    %cst_298 = arith.constant 0.000000e+00 : f32
    %569 = vector.shape_cast %34 : vector<1x512xi1> to vector<1x512xi1>
    %570 = vector.broadcast %569 : vector<1x512xi1> to vector<8x512xi1>
    %571 = vector.broadcast %cst_298 : f32 to vector<8x512xf32>
    %572 = arith.select %570, %568, %571 : vector<8x512xi1>, vector<8x512xf32>
    %c1_i32_299 = arith.constant 1 : i32
    %573 = tpu.dynamic_rotate %572 by %c1_i32_299 dim 1 : vector<8x512xf32>, i32 -> vector<8x512xf32>
    %cst_300 = arith.constant 0.000000e+00 : f32
    %574 = vector.shape_cast %40 : vector<1x512xi1> to vector<1x512xi1>
    %575 = vector.broadcast %574 : vector<1x512xi1> to vector<8x512xi1>
    %576 = vector.broadcast %cst_300 : f32 to vector<8x512xf32>
    %577 = arith.select %575, %573, %576 : vector<8x512xi1>, vector<8x512xf32>
    %578 = tpu.concatenate %577, %572 in 0 : vector<8x512xf32>, vector<8x512xf32> -> vector<16x512xf32>
    %579 = arith.truncf %578 : vector<16x512xf32> to vector<16x512xbf16>
    %c0_301 = arith.constant 0 : index
    %c0_302 = arith.constant 0 : index
    %580 = vector.load %arg12[%c0_301, %c0_302] : memref<80x512xbf16, #tpu.memory_space<vmem>>, vector<16x512xbf16>
    tpu.vector_store %arg12[%c0_301, %c0_302], %579 {strides = array<i32>} : memref<80x512xbf16, #tpu.memory_space<vmem>>, vector<16x512xbf16>,
    %c511_i32_303 = arith.constant 511 : i32
    %581 = tpu.dynamic_rotate %572 by %c511_i32_303 dim 1 : vector<8x512xf32>, i32 -> vector<8x512xf32>
    %cst_304 = arith.constant 0.000000e+00 : f32
    %582 = vector.shape_cast %44 : vector<1x512xi1> to vector<1x512xi1>
    %583 = vector.broadcast %582 : vector<1x512xi1> to vector<8x512xi1>
    %584 = vector.broadcast %cst_304 : f32 to vector<8x512xf32>
    %585 = arith.select %583, %581, %584 : vector<8x512xi1>, vector<8x512xf32>
    %c1_i32_305 = arith.constant 1 : i32
    %586 = tpu.dynamic_rotate %565 by %c1_i32_305 dim 1 : vector<8x512xf32>, i32 -> vector<8x512xf32>
    %cst_306 = arith.constant 0.000000e+00 : f32
    %587 = vector.shape_cast %40 : vector<1x512xi1> to vector<1x512xi1>
    %588 = vector.broadcast %587 : vector<1x512xi1> to vector<8x512xi1>
    %589 = vector.broadcast %cst_306 : f32 to vector<8x512xf32>
    %590 = arith.select %588, %586, %589 : vector<8x512xi1>, vector<8x512xf32>
    %591 = tpu.concatenate %585, %590 in 0 : vector<8x512xf32>, vector<8x512xf32> -> vector<16x512xf32>
    %592 = arith.truncf %591 : vector<16x512xf32> to vector<16x512xbf16>
    %c16_307 = arith.constant 16 : index
    %c0_308 = arith.constant 0 : index
    %593 = vector.load %arg12[%c16_307, %c0_308] : memref<80x512xbf16, #tpu.memory_space<vmem>>, vector<16x512xbf16>
    tpu.vector_store %arg12[%c16_307, %c0_308], %592 {strides = array<i32>} : memref<80x512xbf16, #tpu.memory_space<vmem>>, vector<16x512xbf16>,
    %c511_i32_309 = arith.constant 511 : i32
    %594 = tpu.dynamic_rotate %565 by %c511_i32_309 dim 1 : vector<8x512xf32>, i32 -> vector<8x512xf32>
    %cst_310 = arith.constant 0.000000e+00 : f32
    %595 = vector.shape_cast %44 : vector<1x512xi1> to vector<1x512xi1>
    %596 = vector.broadcast %595 : vector<1x512xi1> to vector<8x512xi1>
    %597 = vector.broadcast %cst_310 : f32 to vector<8x512xf32>
    %598 = arith.select %596, %594, %597 : vector<8x512xi1>, vector<8x512xf32>
    %599 = tpu.concatenate %565, %598 in 0 : vector<8x512xf32>, vector<8x512xf32> -> vector<16x512xf32>
    %600 = arith.truncf %599 : vector<16x512xf32> to vector<16x512xbf16>
    %c32_311 = arith.constant 32 : index
    %c0_312 = arith.constant 0 : index
    %601 = vector.load %arg12[%c32_311, %c0_312] : memref<80x512xbf16, #tpu.memory_space<vmem>>, vector<16x512xbf16>
    tpu.vector_store %arg12[%c32_311, %c0_312], %600 {strides = array<i32>} : memref<80x512xbf16, #tpu.memory_space<vmem>>, vector<16x512xbf16>,
    %c496_i32_313 = arith.constant 496 : i32
    %602 = tpu.dynamic_rotate %565 by %c496_i32_313 dim 1 : vector<8x512xf32>, i32 -> vector<8x512xf32>
    %cst_314 = arith.constant 0.000000e+00 : f32
    %603 = vector.shape_cast %38 : vector<1x512xi1> to vector<1x512xi1>
    %604 = vector.broadcast %603 : vector<1x512xi1> to vector<8x512xi1>
    %605 = vector.broadcast %cst_314 : f32 to vector<8x512xf32>
    %606 = arith.select %604, %602, %605 : vector<8x512xi1>, vector<8x512xf32>
    %c1_i32_315 = arith.constant 1 : i32
    %607 = tpu.dynamic_rotate %606 by %c1_i32_315 dim 1 : vector<8x512xf32>, i32 -> vector<8x512xf32>
    %cst_316 = arith.constant 0.000000e+00 : f32
    %608 = vector.shape_cast %40 : vector<1x512xi1> to vector<1x512xi1>
    %609 = vector.broadcast %608 : vector<1x512xi1> to vector<8x512xi1>
    %610 = vector.broadcast %cst_316 : f32 to vector<8x512xf32>
    %611 = arith.select %609, %607, %610 : vector<8x512xi1>, vector<8x512xf32>
    %612 = tpu.concatenate %611, %606 in 0 : vector<8x512xf32>, vector<8x512xf32> -> vector<16x512xf32>
    %613 = arith.truncf %612 : vector<16x512xf32> to vector<16x512xbf16>
    %c48_317 = arith.constant 48 : index
    %c0_318 = arith.constant 0 : index
    %614 = vector.load %arg12[%c48_317, %c0_318] : memref<80x512xbf16, #tpu.memory_space<vmem>>, vector<16x512xbf16>
    tpu.vector_store %arg12[%c48_317, %c0_318], %613 {strides = array<i32>} : memref<80x512xbf16, #tpu.memory_space<vmem>>, vector<16x512xbf16>,
    %c511_i32_319 = arith.constant 511 : i32
    %615 = tpu.dynamic_rotate %606 by %c511_i32_319 dim 1 : vector<8x512xf32>, i32 -> vector<8x512xf32>
    %cst_320 = arith.constant 0.000000e+00 : f32
    %616 = vector.shape_cast %44 : vector<1x512xi1> to vector<1x512xi1>
    %617 = vector.broadcast %616 : vector<1x512xi1> to vector<8x512xi1>
    %618 = vector.broadcast %cst_320 : f32 to vector<8x512xf32>
    %619 = arith.select %617, %615, %618 : vector<8x512xi1>, vector<8x512xf32>
    %cst_321 = arith.constant 0.000000e+00 : f32
    %620 = vector.broadcast %cst_321 : f32 to vector<8x512xf32>
    %621 = tpu.concatenate %619, %620 in 0 : vector<8x512xf32>, vector<8x512xf32> -> vector<16x512xf32>
    %622 = arith.truncf %621 : vector<16x512xf32> to vector<16x512xbf16>
    %c64_322 = arith.constant 64 : index
    %c0_323 = arith.constant 0 : index
    %623 = vector.load %arg12[%c64_322, %c0_323] : memref<80x512xbf16, #tpu.memory_space<vmem>>, vector<16x512xbf16>
    tpu.vector_store %arg12[%c64_322, %c0_323], %622 {strides = array<i32>} : memref<80x512xbf16, #tpu.memory_space<vmem>>, vector<16x512xbf16>,
    %c0_324 = arith.constant 0 : index
    %c0_325 = arith.constant 0 : index
    %624 = vector.load %arg12[%c0_324, %c0_325] : memref<80x512xbf16, #tpu.memory_space<vmem>>, vector<80x512xbf16>
    %cst_326 = arith.constant dense<0.000000e+00> : vector<8x512xf32>
    %625 = tpu.matmul %567, %624, %cst_326 {dimension_numbers = #tpu.dot_dimension_numbers<[1], [0], [0], [1], [0, 0, 1, 1], [], []>} : vector<8x80xbf16>, vector<80x512xbf16>, vector<8x512xf32> -> vector<8x512xf32>
    %626 = arith.addf %625, %423 : vector<8x512xf32>
    %c2_327 = arith.constant 2 : index
    %c0_328 = arith.constant 0 : index
    %c0_329 = arith.constant 0 : index
    %627 = vector.load %arg5[%c2_327, %c0_328, %c0_329] : memref<3x8x1xf32, #tpu.memory_space<vmem>>, vector<1x8x1xf32>
    %628 = vector.shape_cast %627 : vector<1x8x1xf32> to vector<8x1xf32>
    %c2_330 = arith.constant 2 : index
    %c0_331 = arith.constant 0 : index
    %c0_332 = arith.constant 0 : index
    %629 = vector.load %arg6[%c2_330, %c0_331, %c0_332] : memref<3x8x1xf32, #tpu.memory_space<vmem>>, vector<1x8x1xf32>
    %630 = vector.shape_cast %629 : vector<1x8x1xf32> to vector<8x1xf32>
    %cst_333 = arith.constant dense<0.000000e+00> : vector<8xf32>
    %631 = vector.multi_reduction <add>, %626, %cst_333 [1] : vector<8x512xf32> to vector<8xf32>
    %632 = vector.shape_cast %631 : vector<8xf32> to vector<8x1xf32>
    %cst_334 = arith.constant 5.120000e+02 : f32
    %633 = vector.broadcast %cst_334 : f32 to vector<8x1xf32>
    %634 = arith.divf %632, %633 : vector<8x1xf32>
    %635 = vector.broadcast %634 : vector<8x1xf32> to vector<8x512xf32>
    %636 = arith.subf %626, %635 : vector<8x512xf32>
    %637 = arith.mulf %636, %636 : vector<8x512xf32>
    %cst_335 = arith.constant dense<0.000000e+00> : vector<8xf32>
    %638 = vector.multi_reduction <add>, %637, %cst_335 [1] : vector<8x512xf32> to vector<8xf32>
    %639 = vector.shape_cast %638 : vector<8xf32> to vector<8x1xf32>
    %cst_336 = arith.constant 5.120000e+02 : f32
    %640 = vector.broadcast %cst_336 : f32 to vector<8x1xf32>
    %641 = arith.divf %639, %640 : vector<8x1xf32>
    %cst_337 = arith.constant 9.99999974E-6 : f32
    %642 = vector.broadcast %cst_337 : f32 to vector<8x1xf32>
    %643 = arith.addf %641, %642 : vector<8x1xf32>
    %644 = math.rsqrt %643 : vector<8x1xf32>
    %645 = vector.broadcast %644 : vector<8x1xf32> to vector<8x512xf32>
    %646 = arith.mulf %636, %645 : vector<8x512xf32>
    %647 = vector.broadcast %628 : vector<8x1xf32> to vector<8x512xf32>
    %648 = arith.mulf %646, %647 : vector<8x512xf32>
    %649 = vector.broadcast %630 : vector<8x1xf32> to vector<8x512xf32>
    %650 = arith.addf %648, %649 : vector<8x512xf32>
    %cst_338 = arith.constant 0.000000e+00 : f32
    %651 = vector.broadcast %cst_338 : f32 to vector<8x512xf32>
    %652 = arith.maximumf %650, %651 : vector<8x512xf32>
    %c2_339 = arith.constant 2 : index
    %c0_340 = arith.constant 0 : index
    %c0_341 = arith.constant 0 : index
    %653 = vector.load %arg7[%c2_339, %c0_340, %c0_341] : memref<3x8x8xf32, #tpu.memory_space<vmem>>, vector<1x8x8xf32>
    %654 = vector.shape_cast %653 : vector<1x8x8xf32> to vector<8x8xf32>
    %cst_342 = arith.constant dense<0.000000e+00> : vector<8x512xf32>
    %655 = tpu.matmul %654, %652, %cst_342 {dimension_numbers = #tpu.dot_dimension_numbers<[1], [0], [0], [1], [0, 0, 1, 1], [], []>} : vector<8x8xf32>, vector<8x512xf32>, vector<8x512xf32> -> vector<8x512xf32>
    %656 = arith.addf %453, %655 : vector<8x512xf32>
    %c0_343 = arith.constant 0 : index
    %c0_344 = arith.constant 0 : index
    %c0_345 = arith.constant 0 : index
    %657 = vector.load %arg1[%c0_343, %c0_344, %c0_345] : memref<2x8x512xbf16, #tpu.memory_space<vmem>>, vector<1x8x512xbf16>
    %658 = vector.shape_cast %657 : vector<1x8x512xbf16> to vector<8x512xbf16>
    %659 = arith.extf %658 : vector<8x512xbf16> to vector<8x512xf32>
    %c0_346 = arith.constant 0 : index
    %c0_347 = arith.constant 0 : index
    %c0_348 = arith.constant 0 : index
    %660 = vector.load %arg8[%c0_346, %c0_347, %c0_348] : memref<2x8x1xf32, #tpu.memory_space<vmem>>, vector<1x8x1xf32>
    %661 = vector.shape_cast %660 : vector<1x8x1xf32> to vector<8x1xf32>
    %c0_349 = arith.constant 0 : index
    %c0_350 = arith.constant 0 : index
    %c0_351 = arith.constant 0 : index
    %662 = vector.load %arg9[%c0_349, %c0_350, %c0_351] : memref<2x8x1xf32, #tpu.memory_space<vmem>>, vector<1x8x1xf32>
    %663 = vector.shape_cast %662 : vector<1x8x1xf32> to vector<8x1xf32>
    %cst_352 = arith.constant dense<0.000000e+00> : vector<8xf32>
    %664 = vector.multi_reduction <add>, %659, %cst_352 [1] : vector<8x512xf32> to vector<8xf32>
    %665 = vector.shape_cast %664 : vector<8xf32> to vector<8x1xf32>
    %cst_353 = arith.constant 5.120000e+02 : f32
    %666 = vector.broadcast %cst_353 : f32 to vector<8x1xf32>
    %667 = arith.divf %665, %666 : vector<8x1xf32>
    %668 = vector.broadcast %667 : vector<8x1xf32> to vector<8x512xf32>
    %669 = arith.subf %659, %668 : vector<8x512xf32>
    %670 = arith.mulf %669, %669 : vector<8x512xf32>
    %cst_354 = arith.constant dense<0.000000e+00> : vector<8xf32>
    %671 = vector.multi_reduction <add>, %670, %cst_354 [1] : vector<8x512xf32> to vector<8xf32>
    %672 = vector.shape_cast %671 : vector<8xf32> to vector<8x1xf32>
    %cst_355 = arith.constant 5.120000e+02 : f32
    %673 = vector.broadcast %cst_355 : f32 to vector<8x1xf32>
    %674 = arith.divf %672, %673 : vector<8x1xf32>
    %cst_356 = arith.constant 9.99999974E-6 : f32
    %675 = vector.broadcast %cst_356 : f32 to vector<8x1xf32>
    %676 = arith.addf %674, %675 : vector<8x1xf32>
    %677 = math.rsqrt %676 : vector<8x1xf32>
    %678 = vector.broadcast %677 : vector<8x1xf32> to vector<8x512xf32>
    %679 = arith.mulf %669, %678 : vector<8x512xf32>
    %680 = vector.broadcast %661 : vector<8x1xf32> to vector<8x512xf32>
    %681 = arith.mulf %679, %680 : vector<8x512xf32>
    %682 = vector.broadcast %663 : vector<8x1xf32> to vector<8x512xf32>
    %683 = arith.addf %681, %682 : vector<8x512xf32>
    %cst_357 = arith.constant 0.000000e+00 : f32
    %684 = vector.broadcast %cst_357 : f32 to vector<8x512xf32>
    %685 = arith.maximumf %683, %684 : vector<8x512xf32>
    %c1_358 = arith.constant 1 : index
    %c0_359 = arith.constant 0 : index
    %c0_360 = arith.constant 0 : index
    %686 = vector.load %arg1[%c1_358, %c0_359, %c0_360] : memref<2x8x512xbf16, #tpu.memory_space<vmem>>, vector<1x8x512xbf16>
    %687 = vector.shape_cast %686 : vector<1x8x512xbf16> to vector<8x512xbf16>
    %688 = arith.extf %687 : vector<8x512xbf16> to vector<8x512xf32>
    %c1_361 = arith.constant 1 : index
    %c0_362 = arith.constant 0 : index
    %c0_363 = arith.constant 0 : index
    %689 = vector.load %arg8[%c1_361, %c0_362, %c0_363] : memref<2x8x1xf32, #tpu.memory_space<vmem>>, vector<1x8x1xf32>
    %690 = vector.shape_cast %689 : vector<1x8x1xf32> to vector<8x1xf32>
    %c1_364 = arith.constant 1 : index
    %c0_365 = arith.constant 0 : index
    %c0_366 = arith.constant 0 : index
    %691 = vector.load %arg9[%c1_364, %c0_365, %c0_366] : memref<2x8x1xf32, #tpu.memory_space<vmem>>, vector<1x8x1xf32>
    %692 = vector.shape_cast %691 : vector<1x8x1xf32> to vector<8x1xf32>
    %cst_367 = arith.constant dense<0.000000e+00> : vector<8xf32>
    %693 = vector.multi_reduction <add>, %688, %cst_367 [1] : vector<8x512xf32> to vector<8xf32>
    %694 = vector.shape_cast %693 : vector<8xf32> to vector<8x1xf32>
    %cst_368 = arith.constant 5.120000e+02 : f32
    %695 = vector.broadcast %cst_368 : f32 to vector<8x1xf32>
    %696 = arith.divf %694, %695 : vector<8x1xf32>
    %697 = vector.broadcast %696 : vector<8x1xf32> to vector<8x512xf32>
    %698 = arith.subf %688, %697 : vector<8x512xf32>
    %699 = arith.mulf %698, %698 : vector<8x512xf32>
    %cst_369 = arith.constant dense<0.000000e+00> : vector<8xf32>
    %700 = vector.multi_reduction <add>, %699, %cst_369 [1] : vector<8x512xf32> to vector<8xf32>
    %701 = vector.shape_cast %700 : vector<8xf32> to vector<8x1xf32>
    %cst_370 = arith.constant 5.120000e+02 : f32
    %702 = vector.broadcast %cst_370 : f32 to vector<8x1xf32>
    %703 = arith.divf %701, %702 : vector<8x1xf32>
    %cst_371 = arith.constant 9.99999974E-6 : f32
    %704 = vector.broadcast %cst_371 : f32 to vector<8x1xf32>
    %705 = arith.addf %703, %704 : vector<8x1xf32>
    %706 = math.rsqrt %705 : vector<8x1xf32>
    %707 = vector.broadcast %706 : vector<8x1xf32> to vector<8x512xf32>
    %708 = arith.mulf %698, %707 : vector<8x512xf32>
    %709 = vector.broadcast %690 : vector<8x1xf32> to vector<8x512xf32>
    %710 = arith.mulf %708, %709 : vector<8x512xf32>
    %711 = vector.broadcast %692 : vector<8x1xf32> to vector<8x512xf32>
    %712 = arith.addf %710, %711 : vector<8x512xf32>
    %cst_372 = arith.constant 0.000000e+00 : f32
    %713 = vector.broadcast %cst_372 : f32 to vector<8x512xf32>
    %714 = arith.maximumf %712, %713 : vector<8x512xf32>
    %715 = tpu.concatenate %685, %714 in 0 : vector<8x512xf32>, vector<8x512xf32> -> vector<16x512xf32>
    %c0_373 = arith.constant 0 : index
    %c0_374 = arith.constant 0 : index
    %716 = vector.load %arg10[%c0_373, %c0_374] : memref<8x16xf32, #tpu.memory_space<vmem>>, vector<8x16xf32>
    %cst_375 = arith.constant dense<0.000000e+00> : vector<8x512xf32>
    %717 = tpu.matmul %716, %715, %cst_375 {dimension_numbers = #tpu.dot_dimension_numbers<[1], [0], [0], [1], [0, 0, 1, 1], [], []>} : vector<8x16xf32>, vector<16x512xf32>, vector<8x512xf32> -> vector<8x512xf32>
    %718 = arith.addf %656, %717 : vector<8x512xf32>
    %c0_376 = arith.constant 0 : index
    %c0_377 = arith.constant 0 : index
    %719 = vector.load %arg11[%c0_376, %c0_377] : memref<8x512xf32, #tpu.memory_space<vmem>>, vector<8x512xf32>
    tpu.vector_store %arg11[%c0_376, %c0_377], %718 {strides = array<i32>} : memref<8x512xf32, #tpu.memory_space<vmem>>, vector<8x512xf32>,
    return
  }
}

</mosaic_0001>

<bundles_post_ra>
// kernel: tpu_custom_call.1
= control target key start
LH: loop header
LB: loop body
LE: loop exit
PB: predicated region body
PF: predicated region fallthrough
CT: control target
= control target key end

     0   :  { %s5633_s0 = inlined_call_operand.vmem [shape: bf16[8,512], index: 0, kind: input, shape index: {}]   ;;  %s5634_s1 = inlined_call_operand.vmem [shape: bf16[2,8,512], index: 1, kind: input, shape index: {}]   ;;  %s5635_s2 = inlined_call_operand.vmem [shape: f32[3,2,8,1], index: 2, kind: input, shape index: {}]   ;;  %s5636_s3 = inlined_call_operand.vmem [shape: f32[3,2,8,1], index: 3, kind: input, shape index: {}]   ;;  %s5637_s4 = inlined_call_operand.vmem [shape: bf16[3,2,8,80], index: 4, kind: input, shape index: {}]   ;;  %s5638_s5 = inlined_call_operand.vmem [shape: f32[3,8,1], index: 5, kind: input, shape index: {}]   ;;  %s5639_s6 = inlined_call_operand.vmem [shape: f32[3,8,1], index: 6, kind: input, shape index: {}]   ;;  %s5640_s7 = inlined_call_operand.vmem [shape: f32[3,8,8], index: 7, kind: input, shape index: {}]   ;;  %s5641_s8 = inlined_call_operand.vmem [shape: f32[2,8,1], index: 8, kind: input, shape index: {}]   ;;  %s5642_s9 = inlined_call_operand.vmem [shape: f32[2,8,1], index: 9, kind: input, shape index: {}]   ;;  %s5643_s10 = inlined_call_operand.vmem [shape: f32[8,16], index: 10, kind: input, shape index: {}]   ;;  %s5644_s11 = inlined_call_operand.hbm [shape: f32[8,512], index: 11, kind: output, shape index: {}]  }
   0x1   :  { %v165_v0 = vld [vmem:[%s5633_s0] sm:$0xff]  ;;  %v166_v1 = vld [vmem:[%s5633_s0 + $0x8] sm:$0xff] }
   0x2   :  { %16 = vsyncpa [#allocation4], 0  ;;  %v4000_v2 = vunpack.c.l.bf16 %v165_v0  ;;  %v4002_v3 = vunpack.c.h.bf16 %v165_v0  ;;  %v4004_v4 = vunpack.c.l.bf16 %v166_v1  ;;  %v4006_v5 = vunpack.c.h.bf16 %v166_v1  ;;  %v171_v9 = vld [vmem:[%s5635_s2] sm:$0xff]  ;;  %s3927_s24 = smov 16   ;;  %s3928_s25 = smov 112  }
   0x3   :  { %v5690_v10 = vmov 0   ;;  %v172_v11 = vld [vmem:[%s5636_s3] sm:$0xff]  ;;  %s3929_s26 = smov 1   ;;  %s3930_s27 = smov 127   ;;  %v40_v51 = vlaneseq  ;;  %v5705_v58 = vmov 0  ;;  %vm5649_vm8 = vmmov 1  }
   0x4   :  { %v173_v6 = vadd.f32 %v4002_v3, %v4000_v2  ;;  %3432 = vset.pattern.permute.xlu1 %v5690_v10  ;;  %483 = vmatprep.mubr.bf16.mxu0 %v5690_v10  ;;  %s3933_s16 = smov [#allocation3]  }
   0x5   :  { %202 = vperm.xlu1 %3432, %v171_v9   ;;  %524 = vmatprep.mubr.bf16.mxu1 %v5690_v10  ;;  %v4053_v52 = vand.u32 127, %v40_v51  ;;  %v5707_v9 = vmov 0  ;;  %s2991_s17 = sshll.u32 %s3933_s16, 4  ;;  %s2992_s17 = int_to_ptr.vmem [resolvable:$true] %s2991_s17 }
   0x6   :  { %v174_v7 = vadd.f32 %v173_v6, %v4004_v4  ;;  %3508 = vset.pattern.permute.xlu0 %v5690_v10  ;;  %s3902_s18 = scalar_lea.vmem %s2992_s17, 512  ;;  %p3907_p1 = scmp.lt.s32.totalorder %s2992_s17, %s2992_s17 }
   0x7   :  { %v49_v53 = vand.u32 255, %v4053_v52  ;;  %v4057_v54 = vadd.s32 256, %v4053_v52  ;;  %v4060_v55 = vadd.s32 384, %v4053_v52  ;;  %vm5646_vm1 = vcmp.lt.s32.totalorder %v4053_v52, 16  ;;  %p3903_p0 = scmp.ne.s32.totalorder %s2992_s17, %s3902_s18  ;;  %p3908_p2 = scmp.lt.s32.totalorder %s3902_s18, %s3902_s18 }
   0x8   :  { %v175_v8 = vadd.f32 %v174_v7, %v4006_v5  ;;  %vm5645_vm3 = vcmp.lt.s32.totalorder %v4053_v52, 112  ;;  %vm5653_vm7 = vcmp.lt.s32.totalorder %v4053_v52, 1 }
   0x9   :  { %211 = vperm.xlu1 %3432, %v172_v11   ;;  %vm4062_vm0 = vcmp.ge.s32.totalorder %v49_v53, 16  ;;  %v63_v59 = vand.u32 255, %v4057_v54  ;;  %v70_v0 = vand.u32 255, %v4060_v55  ;;  %v5711_v53 = vmov 0  ;;  %p3909_p3 = por %p3908_p2, %p3907_p1 }
   0xa   :  { %176 = vadd.xlane.f32.xlu0 %v175_v8  ;;  %v5706_v58 = vsel %vm4062_vm0, 4294967295, %v5705_v58 }
   0xb   :  { %vm4080_vm2 = vcmp.ge.s32.totalorder %v63_v59, 16  ;;  %p3910_p4 = pnand %p3909_p3, %p3903_p0 }
   0xc   :  { %v5708_v9 = vsel %vm4080_vm2, 4294967295, %v5707_v9 }
  0x84   :  { %v203_v28 = vpop.permute.xlu1 %202 }
  0x88   :  { %v212_v38 = vpop.permute.xlu1 %211 }
  0x97   :  { %v177_v12 = vpop.xlane.xlu0 %176 }
  0x98   :  { %v179_v13 = vmul.f32 0.001953125, %v177_v12 }
  0x9a   :  { %v180_v14 = vsub.f32 %v4000_v2, %v179_v13  ;;  %v181_v15 = vsub.f32 %v4002_v3, %v179_v13  ;;  %v182_v16 = vsub.f32 %v4004_v4, %v179_v13  ;;  %v183_v17 = vsub.f32 %v4006_v5, %v179_v13 }
  0x9b   :  { %v4089_v13 = vadd.s32 16, %v70_v0 }
  0x9c   :  { %v184_v18 = vmul.f32 %v180_v14, %v180_v14  ;;  %v185_v19 = vmul.f32 %v181_v15, %v181_v15  ;;  %v186_v20 = vmul.f32 %v182_v16, %v182_v16  ;;  %v187_v22 = vmul.f32 %v183_v17, %v183_v17 }
  0x9d   :  { %vm5648_vm4 = vcmp.lt.s32.totalorder %v4089_v13, 256 }
  0x9e   :  { %v188_v21 = vadd.f32 %v185_v19, %v184_v18 }
  0xa0   :  { %v189_v23 = vadd.f32 %v188_v21, %v186_v20  ;;  %v42_v21 = vadd.s32 128, %v4053_v52 }
  0xa2   :  { %v190_v24 = vadd.f32 %v189_v23, %v187_v22 }
  0xa4   :  { %191 = vadd.xlane.f32.xlu0 %v190_v24 }
 0x131   :  { %v192_v25 = vpop.xlane.xlu0 %191 }
 0x132   :  { %v193_v26 = vmul.f32 0.001953125, %v192_v25 }
 0x134   :  { %v194_v27 = vadd.f32 1e-05, %v193_v26 }
 0x136   :  { %3884 = vrsqrt.f32 %v194_v27  ;;  %v56_v27 = vand.u32 255, %v42_v21 }
 0x140   :  { %v3885_v29 = vpop.eup %3884 }
 0x141   :  { %v196_v30 = vmul.f32 %v3885_v29, %v180_v14  ;;  %v197_v31 = vmul.f32 %v3885_v29, %v181_v15  ;;  %v198_v32 = vmul.f32 %v3885_v29, %v182_v16  ;;  %v199_v33 = vmul.f32 %v3885_v29, %v183_v17 }
 0x143   :  { %v205_v34 = vmul.f32 %v203_v28, %v196_v30  ;;  %v206_v35 = vmul.f32 %v203_v28, %v197_v31  ;;  %v207_v36 = vmul.f32 %v203_v28, %v198_v32  ;;  %v208_v37 = vmul.f32 %v203_v28, %v199_v33 }
 0x144   :  { %v4120_v30 = vadd.s32 16, %v56_v27 }
 0x145   :  { %v214_v39 = vadd.f32 %v212_v38, %v205_v34  ;;  %v215_v40 = vadd.f32 %v212_v38, %v206_v35  ;;  %v216_v41 = vadd.f32 %v212_v38, %v207_v36  ;;  %v217_v42 = vadd.f32 %v212_v38, %v208_v37 }
 0x146   :  { %vm5647_vm5 = vcmp.lt.s32.totalorder %v4120_v30, 256  ;;  %v104_v37 = vand.u32 15, %v42_v21  ;;  %v97_v38 = vand.u32 15, %v4053_v52  ;;  %v5723_v21 = vmov 0 }
 0x147   :  { %v4026_v43 = vmax.f32 %v214_v39, 0.0  ;;  %v4028_v44 = vmax.f32 %v215_v40, 0.0  ;;  %v4030_v45 = vmax.f32 %v216_v41, 0.0  ;;  %v4032_v46 = vmax.f32 %v217_v42, 0.0 }
 0x148   :  { %vm4147_vm6 = vcmp.ge.s32.totalorder %v104_v37, 1  ;;  %v118_v41 = vand.u32 15, %v4060_v55  ;;  %vm4165_vm10 = vcmp.ge.s32.totalorder %v97_v38, 1 }
 0x149   :  { %v4036_v47 = vpack.i.bf16 %v4030_v45, %v4028_v44  ;;  %v3433_v48 = vpack.i.bf16 %v4032_v46, %v4026_v43  ;;  %v3453_v49 = vpack.i.bf16 %v4028_v44, %v4026_v43  ;;  %v3458_v50 = vpack.i.bf16 %v4030_v45, %v4032_v46  ;;  %vm4161_vm9 = vmpackc.low %vm5649_vm8, %vm4147_vm6 }
 0x14a   :  { %v5712_v53 = vsel %vm4161_vm9, 4294967295, %v5711_v53  ;;  %vm4170_vm11 = vcmp.ge.s32.totalorder %v118_v41, 1  ;;  %vm4186_vm13 = vmpackc.low %vm4062_vm0, %vm4165_vm10 }
 0x14b   :  { %3439 = vrot.lane.b32.xlu1 %v4036_v47, %s3927_s24  ;;  %3434 = vrot.lane.b32.xlu0 %v3433_v48, %s3927_s24  ;;  %vm4198_vm15 = vmpackc.low %vm5649_vm8, %vm4170_vm11 }
 0x14f   :  { %3444 = vrot.lane.b32.xlu1 %v4036_v47, %s3928_s25  ;;  %3454 = vrot.lane.b32.xlu0 %v3453_v49, %s3929_s26  ;;  %v111_v49 = vand.u32 15, %v4057_v54 }
 0x151   :  { %vm4174_vm12 = vcmp.ge.s32.totalorder %v111_v49, 1 }
 0x153   :  { %3449 = vrot.lane.b32.xlu1 %v3433_v48, %s3928_s25  ;;  %3459 = vrot.lane.b32.xlu0 %v3458_v50, %s3929_s26  ;;  %v4154_v50 = vadd.s32 1, %v104_v37 }
 0x155   :  { %vm5652_vm14 = vcmp.lt.s32.totalorder %v4154_v50, 16 }
 0x157   :  { %3489 = vrot.lane.b32.xlu0 %v3433_v48, %s3930_s27 }
 0x1bd   :  { %v3440_v56 = vpop.permute.xlu1 %3439  ;;  %v3435_v57 = vpop.permute.xlu0 %3434 }
 0x1be   :  { %v3442_v60 = vunpack.i.h.bf16 %v3440_v56  ;;  %v3441_v61 = vunpack.i.l.bf16 %v3440_v56  ;;  %v3437_v62 = vunpack.i.h.bf16 %v3435_v57  ;;  %v3436_v63 = vunpack.i.l.bf16 %v3435_v57 }
 0x1c0   :  { %v4071_v1 = vsel %vm5646_vm1, %v3436_v63, %v3441_v61  ;;  %v4075_v6 = vsel %vm5646_vm1, %v3437_v62, %v3436_v63  ;;  %v4086_v11 = vsel %vm5646_vm1, %v3441_v61, %v3442_v60  ;;  %v4093_v14 = vsel %vm5646_vm1, %v3442_v60, %v3437_v62 }
 0x1c1   :  { %v3445_v7 = vpop.permute.xlu1 %3444  ;;  %v244_v8 = vsel %vm4062_vm0, %v4075_v6, 0.0  ;;  %v246_v15 = vsel %vm4080_vm2, %v4086_v11, 0.0  ;;  %v4144_v36 = vpop.permute.xlu0 %3454  ;;  %vm5651_vm1 = vcmp.lt.s32.totalorder %v4053_v52, 127 }
 0x1c2   :  { %v3463_v12 = vpack.i.bf16 %v4071_v1, %v244_v8  ;;  %v3447_v17 = vunpack.i.h.bf16 %v3445_v7  ;;  %v3468_v20 = vpack.i.bf16 %v246_v15, %v4093_v14  ;;  %v3473_v26 = vpack.i.bf16 %v246_v15, %v4071_v1 }
 0x1c3   :  { %v3446_v28 = vunpack.i.l.bf16 %v3445_v7  ;;  %v3478_v29 = vpack.i.bf16 %v4093_v14, %v244_v8  ;;  %v3457_v62 = vunpack.i.h.bf16 %v4144_v36  ;;  %v3456_v63 = vunpack.i.l.bf16 %v4144_v36 }
 0x1c4   :  { %3464 = vrot.lane.b32.xlu1 %v3463_v12, %s3929_s26  ;;  %v5721_v15 = vmov 0 }
 0x1c5   :  { %v3450_v16 = vpop.permute.xlu1 %3449  ;;  %v4132_v32 = vsel %vm5645_vm3, %v3446_v28, %v3447_v17  ;;  %v3460_v42 = vpop.permute.xlu0 %3459  ;;  %v5722_v15 = vsel %vm4198_vm15, 4294967295, %v5721_v15 }
 0x1c6   :  { %v3452_v18 = vunpack.i.h.bf16 %v3450_v16  ;;  %v3451_v19 = vunpack.i.l.bf16 %v3450_v16  ;;  %v376_v33 = vsel %vm5647_vm5, %v4132_v32, 0.0  ;;  %v3462_v0 = vunpack.i.h.bf16 %v3460_v42  ;;  %vm4236_vm5 = vmpackc.low %vm4147_vm6, %vm5652_vm14 }
 0x1c7   :  { %vm5727_vm14 = vcmp.lt.s32.totalorder %v4053_v52, 127 }
 0x1c8   :  { %v4105_v22 = vsel %vm5645_vm3, %v3447_v17, %v3452_v18  ;;  %3469 = vrot.lane.b32.xlu1 %v3468_v20, %s3929_s26  ;;  %v4110_v23 = vsel %vm5645_vm3, %v3452_v18, %v3451_v19  ;;  %v4124_v31 = vsel %vm5645_vm3, %v3451_v19, %v3446_v28  ;;  %v4204_v17 = vadd.s32 1, %v97_v38  ;;  %vm4212_vm3 = vmpackc.low %vm4080_vm2, %vm4174_vm12 }
 0x1c9   :  { %v378_v24 = vsel %vm5648_vm4, %v4110_v23, 0.0  ;;  %v3493_v34 = vpack.i.bf16 %v376_v33, %v4124_v31  ;;  %v3503_v35 = vpack.i.bf16 %v4105_v22, %v376_v33  ;;  %v3490_v7 = vpop.permute.xlu0 %3489  ;;  %v5724_v21 = vsel %vm4212_vm3, 4294967295, %v5723_v21 }
 0x1ca   :  { %v3498_v25 = vpack.i.bf16 %v4105_v22, %v378_v24  ;;  %vm5658_vm4 = vcmp.lt.s32.totalorder %v4204_v17, 16 }
 0x1cb   :  { %vm4257_vm8 = vmpackc.low %vm4165_vm10, %vm5658_vm4 }
 0x1cc   :  { %3499 = vrot.lane.b32.xlu0 %v3498_v25, %s3929_s26  ;;  %3474 = vrot.lane.b32.xlu1 %v3473_v26, %s3930_s27  ;;  %v4217_v25 = vadd.s32 1, %v118_v41  ;;  %v3461_v26 = vunpack.i.l.bf16 %v3460_v42  ;;  %v315_v42 = vsel %vm5653_vm7, %v3457_v62, %v3462_v0 }
 0x1ce   :  { %v314_v38 = vsel %vm5653_vm7, %v3462_v0, %v3461_v26 }
 0x1d0   :  { %403 = vrot.lane.b32.xlu0 %v4124_v31, %s3930_s27  ;;  %3479 = vrot.lane.b32.xlu1 %v3478_v29, %s3930_s27  ;;  %v4219_v29 = vadd.s32 1, %v111_v49 }
 0x1d2   :  { %vm5736_vm4 = vcmp.lt.s32.totalorder %v4219_v29, 16 }
 0x1d4   :  { %3484 = vrot.lane.b32.xlu1 %v4036_v47, %s3930_s27 }
 0x1d8   :  { %3494 = vrot.lane.b32.xlu1 %v3493_v34, %s3929_s26 }
 0x1dc   :  { %3504 = vrot.lane.b32.xlu1 %v3503_v35, %s3930_s27  ;;  %v5725_v35 = vmov 0 }
 0x1dd   :  { %v5726_v35 = vsel %vm4236_vm5, 4294967295, %v5725_v35 }
 0x1e0   :  { %409 = vrot.lane.b32.xlu1 %v378_v24, %s3930_s27 }
 0x236   :  { %v3465_v39 = vpop.permute.xlu1 %3464 }
 0x237   :  { %v3467_v47 = vunpack.i.h.bf16 %v3465_v39  ;;  %v3466_v48 = vunpack.i.l.bf16 %v3465_v39 }
 0x239   :  { %v259_v51 = vsel %vm5653_vm7, %v3466_v48, %v3467_v47 }
 0x23a   :  { %v3470_v54 = vpop.permute.xlu1 %3469  ;;  %v3045_v56 = vpack.c.bf16 %v4071_v1, %v259_v51  ;;  %v5719_v1 = vmov 0  ;;  %v5728_v51 = vmov 0 }
 0x23b   :  { %v3472_v59 = vunpack.i.h.bf16 %v3470_v54  ;;  %v3471_v60 = vunpack.i.l.bf16 %v3470_v54  ;;  %v5720_v1 = vsel %vm4186_vm13, 4294967295, %v5719_v1  ;;  %v5729_v51 = vsel %vm4257_vm8, 4294967295, %v5728_v51 }
 0x23c   :  { %3046 = vmatprep.subr.msk.bf16.mxu0 %vm4161_vm9, %v3045_v56 }
 0x23d   :  { %v260_v8 = vsel %vm5653_vm7, %v3471_v60, %v3466_v48  ;;  %v257_v12 = vsel %vm5653_vm7, %v3472_v59, %v3471_v60  ;;  %v258_v16 = vsel %vm5653_vm7, %v3467_v47, %v3472_v59  ;;  %v317_v47 = vsel %vm5653_vm7, %v3461_v26, %v3456_v63 }
 0x23e   :  { %v3475_v18 = vpop.permute.xlu1 %3474  ;;  %v3048_v19 = vpack.c.bf16 %v4075_v6, %v260_v8  ;;  %v3075_v20 = vpack.c.bf16 %v4093_v14, %v257_v12  ;;  %v3078_v24 = vpack.c.bf16 %v4086_v11, %v258_v16  ;;  %v3492_v6 = vunpack.i.h.bf16 %v3490_v7  ;;  %v3500_v33 = vpop.permute.xlu0 %3499 }
 0x23f   :  { %v3477_v27 = vunpack.i.h.bf16 %v3475_v18  ;;  %v3476_v28 = vunpack.i.l.bf16 %v3475_v18  ;;  %v3491_v14 = vunpack.i.l.bf16 %v3490_v7  ;;  %v316_v11 = vsel %vm5653_vm7, %v3456_v63, %v3457_v62 }
 0x240   :  { %3049 = vmatpush1.bf16.msk.msra.mxu0 %vm4186_vm13, %v3048_v19  ;;  %3076 = vmatprep.subr.msk.bf16.mxu1 %vm4198_vm15, %v3075_v20  ;;  %v3502_v49 = vunpack.i.h.bf16 %v3500_v33  ;;  %v3501_v54 = vunpack.i.l.bf16 %v3500_v33  ;;  %v5734_v62 = vmov 0  ;;  %v5740_v19 = vmov 0 }
 0x241   :  { %v291_v34 = vsel %vm5651_vm1, %v3476_v28, %v3477_v27  ;;  %3079 = vmatpush1.bf16.msk.msra.mxu1 %vm4212_vm3, %v3078_v24  ;;  %v341_v48 = vsel %vm5727_vm14, %v3492_v6, %v3491_v14  ;;  %vm5730_vm1 = vmmov %vm5727_vm14  ;;  %vm5746_vm13 = vcmp.lt.s32.totalorder %v4053_v52, 127 }
 0x242   :  { %v3480_v36 = vpop.permute.xlu1 %3479  ;;  %v3051_v37 = vpack.c.bf16 %v316_v11, %v291_v34  ;;  %vm5731_vm7 = vmmov %vm5730_vm1  ;;  %v3087_v20 = vpack.c.bf16 %v341_v48, %v4032_v46  ;;  %v5766_v48 = vmov 0 }
 0x243   :  { %v3482_v39 = vunpack.i.h.bf16 %v3480_v36  ;;  %v3481_v41 = vunpack.i.l.bf16 %v3480_v36  ;;  %vm5732_vm14 = vmmov %vm5730_vm1 }
 0x244   :  { %3052 = vmatprep.subr.msk.bf16.mxu0 %vm4236_vm5, %v3051_v37  ;;  %vm5733_vm5 = vcmp.lt.s32.totalorder %v4217_v25, 16 }
 0x245   :  { %v290_v56 = vsel %vm5730_vm1, %v3477_v27, %v3482_v39  ;;  %v292_v59 = vsel %vm5731_vm7, %v3481_v41, %v3476_v28  ;;  %v293_v60 = vsel %vm5732_vm14, %v3482_v39, %v3481_v41  ;;  %vm4271_vm3 = vmpackc.low %vm4170_vm11, %vm5733_vm5  ;;  %vm5739_vm7 = vmmov 1  }
 0x246   :  { %v5735_v62 = vsel %vm4271_vm3, 4294967295, %v5734_v62  ;;  %v3485_v63 = vpop.permute.xlu1 %3484  ;;  %v3054_v0 = vpack.c.bf16 %v317_v47, %v292_v59  ;;  %v3081_v7 = vpack.c.bf16 %v314_v38, %v293_v60  ;;  %vm4279_vm1 = vmpackc.low %vm4174_vm12, %vm5736_vm4  ;;  %v3084_v12 = vpack.c.bf16 %v315_v42, %v290_v56  ;;  %v404_v56 = vpop.permute.xlu0 %403 }
 0x247   :  { %v3487_v16 = vunpack.i.h.bf16 %v3485_v63  ;;  %v3486_v18 = vunpack.i.l.bf16 %v3485_v63  ;;  %vm4286_vm14 = vmpackc.low %vm5733_vm5, %vm5739_vm7  ;;  %vm5742_vm4 = vcmp.lt.s32.totalorder %v4154_v50, 16  ;;  %vm5745_vm5 = vcmp.lt.s32.totalorder %v4053_v52, 1 }
 0x248   :  { %v5741_v19 = vsel %vm4286_vm14, 4294967295, %v5740_v19  ;;  %3055 = vmatpush1.bf16.msk.msra.mxu0 %vm4257_vm8, %v3054_v0  ;;  %3082 = vmatprep.subr.msk.bf16.mxu1 %vm4271_vm3, %v3081_v7  ;;  %vm4298_vm15 = vmpackc.low %vm5742_vm4, %vm5739_vm7  ;;  %v387_v26 = vsel %vm5745_vm5, %v3502_v49, %v3501_v54  ;;  %vm5749_vm4 = vcmp.lt.s32.totalorder %v4204_v17, 16  ;;  %v5756_v39 = vmov 0 }
 0x249   :  { %v338_v27 = vsel %vm5746_vm13, %v3487_v16, %v3492_v6  ;;  %vm5747_vm8 = vmmov %vm5746_vm13  ;;  %3085 = vmatpush1.bf16.msk.msra.mxu1 %vm4279_vm1, %v3084_v12  ;;  %vm5755_vm13 = vcmp.lt.s32.totalorder %v4089_v13, 256  ;;  %v5692_v59 = vmov 0.0   ;;  %v5774_v63 = vmov 0 }
 0x24a   :  { %v339_v28 = vsel %vm5747_vm8, %v3486_v18, %v3487_v16  ;;  %vm5748_vm3 = vmmov %vm5747_vm8  ;;  %3088 = vmatprep.subr.msk.bf16.mxu1 %vm4286_vm14, %v3087_v20  ;;  %v3495_v6 = vpop.permute.xlu1 %3494  ;;  %v3090_v36 = vpack.c.bf16 %v338_v27, %v4030_v45  ;;  %vm5761_vm14 = vcmp.lt.s32.totalorder %v4053_v52, 1  ;;  %v5778_v12 = vmov 0 }
 0x24b   :  { %v340_v11 = vsel %vm5748_vm3, %v3491_v14, %v3486_v18  ;;  %vm4315_vm9 = vmpackc.low %vm5749_vm4, %vm5739_vm7  ;;  %v3057_v33 = vpack.c.bf16 %v339_v28, %v4028_v44  ;;  %vm5752_vm3 = vcmp.lt.s32.totalorder %v4219_v29, 16  ;;  %v3497_v37 = vunpack.i.h.bf16 %v3495_v6 }
 0x24c   :  { %v3060_v34 = vpack.c.bf16 %v340_v11, %v4026_v43  ;;  %vm4326_vm8 = vmpackc.low %vm5752_vm3, %vm5739_vm7  ;;  %v3496_v38 = vunpack.i.l.bf16 %v3495_v6  ;;  %v3093_v43 = vpack.c.bf16 %v4110_v23, %v387_v26  ;;  %vm5758_vm4 = vcmp.lt.s32.totalorder %v4120_v30, 256 }
 0x24d   :  { %vm4335_vm5 = vmpackc.low %vm5755_vm13, %vm4170_vm11  ;;  %3058 = vmatprep.subr.msk.bf16.mxu0 %vm4298_vm15, %v3057_v33  ;;  %v5759_v44 = vmov 0  ;;  %v388_v45 = vsel %vm5761_vm14, %v3497_v37, %v3502_v49  ;;  %3091 = vmatpush1.bf16.msk.msra.mxu1 %vm4326_vm8, %v3090_v36  ;;  %v5764_v23 = vmov 0  ;;  %v5781_v18 = vmov 0 }
 0x24e   :  { %v5757_v39 = vsel %vm4335_vm5, 4294967295, %v5756_v39  ;;  %vm4346_vm3 = vmpackc.low %vm5758_vm4, %vm4147_vm6  ;;  %3061 = vmatpush1.bf16.msk.msra.mxu0 %vm4315_vm9, %v3060_v34  ;;  %3094 = vmatprep.subr.msk.bf16.mxu1 %vm4335_vm5, %v3093_v43  ;;  %v3505_v40 = vpop.permute.xlu1 %3504  ;;  %v3096_v55 = vpack.c.bf16 %v4105_v22, %v388_v45  ;;  %v5771_v22 = vmov 0 }
 0x24f   :  { %v5760_v44 = vsel %vm4346_vm3, 4294967295, %v5759_v44  ;;  %vm5762_vm11 = vmmov %vm5761_vm14  ;;  %v3507_v49 = vunpack.i.h.bf16 %v3505_v40 }
 0x250   :  { %v389_v57 = vsel %vm5762_vm11, %v3496_v38, %v3497_v37  ;;  %vm5763_vm13 = vmmov %vm5762_vm11 }
 0x251   :  { %v390_v41 = vsel %vm5763_vm13, %v3501_v54, %v3496_v38  ;;  %vm4363_vm6 = vmpackc.low %vm5739_vm7, %vm4165_vm10  ;;  %v3063_v42 = vpack.c.bf16 %v4132_v32, %v389_v57  ;;  %v3506_v54 = vunpack.i.l.bf16 %v3505_v40  ;;  %vm5768_vm10 = vcmp.lt.s32.totalorder %v4053_v52, 127  ;;  %v3001_v38 = vld [vmem:[%s5635_s2 + $0x8] sm:$0xff] }
 0x252   :  { %v5765_v23 = vsel %vm4363_vm6, 4294967295, %v5764_v23  ;;  %v3066_v47 = vpack.c.bf16 %v4124_v31, %v390_v41  ;;  %vm4374_vm14 = vmpackc.low %vm5739_vm7, %vm4174_vm12  ;;  %vm5770_vm12 = vcmp.lt.s32.totalorder %v4154_v50, 16  ;;  %v410_v61 = vpop.permute.xlu1 %409  ;;  %vm5773_vm13 = vcmp.lt.s32.totalorder %v4204_v17, 16 }
 0x253   :  { %v5767_v48 = vsel %vm4374_vm14, 4294967295, %v5766_v48  ;;  %3064 = vmatprep.subr.msk.bf16.mxu0 %vm4346_vm3, %v3063_v42  ;;  %v412_v32 = vsel %vm5768_vm10, %v3506_v54, %v3507_v49  ;;  %vm5769_vm4 = vmmov %vm5768_vm10  ;;  %3097 = vmatpush1.bf16.msk.msra.mxu1 %vm4374_vm14, %v3096_v55  ;;  %vm5777_vm14 = vcmp.lt.s32.totalorder %v4217_v25, 16  ;;  %v222_v25 = vld [vmem:[%s5637_s4] sm:$0xf] }
 0x254   :  { %v413_v31 = vsel %vm5769_vm4, %v404_v56, %v3506_v54  ;;  %3067 = vmatpush1.bf16.msk.msra.mxu0 %vm4363_vm6, %v3066_v47  ;;  %vm4392_vm11 = vmpackc.low %vm5739_vm7, %vm5770_vm12  ;;  %v3069_v60 = vpack.c.bf16 %v5692_v59, %v412_v32  ;;  %v411_v50 = vsel %vm5769_vm4, %v3507_v49, %v410_v61 }
 0x255   :  { %v5772_v22 = vsel %vm4392_vm11, 4294967295, %v5771_v22  ;;  %vm4400_vm10 = vmpackc.low %vm5739_vm7, %vm5773_vm13  ;;  %v3072_v0 = vpack.c.bf16 %v5692_v59, %v413_v31  ;;  %v3102_v16 = vpack.c.bf16 %v5692_v59, %v411_v50  ;;  %vm5780_vm13 = vcmp.lt.s32.totalorder %v4219_v29, 16 }
 0x256   :  { %v5775_v63 = vsel %vm4400_vm10, 4294967295, %v5774_v63  ;;  %vm5776_vm12 = vmmov %vm5769_vm4  ;;  %3070 = vmatprep.subr.msk.bf16.mxu0 %vm4392_vm11, %v3069_v60 }
 0x257   :  { %v414_v7 = vsel %vm5776_vm12, %v410_v61, %v404_v56  ;;  %vm4412_vm6 = vmpackc.low %vm5739_vm7, %vm5777_vm14  ;;  %vm5675_vm14 = vcmask 654336   ;;  %v3002_v61 = vld [vmem:[%s5636_s3 + $0x8] sm:$0xff] }
 0x258   :  { %v5779_v12 = vsel %vm4412_vm6, 4294967295, %v5778_v12  ;;  %v3099_v17 = vpack.c.bf16 %v5692_v59, %v414_v7  ;;  %vm4423_vm4 = vmpackc.low %vm5739_vm7, %vm5780_vm13  ;;  %3073 = vmatpush1.bf16.msk.msra.mxu0 %vm4400_vm10, %v3072_v0  ;;  %vm5783_vm7 = vcmp.lt.s32.totalorder %v4053_v52, 16 }
 0x259   :  { %v5782_v18 = vsel %vm4423_vm4, 4294967295, %v5781_v18  ;;  %vm5784_vm12 = vmmov %vm5783_vm7 }
 0x25a   :  { %3100 = vmatprep.subr.msk.bf16.mxu1 %vm4412_vm6, %v3099_v17  ;;  %vm5785_vm13 = vmmov %vm5783_vm7 }
 0x25b   :  { %3103 = vmatpush1.bf16.msk.msra.mxu1 %vm4423_vm4, %v3102_v16  ;;  %2999 = vmatmul.mubr.msk.bf16.vlgmr.msra.gmra.mrb[0].mxu0 %vm5675_vm14, %v222_v25 }
 0x25c   :  { %810 = vmatprep.mubr.bf16.mxu0 %v5690_v10 }
 0x25e   :  { %3000 = vmatmul.mubr.msk.bf16.vlgmr.msra.gmra.mrb[0].mxu1 %vm5675_vm14, %v222_v25  ;;  %vm5786_vm14 = vmmov %vm5783_vm7 }
 0x25f   :  { %851 = vmatprep.mubr.bf16.mxu1 %v5690_v10 }
 0x32e   :  { %v485_v29 = vpop.f32.mrb[0].mxu0 }
 0x32f   :  { %v487_v20 = vpop.f32.mrb[1].mxu0 }
 0x330   :  { %v537_v26 = vadd.f32 %v487_v20, %v485_v29  ;;  %v489_v27 = vpop.f32.mrb[2].mxu0 }
 0x331   :  { %v526_v28 = vpop.f32.mrb[0].mxu1  ;;  %v490_v11 = vpop.f32.mrb[3].mxu0 }
 0x332   :  { %v528_v6 = vpop.f32.mrb[1].mxu1  ;;  %v538_v33 = vadd.f32 %v537_v26, %v526_v28 }
 0x333   :  { %v530_v34 = vpop.f32.mrb[2].mxu1 }
 0x334   :  { %v531_v36 = vpop.f32.mrb[3].mxu1  ;;  %v539_v37 = vadd.f32 %v538_v33, %v528_v6 }
 0x336   :  { %540 = vadd.xlane.f32.xlu0 %v539_v37 }
 0x34c   :  { %565 = vperm.xlu0 %3508, %v3001_v38  }
 0x3c3   :  { %v541_v43 = vpop.xlane.xlu0 %540 }
 0x3c4   :  { %v542_v45 = vmul.f32 0.001953125, %v541_v43 }
 0x3c6   :  { %v543_v57 = vsub.f32 %v485_v29, %v542_v45  ;;  %v544_v41 = vsub.f32 %v487_v20, %v542_v45  ;;  %v545_v40 = vsub.f32 %v526_v28, %v542_v45  ;;  %v546_v42 = vsub.f32 %v528_v6, %v542_v45 }
 0x3c8   :  { %v547_v47 = vmul.f32 %v543_v57, %v543_v57  ;;  %v548_v55 = vmul.f32 %v544_v41, %v544_v41  ;;  %v549_v49 = vmul.f32 %v545_v40, %v545_v40  ;;  %v550_v56 = vmul.f32 %v546_v42, %v546_v42 }
 0x3ca   :  { %v551_v54 = vadd.f32 %v548_v55, %v547_v47 }
 0x3cb   :  { %v566_v17 = vpop.permute.xlu0 %565 }
 0x3cc   :  { %v552_v32 = vadd.f32 %v551_v54, %v549_v49 }
 0x3ce   :  { %v553_v31 = vadd.f32 %v552_v32, %v550_v56 }
 0x3d0   :  { %554 = vadd.xlane.f32.xlu1 %v553_v31 }
 0x3e1   :  { %574 = vperm.xlu1 %3432, %v3002_v61  }
 0x45d   :  { %v555_v60 = vpop.xlane.xlu1 %554 }
 0x45e   :  { %v556_v0 = vmul.f32 0.001953125, %v555_v60 }
 0x460   :  { %v557_v50 = vadd.f32 1e-05, %v556_v0 }
 0x461   :  { %v575_v6 = vpop.permute.xlu1 %574 }
 0x462   :  { %3886 = vrsqrt.f32 %v557_v50 }
 0x46c   :  { %v3887_v7 = vpop.eup %3886 }
 0x46d   :  { %v559_v16 = vmul.f32 %v3887_v7, %v543_v57  ;;  %v560_v25 = vmul.f32 %v3887_v7, %v544_v41  ;;  %v561_v29 = vmul.f32 %v3887_v7, %v545_v40  ;;  %v562_v20 = vmul.f32 %v3887_v7, %v546_v42 }
 0x46f   :  { %v568_v26 = vmul.f32 %v566_v17, %v559_v16  ;;  %v569_v27 = vmul.f32 %v566_v17, %v560_v25  ;;  %v570_v28 = vmul.f32 %v566_v17, %v561_v29  ;;  %v571_v11 = vmul.f32 %v566_v17, %v562_v20 }
 0x471   :  { %v577_v33 = vadd.f32 %v575_v6, %v568_v26  ;;  %v578_v34 = vadd.f32 %v575_v6, %v569_v27  ;;  %v579_v36 = vadd.f32 %v575_v6, %v570_v28  ;;  %v580_v37 = vadd.f32 %v575_v6, %v571_v11 }
 0x473   :  { %v4446_v38 = vmax.f32 %v577_v33, 0.0  ;;  %v4448_v43 = vmax.f32 %v578_v34, 0.0  ;;  %v4450_v45 = vmax.f32 %v580_v37, 0.0  ;;  %v4452_v47 = vmax.f32 %v579_v36, 0.0 }
 0x475   :  { %v3529_v57 = vpack.i.bf16 %v4448_v43, %v4446_v38  ;;  %v3509_v41 = vpack.i.bf16 %v4450_v45, %v4446_v38  ;;  %v3514_v40 = vpack.i.bf16 %v4452_v47, %v4448_v43  ;;  %v3544_v28 = vpack.i.bf16 %v4452_v47, %v4450_v45 }
 0x477   :  { %3530 = vrot.lane.b32.xlu0 %v3529_v57, %s3929_s26  ;;  %3510 = vrot.lane.b32.xlu1 %v3509_v41, %s3927_s24 }
 0x47b   :  { %3515 = vrot.lane.b32.xlu1 %v3514_v40, %s3927_s24 }
 0x47f   :  { %3520 = vrot.lane.b32.xlu1 %v3514_v40, %s3928_s25 }
 0x483   :  { %3525 = vrot.lane.b32.xlu1 %v3509_v41, %s3928_s25 }
 0x4e9   :  { %v3511_v42 = vpop.permute.xlu1 %3510 }
 0x4ea   :  { %v3513_v55 = vunpack.i.h.bf16 %v3511_v42  ;;  %v3512_v49 = vunpack.i.l.bf16 %v3511_v42 }
 0x4ec   :  { %v4467_v56 = vsel %vm5783_vm7, %v3513_v55, %v3512_v49 }
 0x4ed   :  { %v3516_v54 = vpop.permute.xlu1 %3515  ;;  %v599_v60 = vsel %vm4062_vm0, %v4467_v56, 0.0  ;;  %vm5801_vm0 = vnez %v5722_v15 }
 0x4ee   :  { %v3518_v32 = vunpack.i.h.bf16 %v3516_v54  ;;  %v3517_v31 = vunpack.i.l.bf16 %v3516_v54 }
 0x4f0   :  { %v597_v61 = vsel %vm5784_vm12, %v3512_v49, %v3517_v31  ;;  %v4476_v0 = vsel %vm5785_vm13, %v3518_v32, %v3513_v55  ;;  %v4480_v50 = vsel %vm5786_vm14, %v3517_v31, %v3518_v32  ;;  %vm5787_vm14 = vcmp.lt.s32.totalorder %v4053_v52, 112 }
 0x4f1   :  { %v3521_v7 = vpop.permute.xlu1 %3520  ;;  %v3534_v17 = vpack.i.bf16 %v597_v61, %v599_v60  ;;  %v601_v16 = vsel %vm4080_vm2, %v4480_v50, 0.0  ;;  %v3554_v34 = vpack.i.bf16 %v4476_v0, %v599_v60  ;;  %vm5788_vm7 = vmmov %vm5787_vm14  ;;  %vm5789_vm12 = vcmp.lt.s32.totalorder %v4089_v13, 256 }
 0x4f2   :  { %v3539_v25 = vpack.i.bf16 %v601_v16, %v4476_v0  ;;  %v3549_v20 = vpack.i.bf16 %v601_v16, %v597_v61  ;;  %v3523_v6 = vunpack.i.h.bf16 %v3521_v7  ;;  %v3522_v33 = vunpack.i.l.bf16 %v3521_v7  ;;  %vm5790_vm13 = vmmov %vm5788_vm7 }
 0x4f3   :  { %3535 = vrot.lane.b32.xlu1 %v3534_v17, %s3929_s26 }
 0x4f4   :  { %3540 = vrot.lane.b32.xlu0 %v3539_v25, %s3929_s26  ;;  %v4508_v57 = vsel %vm5790_vm13, %v3522_v33, %v3523_v6 }
 0x4f5   :  { %v3526_v29 = vpop.permute.xlu1 %3525 }
 0x4f6   :  { %v3528_v26 = vunpack.i.h.bf16 %v3526_v29  ;;  %v3527_v27 = vunpack.i.l.bf16 %v3526_v29 }
 0x4f7   :  { %3550 = vrot.lane.b32.xlu1 %v3549_v20, %s3930_s27 }
 0x4f8   :  { %3545 = vrot.lane.b32.xlu0 %v3544_v28, %s3929_s26  ;;  %v4494_v11 = vsel %vm5787_vm14, %v3528_v26, %v3527_v27  ;;  %v4500_v36 = vsel %vm5788_vm7, %v3523_v6, %v3528_v26  ;;  %vm5791_vm14 = vmmov %vm5788_vm7  ;;  %vm5792_vm7 = vcmp.lt.s32.totalorder %v4120_v30, 256 }
 0x4f9   :  { %v706_v37 = vsel %vm5789_vm12, %v4494_v11, 0.0  ;;  %v4513_v55 = vsel %vm5791_vm14, %v3527_v27, %v3522_v33  ;;  %v704_v49 = vsel %vm5792_vm7, %v4508_v57, 0.0  ;;  %vm5793_vm12 = vcmp.lt.s32.totalorder %v4053_v52, 1 }
 0x4fa   :  { %v3574_v42 = vpack.i.bf16 %v4500_v36, %v706_v37  ;;  %v3579_v54 = vpack.i.bf16 %v4500_v36, %v704_v49  ;;  %vm5794_vm13 = vmmov %vm5793_vm12 }
 0x4fb   :  { %3555 = vrot.lane.b32.xlu1 %v3554_v34, %s3930_s27  ;;  %vm5795_vm14 = vmmov %vm5793_vm12 }
 0x4fc   :  { %3565 = vrot.lane.b32.xlu0 %v3509_v41, %s3930_s27  ;;  %v3569_v41 = vpack.i.bf16 %v704_v49, %v4513_v55  ;;  %vm5796_vm7 = vmmov %vm5793_vm12 }
 0x4ff   :  { %3560 = vrot.lane.b32.xlu1 %v3514_v40, %s3930_s27  ;;  %v3531_v40 = vpop.permute.xlu0 %3530 }
 0x500   :  { %3575 = vrot.lane.b32.xlu0 %v3574_v42, %s3929_s26  ;;  %v3533_v25 = vunpack.i.h.bf16 %v3531_v40  ;;  %v3532_v29 = vunpack.i.l.bf16 %v3531_v40 }
 0x503   :  { %3570 = vrot.lane.b32.xlu1 %v3569_v41, %s3929_s26 }
 0x504   :  { %731 = vrot.lane.b32.xlu0 %v4513_v55, %s3930_s27 }
 0x507   :  { %3580 = vrot.lane.b32.xlu1 %v3579_v54, %s3930_s27 }
 0x50b   :  { %737 = vrot.lane.b32.xlu1 %v706_v37, %s3930_s27 }
 0x565   :  { %v3536_v32 = vpop.permute.xlu1 %3535 }
 0x566   :  { %v3538_v31 = vunpack.i.h.bf16 %v3536_v32  ;;  %v3537_v60 = vunpack.i.l.bf16 %v3536_v32  ;;  %v3541_v7 = vpop.permute.xlu0 %3540 }
 0x567   :  { %v3543_v17 = vunpack.i.h.bf16 %v3541_v7  ;;  %v3542_v16 = vunpack.i.l.bf16 %v3541_v7 }
 0x568   :  { %v613_v20 = vsel %vm5793_vm12, %v3537_v60, %v3538_v31  ;;  %vm5797_vm12 = vnez %v5712_v53 }
 0x569   :  { %v611_v26 = vsel %vm5794_vm13, %v3543_v17, %v3542_v16  ;;  %v612_v27 = vsel %vm5795_vm14, %v3538_v31, %v3543_v17  ;;  %v614_v28 = vsel %vm5796_vm7, %v3542_v16, %v3537_v60  ;;  %v3551_v6 = vpop.permute.xlu1 %3550  ;;  %v3105_v33 = vpack.c.bf16 %v597_v61, %v613_v20  ;;  %vm5798_vm13 = vmmov %vm5796_vm7 }
 0x56a   :  { %v3108_v34 = vpack.c.bf16 %v4467_v56, %v614_v28  ;;  %v3138_v37 = vpack.c.bf16 %v4480_v50, %v612_v27  ;;  %v3553_v42 = vunpack.i.h.bf16 %v3551_v6  ;;  %v3552_v49 = vunpack.i.l.bf16 %v3551_v6  ;;  %v3546_v41 = vpop.permute.xlu0 %3545  ;;  %vm5803_vm2 = vmmov %vm5798_vm13 }
 0x56b   :  { %v3548_v54 = vunpack.i.h.bf16 %v3546_v41  ;;  %v3547_v40 = vunpack.i.l.bf16 %v3546_v41  ;;  %3106 = vmatprep.subr.msk.bf16.mxu0 %vm5797_vm12, %v3105_v33  ;;  %v3135_v32 = vpack.c.bf16 %v4476_v0, %v611_v26  ;;  %v653_v31 = vsel %vm5798_vm13, %v3532_v29, %v3533_v25  ;;  %vm5804_vm13 = vmmov %vm5803_vm2 }
 0x56c   :  { %vm5799_vm14 = vcmp.lt.s32.totalorder %v4053_v52, 127  ;;  %vm5800_vm7 = vnez %v5720_v1  ;;  %vm5802_vm12 = vnez %v5724_v21 }
 0x56d   :  { %v636_v61 = vsel %vm5799_vm14, %v3552_v49, %v3553_v42  ;;  %3109 = vmatpush1.bf16.msk.msra.mxu0 %vm5800_vm7, %v3108_v34  ;;  %3136 = vmatprep.subr.msk.bf16.mxu1 %vm5801_vm0, %v3135_v32  ;;  %v3556_v56 = vpop.permute.xlu1 %3555  ;;  %v652_v17 = vsel %vm5803_vm2, %v3533_v25, %v3548_v54  ;;  %v651_v16 = vsel %vm5804_vm13, %v3548_v54, %v3547_v40  ;;  %vm5806_vm7 = vmmov %vm5803_vm2  ;;  %vm5807_vm0 = vcmp.lt.s32.totalorder %v4053_v52, 127 }
 0x56e   :  { %v3111_v50 = vpack.c.bf16 %v653_v31, %v636_v61  ;;  %v3558_v60 = vunpack.i.h.bf16 %v3556_v56  ;;  %v3557_v7 = vunpack.i.l.bf16 %v3556_v56  ;;  %3139 = vmatpush1.bf16.msk.msra.mxu1 %vm5802_vm12, %v3138_v37  ;;  %v3566_v0 = vpop.permute.xlu0 %3565  ;;  %vm5805_vm14 = vnez %v5726_v35  ;;  %vm5808_vm12 = vmmov %vm5807_vm0 }
 0x56f   :  { %v3568_v20 = vunpack.i.h.bf16 %v3566_v0  ;;  %v3567_v26 = vunpack.i.l.bf16 %v3566_v0  ;;  %v654_v27 = vsel %vm5806_vm7, %v3547_v40, %v3532_v29  ;;  %vm5809_vm4 = vmmov %vm5807_vm0 }
 0x570   :  { %3112 = vmatprep.subr.msk.bf16.mxu0 %vm5805_vm14, %v3111_v50  ;;  %v635_v28 = vsel %vm5807_vm0, %v3553_v42, %v3558_v60  ;;  %v637_v6 = vsel %vm5808_vm12, %v3557_v7, %v3552_v49  ;;  %v638_v25 = vsel %vm5809_vm4, %v3558_v60, %v3557_v7  ;;  %vm5810_vm2 = vmmov %vm5807_vm0  ;;  %vm5811_vm0 = vnez %v5729_v51 }
 0x571   :  { %v3114_v33 = vpack.c.bf16 %v654_v27, %v637_v6  ;;  %v3144_v34 = vpack.c.bf16 %v652_v17, %v635_v28  ;;  %v678_v37 = vsel %vm5810_vm2, %v3568_v20, %v3567_v26  ;;  %v3561_v41 = vpop.permute.xlu1 %3560  ;;  %v3141_v54 = vpack.c.bf16 %v651_v16, %v638_v25  ;;  %vm5813_vm4 = vmmov %vm5810_vm2 }
 0x572   :  { %v3563_v32 = vunpack.i.h.bf16 %v3561_v41  ;;  %v3562_v31 = vunpack.i.l.bf16 %v3561_v41  ;;  %v3576_v61 = vpop.permute.xlu0 %3575  ;;  %v3147_v29 = vpack.c.bf16 %v678_v37, %v4450_v45  ;;  %vm5812_vm12 = vnez %v5735_v62  ;;  %vm5814_vm7 = vmmov %vm5810_vm2 }
 0x573   :  { %v3578_v40 = vunpack.i.h.bf16 %v3576_v61  ;;  %v3577_v42 = vunpack.i.l.bf16 %v3576_v61  ;;  %3115 = vmatpush1.bf16.msk.msra.mxu0 %vm5811_vm0, %v3114_v33  ;;  %3142 = vmatprep.subr.msk.bf16.mxu1 %vm5812_vm12, %v3141_v54  ;;  %vm5815_vm13 = vmmov %vm5810_vm2  ;;  %vm5816_vm2 = vcmp.lt.s32.totalorder %v4053_v52, 1  ;;  %vm5817_vm12 = vnez %v5741_v19 }
 0x574   :  { %v675_v49 = vsel %vm5813_vm4, %v3563_v32, %v3568_v20  ;;  %v676_v56 = vsel %vm5814_vm7, %v3562_v31, %v3563_v32  ;;  %v677_v50 = vsel %vm5815_vm13, %v3567_v26, %v3562_v31  ;;  %3145 = vmatpush1.bf16.msk.msra.mxu1 %vm4279_vm1, %v3144_v34  ;;  %vm5818_vm4 = vmmov %vm5816_vm2 }
 0x575   :  { %v3150_v45 = vpack.c.bf16 %v675_v49, %v4452_v47  ;;  %v3120_v60 = vpack.c.bf16 %v677_v50, %v4446_v38  ;;  %v715_v7 = vsel %vm5816_vm2, %v3578_v40, %v3577_v42  ;;  %v3571_v0 = vpop.permute.xlu1 %3570  ;;  %3148 = vmatprep.subr.msk.bf16.mxu1 %vm5817_vm12, %v3147_v29  ;;  %v3117_v17 = vpack.c.bf16 %v676_v56, %v4448_v43  ;;  %vm5819_vm7 = vmmov %vm5816_vm2  ;;  %v3003_v29 = vld [vmem:[%s5637_s4 + $0x4] sm:$0xf] }
 0x576   :  { %v3573_v16 = vunpack.i.h.bf16 %v3571_v0  ;;  %v3572_v20 = vunpack.i.l.bf16 %v3571_v0  ;;  %v3153_v26 = vpack.c.bf16 %v4494_v11, %v715_v7  ;;  %vm5820_vm13 = vmmov %vm5816_vm2  ;;  %v732_v34 = vpop.permute.xlu0 %731  ;;  %vm5821_vm2 = vcmp.lt.s32.totalorder %v4053_v52, 127 }
 0x577   :  { %3118 = vmatprep.subr.msk.bf16.mxu0 %vm4298_vm15, %v3117_v17 }
 0x578   :  { %v716_v47 = vsel %vm5818_vm4, %v3573_v16, %v3578_v40  ;;  %v717_v38 = vsel %vm5819_vm7, %v3572_v20, %v3573_v16  ;;  %v718_v27 = vsel %vm5820_vm13, %v3577_v42, %v3572_v20  ;;  %3121 = vmatpush1.bf16.msk.msra.mxu0 %vm4315_vm9, %v3120_v60  ;;  %3151 = vmatpush1.bf16.msk.msra.mxu1 %vm4326_vm8, %v3150_v45  ;;  %vm5822_vm4 = vmmov %vm5821_vm2 }
 0x579   :  { %v3156_v43 = vpack.c.bf16 %v4500_v36, %v716_v47  ;;  %v3126_v11 = vpack.c.bf16 %v4513_v55, %v718_v27  ;;  %v3581_v28 = vpop.permute.xlu1 %3580  ;;  %3154 = vmatprep.subr.msk.bf16.mxu1 %vm4335_vm5, %v3153_v26  ;;  %v3123_v6 = vpack.c.bf16 %v4508_v57, %v717_v38  ;;  %vm5823_vm7 = vnez %v5765_v23  ;;  %vm5825_vm5 = vmmov %vm5821_vm2 }
 0x57a   :  { %v3583_v25 = vunpack.i.h.bf16 %v3581_v28  ;;  %v3582_v33 = vunpack.i.l.bf16 %v3581_v28  ;;  %vm5824_vm13 = vnez %v5767_v48 }
 0x57b   :  { %3124 = vmatprep.subr.msk.bf16.mxu0 %vm4346_vm3, %v3123_v6  ;;  %vm5826_vm3 = vmmov %vm5821_vm2 }
 0x57c   :  { %v740_v37 = vsel %vm5821_vm2, %v3582_v33, %v3583_v25  ;;  %v741_v36 = vsel %vm5822_vm4, %v732_v34, %v3582_v33  ;;  %3127 = vmatpush1.bf16.msk.msra.mxu0 %vm5823_vm7, %v3126_v11  ;;  %3157 = vmatpush1.bf16.msk.msra.mxu1 %vm5824_vm13, %v3156_v43  ;;  %vm5832_vm4 = vcmp.lt.s32.totalorder %v4053_v52, 16 }
 0x57d   :  { %v3132_v57 = vpack.c.bf16 %v5692_v59, %v741_v36  ;;  %v738_v55 = vpop.permute.xlu1 %737  ;;  %v3129_v41 = vpack.c.bf16 %v5692_v59, %v740_v37 }
 0x57e   :  { %v739_v54 = vsel %vm5825_vm5, %v3583_v25, %v738_v55  ;;  %v742_v32 = vsel %vm5826_vm3, %v738_v55, %v732_v34  ;;  %vm5827_vm5 = vnez %v5782_v18  ;;  %vm5828_vm3 = vcmask 654336  }
 0x57f   :  { %v3159_v31 = vpack.c.bf16 %v5692_v59, %v742_v32  ;;  %v3162_v61 = vpack.c.bf16 %v5692_v59, %v739_v54  ;;  %3130 = vmatprep.subr.msk.bf16.mxu0 %vm4392_vm11, %v3129_v41  ;;  %vm5829_vm2 = vmmov %vm5828_vm3 }
 0x580   :  { %3133 = vmatpush1.bf16.msk.msra.mxu0 %vm4400_vm10, %v3132_v57  ;;  %v3007_v57 = vld [vmem:[%s5636_s3 + $0x10] sm:$0xff]  ;;  %vm5837_vm10 = vnez %v5706_v58 }
 0x581   :  { %3160 = vmatprep.subr.msk.bf16.mxu1 %vm4412_vm6, %v3159_v31  ;;  %vm5836_vm6 = vnez %v5708_v9 }
 0x582   :  { %3163 = vmatpush1.bf16.msk.msra.mxu1 %vm5827_vm5, %v3162_v61 }
 0x583   :  { %3004 = vmatmul.mubr.msk.bf16.vlgmr.msra.gmra.mrb[4].mxu0 %vm5828_vm3, %v3003_v29  ;;  %vm5833_vm3 = vmmov %vm5832_vm4 }
 0x584   :  { %1162 = vmatprep.mubr.bf16.mxu0 %v5690_v10 }
 0x585   :  { %3005 = vmatmul.mubr.msk.bf16.vlgmr.msra.gmra.mrb[4].mxu1 %vm5829_vm2, %v3003_v29  ;;  %vm5834_vm2 = vmmov %vm5833_vm3 }
 0x586   :  { %1203 = vmatprep.mubr.bf16.mxu1 %v5690_v10  ;;  %vm5835_vm5 = vmmov %vm5834_vm2 }
 0x656   :  { %v812_v40 = vpop.f32.mrb[4].mxu0 }
 0x657   :  { %v4638_v42 = vadd.f32 %v812_v40, %v4000_v2  ;;  %v814_v49 = vpop.f32.mrb[5].mxu0 }
 0x658   :  { %v4641_v56 = vadd.f32 %v814_v49, %v4002_v3  ;;  %v816_v50 = vpop.f32.mrb[6].mxu0  ;;  %v853_v45 = vpop.f32.mrb[4].mxu1 }
 0x659   :  { %v4644_v60 = vadd.f32 %v853_v45, %v4004_v4  ;;  %v817_v7 = vpop.f32.mrb[7].mxu0  ;;  %v855_v0 = vpop.f32.mrb[5].mxu1  ;;  %v3006_v4 = vld [vmem:[%s5635_s2 + $0x10] sm:$0xff] }
 0x65a   :  { %v862_v17 = vadd.f32 %v4641_v56, %v4638_v42  ;;  %v857_v16 = vpop.f32.mrb[6].mxu1  ;;  %v4649_v26 = vadd.f32 %v855_v0, %v4006_v5 }
 0x65b   :  { %v858_v20 = vpop.f32.mrb[7].mxu1 }
 0x65c   :  { %v863_v2 = vadd.f32 %v862_v17, %v4644_v60 }
 0x65e   :  { %v864_v3 = vadd.f32 %v863_v2, %v4649_v26 }
 0x660   :  { %865 = vadd.xlane.f32.xlu0 %v864_v3 }
 0x676   :  { %917 = vperm.xlu0 %3508, %v3006_v4  }
 0x6ed   :  { %v866_v47 = vpop.xlane.xlu0 %865 }
 0x6ee   :  { %v867_v38 = vmul.f32 0.001953125, %v866_v47 }
 0x6f0   :  { %v868_v27 = vsub.f32 %v4638_v42, %v867_v38  ;;  %v869_v43 = vsub.f32 %v4641_v56, %v867_v38  ;;  %v870_v11 = vsub.f32 %v4644_v60, %v867_v38  ;;  %v871_v5 = vsub.f32 %v4649_v26, %v867_v38 }
 0x6f2   :  { %v872_v28 = vmul.f32 %v868_v27, %v868_v27  ;;  %v873_v6 = vmul.f32 %v869_v43, %v869_v43  ;;  %v874_v25 = vmul.f32 %v870_v11, %v870_v11  ;;  %v875_v34 = vmul.f32 %v871_v5, %v871_v5 }
 0x6f4   :  { %v876_v33 = vadd.f32 %v873_v6, %v872_v28 }
 0x6f5   :  { %v918_v49 = vpop.permute.xlu0 %917 }
 0x6f6   :  { %v877_v37 = vadd.f32 %v876_v33, %v874_v25 }
 0x6f8   :  { %v878_v36 = vadd.f32 %v877_v37, %v875_v34 }
 0x6fa   :  { %879 = vadd.xlane.f32.xlu1 %v878_v36 }
 0x70b   :  { %926 = vperm.xlu1 %3432, %v3007_v57  }
 0x787   :  { %v880_v55 = vpop.xlane.xlu1 %879 }
 0x788   :  { %v881_v41 = vmul.f32 0.001953125, %v880_v55 }
 0x78a   :  { %v882_v54 = vadd.f32 1e-05, %v881_v41 }
 0x78b   :  { %v927_v17 = vpop.permute.xlu1 %926 }
 0x78c   :  { %3888 = vrsqrt.f32 %v882_v54 }
 0x796   :  { %v3889_v32 = vpop.eup %3888 }
 0x797   :  { %v4663_v31 = vmul.f32 %v3889_v32, %v868_v27  ;;  %v4665_v61 = vmul.f32 %v3889_v32, %v869_v43  ;;  %v4667_v29 = vmul.f32 %v3889_v32, %v870_v11  ;;  %v4669_v40 = vmul.f32 %v3889_v32, %v871_v5 }
 0x799   :  { %5830 = vst [vmem:[#allocation6_spill] sm:$0xff] %v4667_v29  ;;  %5831 = vst [vmem:[#allocation7_spill] sm:$0xff] %v4669_v40  ;;  %v920_v50 = vmul.f32 %v918_v49, %v4663_v31  ;;  %v921_v45 = vmul.f32 %v918_v49, %v4665_v61  ;;  %v922_v7 = vmul.f32 %v918_v49, %v4667_v29 }
 0x79a   :  { %v923_v0 = vmul.f32 %v918_v49, %v4669_v40 }
 0x79b   :  { %v929_v16 = vadd.f32 %v927_v17, %v920_v50  ;;  %v930_v20 = vadd.f32 %v927_v17, %v921_v45  ;;  %v931_v2 = vadd.f32 %v927_v17, %v922_v7 }
 0x79c   :  { %v932_v3 = vadd.f32 %v927_v17, %v923_v0 }
 0x79d   :  { %v4675_v4 = vmax.f32 %v929_v16, 0.0  ;;  %v4677_v47 = vmax.f32 %v930_v20, 0.0  ;;  %v4679_v38 = vmax.f32 %v931_v2, 0.0 }
 0x79e   :  { %v4681_v27 = vmax.f32 %v932_v3, 0.0 }
 0x79f   :  { %v3589_v43 = vpack.i.bf16 %v4679_v38, %v4677_v47  ;;  %v3604_v5 = vpack.i.bf16 %v4677_v47, %v4675_v4 }
 0x7a0   :  { %v3584_v11 = vpack.i.bf16 %v4681_v27, %v4675_v4  ;;  %v3619_v16 = vpack.i.bf16 %v4679_v38, %v4681_v27 }
 0x7a1   :  { %3590 = vrot.lane.b32.xlu1 %v3589_v43, %s3927_s24 }
 0x7a2   :  { %3585 = vrot.lane.b32.xlu0 %v3584_v11, %s3927_s24 }
 0x7a5   :  { %3600 = vrot.lane.b32.xlu1 %v3584_v11, %s3928_s25 }
 0x7a6   :  { %3595 = vrot.lane.b32.xlu0 %v3589_v43, %s3928_s25 }
 0x7a9   :  { %3605 = vrot.lane.b32.xlu1 %v3604_v5, %s3929_s26 }
 0x813   :  { %v3591_v28 = vpop.permute.xlu1 %3590 }
 0x814   :  { %v3586_v6 = vpop.permute.xlu0 %3585  ;;  %v3593_v25 = vunpack.i.h.bf16 %v3591_v28  ;;  %v3592_v33 = vunpack.i.l.bf16 %v3591_v28 }
 0x815   :  { %v3588_v34 = vunpack.i.h.bf16 %v3586_v6  ;;  %v3587_v37 = vunpack.i.l.bf16 %v3586_v6 }
 0x816   :  { %v4700_v57 = vsel %vm5833_vm3, %v3592_v33, %v3593_v25  ;;  %vm5840_vm3 = vcmp.lt.s32.totalorder %v4089_v13, 256 }
 0x817   :  { %v4696_v36 = vsel %vm5832_vm4, %v3593_v25, %v3588_v34  ;;  %v949_v55 = vsel %vm5834_vm2, %v3587_v37, %v3592_v33  ;;  %v4706_v41 = vsel %vm5835_vm5, %v3588_v34, %v3587_v37  ;;  %v953_v54 = vsel %vm5836_vm6, %v4700_v57, 0.0  ;;  %v3601_v49 = vpop.permute.xlu1 %3600 }
 0x818   :  { %v951_v32 = vsel %vm5837_vm10, %v4706_v41, 0.0  ;;  %v3614_v50 = vpack.i.bf16 %v953_v54, %v4696_v36  ;;  %v3603_v7 = vunpack.i.h.bf16 %v3601_v49  ;;  %v3602_v0 = vunpack.i.l.bf16 %v3601_v49  ;;  %v3596_v17 = vpop.permute.xlu0 %3595 }
 0x819   :  { %v3609_v45 = vpack.i.bf16 %v949_v55, %v951_v32  ;;  %v3624_v20 = vpack.i.bf16 %v953_v54, %v949_v55  ;;  %v3598_v2 = vunpack.i.h.bf16 %v3596_v17  ;;  %v3597_v3 = vunpack.i.l.bf16 %v3596_v17 }
 0x81a   :  { %3615 = vrot.lane.b32.xlu1 %v3614_v50, %s3929_s26  ;;  %vm5838_vm5 = vcmp.lt.s32.totalorder %v4053_v52, 112  ;;  %v3629_v28 = vpack.i.bf16 %v4696_v36, %v951_v32  ;;  %vm5852_vm10 = vnez %v5720_v1  ;;  %vm5853_vm6 = vnez %v5724_v21 }
 0x81b   :  { %3610 = vrot.lane.b32.xlu0 %v3609_v45, %s3929_s26  ;;  %v4723_v5 = vsel %vm5838_vm5, %v3603_v7, %v3602_v0  ;;  %vm5839_vm4 = vmmov %vm5838_vm5  ;;  %v3606_v49 = vpop.permute.xlu1 %3605 }
 0x81c   :  { %v4728_v6 = vsel %vm5839_vm4, %v3598_v2, %v3603_v7  ;;  %v1058_v25 = vsel %vm5840_vm3, %v4723_v5, 0.0  ;;  %vm5841_vm2 = vmmov %vm5839_vm4  ;;  %vm5843_vm4 = vcmp.lt.s32.totalorder %v4120_v30, 256  ;;  %vm5844_vm3 = vcmp.lt.s32.totalorder %v4053_v52, 1 }
 0x81d   :  { %v4737_v33 = vsel %vm5841_vm2, %v3597_v3, %v3598_v2  ;;  %v3649_v34 = vpack.i.bf16 %v4728_v6, %v1058_v25  ;;  %vm5842_vm5 = vmmov %vm5841_vm2 }
 0x81e   :  { %3620 = vrot.lane.b32.xlu1 %v3619_v16, %s3929_s26  ;;  %v4742_v37 = vsel %vm5842_vm5, %v3602_v0, %v3597_v3  ;;  %v1056_v54 = vsel %vm5843_vm4, %v4737_v33, 0.0  ;;  %v3608_v16 = vunpack.i.h.bf16 %v3606_v49  ;;  %vm5845_vm2 = vmmov %vm5844_vm3 }
 0x81f   :  { %3625 = vrot.lane.b32.xlu0 %v3624_v20, %s3930_s27  ;;  %v3654_v32 = vpack.i.bf16 %v4728_v6, %v1056_v54  ;;  %v3607_v20 = vunpack.i.l.bf16 %v3606_v49  ;;  %vm5846_vm5 = vmmov %vm5845_vm2 }
 0x820   :  { %vm5847_vm4 = vmmov %vm5845_vm2 }
 0x822   :  { %3640 = vrot.lane.b32.xlu1 %v3584_v11, %s3930_s27  ;;  %v3644_v11 = vpack.i.bf16 %v1056_v54, %v4742_v37 }
 0x823   :  { %3630 = vrot.lane.b32.xlu0 %v3629_v28, %s3930_s27 }
 0x826   :  { %3650 = vrot.lane.b32.xlu1 %v3649_v34, %s3929_s26 }
 0x827   :  { %3635 = vrot.lane.b32.xlu0 %v3589_v43, %s3930_s27 }
 0x82a   :  { %1083 = vrot.lane.b32.xlu1 %v4742_v37, %s3930_s27 }
 0x82b   :  { %3645 = vrot.lane.b32.xlu0 %v3644_v11, %s3929_s26 }
 0x82f   :  { %3655 = vrot.lane.b32.xlu0 %v3654_v32, %s3930_s27 }
 0x833   :  { %1089 = vrot.lane.b32.xlu0 %v1058_v25, %s3930_s27 }
 0x88c   :  { %v3616_v50 = vpop.permute.xlu1 %3615 }
 0x88d   :  { %v3611_v45 = vpop.permute.xlu0 %3610  ;;  %v3618_v7 = vunpack.i.h.bf16 %v3616_v50  ;;  %v3617_v0 = vunpack.i.l.bf16 %v3616_v50 }
 0x88e   :  { %v3613_v17 = vunpack.i.h.bf16 %v3611_v45  ;;  %v3612_v43 = vunpack.i.l.bf16 %v3611_v45 }
 0x88f   :  { %v963_v2 = vsel %vm5844_vm3, %v3618_v7, %v3617_v0  ;;  %vm5848_vm3 = vnez %v5712_v53 }
 0x890   :  { %v964_v3 = vsel %vm5845_vm2, %v3613_v17, %v3618_v7  ;;  %v965_v28 = vsel %vm5846_vm5, %v3612_v43, %v3613_v17  ;;  %v966_v25 = vsel %vm5847_vm4, %v3617_v0, %v3612_v43  ;;  %v3195_v34 = vpack.c.bf16 %v4696_v36, %v963_v2  ;;  %v3621_v49 = vpop.permute.xlu1 %3620  ;;  %vm5850_vm5 = vmmov %vm5847_vm4 }
 0x891   :  { %v3198_v54 = vpack.c.bf16 %v4700_v57, %v964_v3  ;;  %v3165_v11 = vpack.c.bf16 %v949_v55, %v965_v28  ;;  %v3168_v32 = vpack.c.bf16 %v4706_v41, %v966_v25  ;;  %v3626_v50 = vpop.permute.xlu0 %3625  ;;  %v3623_v59 = vunpack.i.h.bf16 %v3621_v49 }
 0x892   :  { %v3628_v45 = vunpack.i.h.bf16 %v3626_v50  ;;  %v3627_v10 = vunpack.i.l.bf16 %v3626_v50  ;;  %v3622_v40 = vunpack.i.l.bf16 %v3621_v49  ;;  %vm5849_vm2 = vnez %v5722_v15 }
 0x893   :  { %3166 = vmatprep.subr.msk.bf16.mxu0 %vm5848_vm3, %v3165_v11  ;;  %3196 = vmatprep.subr.msk.bf16.mxu1 %vm5849_vm2, %v3195_v34  ;;  %v1005_v36 = vsel %vm5850_vm5, %v3607_v20, %v3608_v16  ;;  %vm5851_vm4 = vcmp.lt.s32.totalorder %v4053_v52, 127  ;;  %vm5854_vm2 = vmmov %vm5850_vm5 }
 0x894   :  { %v988_v57 = vsel %vm5851_vm4, %v3627_v10, %v3628_v45  ;;  %3169 = vmatpush1.bf16.msk.msra.mxu0 %vm5852_vm10, %v3168_v32  ;;  %3199 = vmatpush1.bf16.msk.msra.mxu1 %vm5853_vm6, %v3198_v54  ;;  %v3641_v41 = vpop.permute.xlu1 %3640  ;;  %v1004_v3 = vsel %vm5854_vm2, %v3608_v16, %v3623_v59  ;;  %vm5855_vm5 = vmmov %vm5854_vm2  ;;  %vm5857_vm6 = vcmp.lt.s32.totalorder %v4053_v52, 127 }
 0x895   :  { %v3171_v55 = vpack.c.bf16 %v1005_v36, %v988_v57  ;;  %v3631_v7 = vpop.permute.xlu0 %3630  ;;  %v3643_v0 = vunpack.i.h.bf16 %v3641_v41  ;;  %v3642_v17 = vunpack.i.l.bf16 %v3641_v41  ;;  %v1003_v28 = vsel %vm5855_vm5, %v3623_v59, %v3622_v40  ;;  %vm5856_vm4 = vmmov %vm5854_vm2 }
 0x896   :  { %v3633_v43 = vunpack.i.h.bf16 %v3631_v7  ;;  %v3632_v2 = vunpack.i.l.bf16 %v3631_v7  ;;  %v1006_v25 = vsel %vm5856_vm4, %v3622_v40, %v3607_v20  ;;  %vm5858_vm10 = vmmov %vm5857_vm6 }
 0x897   :  { %3172 = vmatprep.subr.msk.bf16.mxu0 %vm5805_vm14, %v3171_v55  ;;  %v1030_v34 = vsel %vm5857_vm6, %v3643_v0, %v3642_v17  ;;  %vm5859_vm3 = vmmov %vm5857_vm6  ;;  %vm5861_vm6 = vnez %v5735_v62 }
 0x898   :  { %v987_v54 = vsel %vm5858_vm10, %v3628_v45, %v3633_v43  ;;  %v989_v11 = vsel %vm5859_vm3, %v3632_v2, %v3627_v10  ;;  %vm5860_vm2 = vmmov %vm5859_vm3  ;;  %v3651_v50 = vpop.permute.xlu1 %3650  ;;  %v3207_v41 = vpack.c.bf16 %v1030_v34, %v4681_v27 }
 0x899   :  { %v990_v16 = vsel %vm5860_vm2, %v3633_v43, %v3632_v2  ;;  %v3174_v32 = vpack.c.bf16 %v1006_v25, %v989_v11  ;;  %v3204_v49 = vpack.c.bf16 %v1004_v3, %v987_v54  ;;  %v3636_v40 = vpop.permute.xlu0 %3635  ;;  %v3653_v20 = vunpack.i.h.bf16 %v3651_v50  ;;  %vm5862_vm10 = vmmov %vm5856_vm4 }
 0x89a   :  { %v3201_v59 = vpack.c.bf16 %v1003_v28, %v990_v16  ;;  %v3652_v36 = vunpack.i.l.bf16 %v3651_v50  ;;  %v3638_v57 = vunpack.i.h.bf16 %v3636_v40  ;;  %v3637_v55 = vunpack.i.l.bf16 %v3636_v40  ;;  %vm5863_vm3 = vmmov %vm5860_vm2 }
 0x89b   :  { %3175 = vmatpush1.bf16.msk.msra.mxu0 %vm5811_vm0, %v3174_v32  ;;  %vm5864_vm5 = vmmov %vm5860_vm2 }
 0x89c   :  { %3202 = vmatprep.subr.msk.bf16.mxu1 %vm5861_vm6, %v3201_v59  ;;  %v1067_v10 = vsel %vm5862_vm10, %v3653_v20, %v3652_v36  ;;  %v1027_v45 = vsel %vm5863_vm3, %v3638_v57, %v3643_v0  ;;  %v1028_v7 = vsel %vm5864_vm5, %v3637_v55, %v3638_v57  ;;  %vm5865_vm4 = vmmov %vm5860_vm2  ;;  %vm5869_vm5 = vnez %v5757_v39  ;;  %v1084_v59 = vpop.permute.xlu1 %1083 }
 0x89d   :  { %v1029_v43 = vsel %vm5865_vm4, %v3642_v17, %v3637_v55  ;;  %3205 = vmatpush1.bf16.msk.msra.mxu1 %vm4279_vm1, %v3204_v49  ;;  %v3210_v27 = vpack.c.bf16 %v1027_v45, %v4679_v38  ;;  %v3177_v2 = vpack.c.bf16 %v1028_v7, %v4677_v47  ;;  %v3646_v28 = vpop.permute.xlu0 %3645  ;;  %v3213_v34 = vpack.c.bf16 %v4723_v5, %v1067_v10  ;;  %vm5866_vm2 = vmmov %vm5862_vm10 }
 0x89e   :  { %v3180_v3 = vpack.c.bf16 %v1029_v43, %v4675_v4  ;;  %3208 = vmatprep.subr.msk.bf16.mxu1 %vm5817_vm12, %v3207_v41  ;;  %v3648_v0 = vunpack.i.h.bf16 %v3646_v28  ;;  %v3647_v25 = vunpack.i.l.bf16 %v3646_v28  ;;  %vm5867_vm10 = vmmov %vm5866_vm2  ;;  %vm5870_vm4 = vnez %v5760_v44  ;;  %v3008_v41 = vld [vmem:[%s5637_s4 + $0x8] sm:$0xf] }
 0x89f   :  { %3178 = vmatprep.subr.msk.bf16.mxu0 %vm4298_vm15, %v3177_v2  ;;  %vm5868_vm3 = vmmov %vm5866_vm2  ;;  %v5880_v10 = vmov 0  }
 0x8a0   :  { %v1068_v17 = vsel %vm5866_vm2, %v3648_v0, %v3653_v20  ;;  %v1069_v38 = vsel %vm5867_vm10, %v3647_v25, %v3648_v0  ;;  %v1070_v4 = vsel %vm5868_vm3, %v3652_v36, %v3647_v25  ;;  %3181 = vmatpush1.bf16.msk.msra.mxu0 %vm4315_vm9, %v3180_v3  ;;  %vm5871_vm2 = vcmp.lt.s32.totalorder %v4053_v52, 127 }
 0x8a1   :  { %3211 = vmatpush1.bf16.msk.msra.mxu1 %vm4326_vm8, %v3210_v27  ;;  %v3216_v47 = vpack.c.bf16 %v4728_v6, %v1068_v17  ;;  %v3183_v5 = vpack.c.bf16 %v4737_v33, %v1069_v38  ;;  %v3186_v54 = vpack.c.bf16 %v4742_v37, %v1070_v4  ;;  %v3656_v11 = vpop.permute.xlu0 %3655  ;;  %vm5872_vm10 = vmmov %vm5871_vm2  ;;  %v5873_v33 = vmov 0.0   ;;  %v3012_v38 = vld [vmem:[%s5636_s3 + $0x18] sm:$0xff] }
 0x8a2   :  { %3214 = vmatprep.subr.msk.bf16.mxu1 %vm5869_vm5, %v3213_v34  ;;  %v3658_v16 = vunpack.i.h.bf16 %v3656_v11  ;;  %v3657_v32 = vunpack.i.l.bf16 %v3656_v11  ;;  %vm5874_vm3 = vmmov %vm5871_vm2 }
 0x8a3   :  { %3184 = vmatprep.subr.msk.bf16.mxu0 %vm5870_vm4, %v3183_v5  ;;  %vm5875_vm4 = vmmov %vm5871_vm2 }
 0x8a4   :  { %v1092_v49 = vsel %vm5871_vm2, %v3657_v32, %v3658_v16  ;;  %v1093_v6 = vsel %vm5872_vm10, %v1084_v59, %v3657_v32  ;;  %3187 = vmatpush1.bf16.msk.msra.mxu0 %vm5823_vm7, %v3186_v54  ;;  %vm5876_vm2 = vnez %v5775_v63  ;;  %vm5877_vm10 = vnez %v5779_v12 }
 0x8a5   :  { %3217 = vmatpush1.bf16.msk.msra.mxu1 %vm5824_vm13, %v3216_v47  ;;  %v3189_v37 = vpack.c.bf16 %v5873_v33, %v1092_v49  ;;  %v3192_v50 = vpack.c.bf16 %v5873_v33, %v1093_v6  ;;  %v1090_v40 = vpop.permute.xlu0 %1089 }
 0x8a6   :  { %v1091_v20 = vsel %vm5874_vm3, %v3658_v16, %v1090_v40  ;;  %v1094_v36 = vsel %vm5875_vm4, %v1090_v40, %v1084_v59  ;;  %vm5878_vm3 = vnez %v5782_v18  ;;  %vm5879_vm4 = vcmask 654336  }
 0x8a7   :  { %v3219_v57 = vpack.c.bf16 %v5873_v33, %v1094_v36  ;;  %v3222_v55 = vpack.c.bf16 %v5873_v33, %v1091_v20  ;;  %3190 = vmatprep.subr.msk.bf16.mxu0 %vm4392_vm11, %v3189_v37  ;;  %vm5881_vm13 = vmmov %vm5879_vm4  ;;  %v3011_v20 = vld [vmem:[%s5635_s2 + $0x18] sm:$0xff]  ;;  %vm5887_vm11 = vnez %v5706_v58 }
 0x8a8   :  { %3193 = vmatpush1.bf16.msk.msra.mxu0 %vm5876_vm2, %v3192_v50  ;;  %vm5886_vm2 = vnez %v5708_v9 }
 0x8a9   :  { %3220 = vmatprep.subr.msk.bf16.mxu1 %vm5877_vm10, %v3219_v57 }
 0x8aa   :  { %3223 = vmatpush1.bf16.msk.msra.mxu1 %vm5878_vm3, %v3222_v55 }
 0x8ab   :  { %3009 = vmatmul.mubr.msk.bf16.vlgmr.msra.gmra.mrb[8].mxu0 %vm5879_vm4, %v3008_v41 }
 0x8ac   :  { %1489 = vmatprep.mubr.bf16.mxu0 %v5880_v10 }
 0x8ad   :  { %3010 = vmatmul.mubr.msk.bf16.vlgmr.msra.gmra.mrb[8].mxu1 %vm5881_vm13, %v3008_v41  ;;  %vm5882_vm13 = vcmp.lt.s32.totalorder %v4053_v52, 16 }
 0x8ae   :  { %1530 = vmatprep.mubr.bf16.mxu1 %v5880_v10  ;;  %vm5883_vm4 = vmmov %vm5882_vm13 }
 0x8af   :  { %vm5884_vm3 = vmmov %vm5883_vm4 }
 0x8b0   :  { %vm5885_vm10 = vmmov %vm5884_vm3 }
 0x97e   :  { %v1164_v45 = vpop.f32.mrb[8].mxu0 }
 0x97f   :  { %v1166_v7 = vpop.f32.mrb[9].mxu0 }
 0x980   :  { %v1216_v43 = vadd.f32 %v1166_v7, %v1164_v45  ;;  %v1168_v27 = vpop.f32.mrb[10].mxu0  ;;  %v1205_v2 = vpop.f32.mrb[8].mxu1 }
 0x981   :  { %v1169_v3 = vpop.f32.mrb[11].mxu0  ;;  %v1207_v28 = vpop.f32.mrb[9].mxu1 }
 0x982   :  { %v1217_v0 = vadd.f32 %v1216_v43, %v1205_v2  ;;  %v1209_v25 = vpop.f32.mrb[10].mxu1 }
 0x983   :  { %v1210_v34 = vpop.f32.mrb[11].mxu1 }
 0x984   :  { %v1218_v17 = vadd.f32 %v1217_v0, %v1207_v28 }
 0x986   :  { %1219 = vadd.xlane.f32.xlu1 %v1218_v17 }
 0x997   :  { %1253 = vperm.xlu1 %3432, %v3012_v38  }
 0xa13   :  { %v1220_v4 = vpop.xlane.xlu1 %1219 }
 0xa14   :  { %v1221_v47 = vmul.f32 0.001953125, %v1220_v4 }
 0xa16   :  { %v1222_v5 = vsub.f32 %v1164_v45, %v1221_v47  ;;  %v1223_v54 = vsub.f32 %v1166_v7, %v1221_v47  ;;  %v1224_v11 = vsub.f32 %v1205_v2, %v1221_v47  ;;  %v1225_v16 = vsub.f32 %v1207_v28, %v1221_v47 }
 0xa17   :  { %v1254_v34 = vpop.permute.xlu1 %1253 }
 0xa18   :  { %v1226_v32 = vmul.f32 %v1222_v5, %v1222_v5  ;;  %v1227_v59 = vmul.f32 %v1223_v54, %v1223_v54  ;;  %v1228_v49 = vmul.f32 %v1224_v11, %v1224_v11  ;;  %v1229_v37 = vmul.f32 %v1225_v16, %v1225_v16 }
 0xa1a   :  { %v1230_v6 = vadd.f32 %v1227_v59, %v1226_v32 }
 0xa1c   :  { %v1231_v50 = vadd.f32 %v1230_v6, %v1228_v49 }
 0xa1e   :  { %v1232_v40 = vadd.f32 %v1231_v50, %v1229_v37 }
 0xa20   :  { %1233 = vadd.xlane.f32.xlu0 %v1232_v40 }
 0xa36   :  { %1244 = vperm.xlu0 %3508, %v3011_v20  }
 0xaad   :  { %v1234_v36 = vpop.xlane.xlu0 %1233 }
 0xaae   :  { %v1235_v57 = vmul.f32 0.001953125, %v1234_v36 }
 0xab0   :  { %v1236_v55 = vadd.f32 1e-05, %v1235_v57 }
 0xab2   :  { %3890 = vrsqrt.f32 %v1236_v55 }
 0xab5   :  { %v1245_v2 = vpop.permute.xlu0 %1244 }
 0xabc   :  { %v3891_v41 = vpop.eup %3890 }
 0xabd   :  { %v1238_v45 = vmul.f32 %v3891_v41, %v1222_v5  ;;  %v1239_v7 = vmul.f32 %v3891_v41, %v1223_v54  ;;  %v1240_v43 = vmul.f32 %v3891_v41, %v1224_v11  ;;  %v1241_v27 = vmul.f32 %v3891_v41, %v1225_v16 }
 0xabf   :  { %v1247_v3 = vmul.f32 %v1245_v2, %v1238_v45  ;;  %v1248_v28 = vmul.f32 %v1245_v2, %v1239_v7  ;;  %v1249_v0 = vmul.f32 %v1245_v2, %v1240_v43  ;;  %v1250_v25 = vmul.f32 %v1245_v2, %v1241_v27 }
 0xac1   :  { %v1256_v17 = vadd.f32 %v1254_v34, %v1247_v3  ;;  %v1257_v38 = vadd.f32 %v1254_v34, %v1248_v28  ;;  %v1258_v4 = vadd.f32 %v1254_v34, %v1249_v0  ;;  %v1259_v47 = vadd.f32 %v1254_v34, %v1250_v25 }
 0xac3   :  { %v4872_v32 = vmax.f32 %v1256_v17, 0.0  ;;  %v4874_v59 = vmax.f32 %v1257_v38, 0.0  ;;  %v4876_v49 = vmax.f32 %v1258_v4, 0.0  ;;  %v4878_v5 = vmax.f32 %v1259_v47, 0.0 }
 0xac5   :  { %v3664_v54 = vpack.i.bf16 %v4876_v49, %v4874_v59  ;;  %v3659_v11 = vpack.i.bf16 %v4878_v5, %v4872_v32  ;;  %v3679_v16 = vpack.i.bf16 %v4874_v59, %v4872_v32  ;;  %v3694_v34 = vpack.i.bf16 %v4876_v49, %v4878_v5 }
 0xac7   :  { %3665 = vrot.lane.b32.xlu0 %v3664_v54, %s3927_s24  ;;  %3660 = vrot.lane.b32.xlu1 %v3659_v11, %s3927_s24 }
 0xacb   :  { %3675 = vrot.lane.b32.xlu0 %v3659_v11, %s3928_s25  ;;  %3670 = vrot.lane.b32.xlu1 %v3664_v54, %s3928_s25 }
 0xacf   :  { %3680 = vrot.lane.b32.xlu0 %v3679_v16, %s3929_s26 }
 0xb39   :  { %v3666_v6 = vpop.permute.xlu0 %3665  ;;  %v3661_v37 = vpop.permute.xlu1 %3660 }
 0xb3a   :  { %v3668_v50 = vunpack.i.h.bf16 %v3666_v6  ;;  %v3667_v40 = vunpack.i.l.bf16 %v3666_v6  ;;  %v3663_v20 = vunpack.i.h.bf16 %v3661_v37  ;;  %v3662_v36 = vunpack.i.l.bf16 %v3661_v37 }
 0xb3c   :  { %v4893_v57 = vsel %vm5882_vm13, %v3668_v50, %v3663_v20  ;;  %v4897_v55 = vsel %vm5883_vm4, %v3667_v40, %v3668_v50  ;;  %v1276_v41 = vsel %vm5884_vm3, %v3662_v36, %v3667_v40  ;;  %v4903_v45 = vsel %vm5885_vm10, %v3663_v20, %v3662_v36 }
 0xb3d   :  { %v1280_v7 = vsel %vm5886_vm2, %v4897_v55, 0.0  ;;  %v1278_v43 = vsel %vm5887_vm11, %v4903_v45, 0.0  ;;  %v3676_v27 = vpop.permute.xlu0 %3675  ;;  %v3671_v25 = vpop.permute.xlu1 %3670  ;;  %vm5888_vm10 = vcmp.lt.s32.totalorder %v4053_v52, 112  ;;  %vm5890_vm13 = vcmp.lt.s32.totalorder %v4089_v13, 256 }
 0xb3e   :  { %v3689_v2 = vpack.i.bf16 %v1280_v7, %v4893_v57  ;;  %v3684_v3 = vpack.i.bf16 %v1276_v41, %v1278_v43  ;;  %v3678_v28 = vunpack.i.h.bf16 %v3676_v27  ;;  %v3677_v0 = vunpack.i.l.bf16 %v3676_v27  ;;  %vm5889_vm3 = vmmov %vm5888_vm10 }
 0xb3f   :  { %v3699_v17 = vpack.i.bf16 %v1280_v7, %v1276_v41  ;;  %v3673_v38 = vunpack.i.h.bf16 %v3671_v25  ;;  %v3672_v4 = vunpack.i.l.bf16 %v3671_v25  ;;  %v3704_v16 = vpack.i.bf16 %v4893_v57, %v1278_v43  ;;  %vm5891_vm4 = vmmov %vm5889_vm3 }
 0xb40   :  { %3690 = vrot.lane.b32.xlu0 %v3689_v2, %s3929_s26  ;;  %3685 = vrot.lane.b32.xlu1 %v3684_v3, %s3929_s26  ;;  %v4920_v47 = vsel %vm5888_vm10, %v3678_v28, %v3677_v0  ;;  %vm5892_vm10 = vmmov %vm5889_vm3  ;;  %vm5902_vm11 = vnez %v5720_v1  ;;  %vm5903_vm2 = vnez %v5724_v21 }
 0xb41   :  { %v4925_v6 = vsel %vm5889_vm3, %v3673_v38, %v3678_v28  ;;  %v1385_v37 = vsel %vm5890_vm13, %v4920_v47, 0.0  ;;  %v4934_v50 = vsel %vm5891_vm4, %v3672_v4, %v3673_v38  ;;  %v4939_v20 = vsel %vm5892_vm10, %v3677_v0, %v3672_v4  ;;  %v3681_v43 = vpop.permute.xlu0 %3680 }
 0xb42   :  { %v3724_v40 = vpack.i.bf16 %v4925_v6, %v1385_v37  ;;  %vm5893_vm3 = vcmp.lt.s32.totalorder %v4120_v30, 256  ;;  %v3683_v25 = vunpack.i.h.bf16 %v3681_v43  ;;  %vm5894_vm13 = vcmp.lt.s32.totalorder %v4053_v52, 1 }
 0xb43   :  { %v1383_v36 = vsel %vm5893_vm3, %v4934_v50, 0.0  ;;  %vm5895_vm4 = vmmov %vm5894_vm13 }
 0xb44   :  { %3695 = vrot.lane.b32.xlu0 %v3694_v34, %s3929_s26  ;;  %3700 = vrot.lane.b32.xlu1 %v3699_v17, %s3930_s27  ;;  %v3729_v7 = vpack.i.bf16 %v4925_v6, %v1383_v36  ;;  %v3682_v34 = vunpack.i.l.bf16 %v3681_v43  ;;  %vm5896_vm10 = vmmov %vm5895_vm4 }
 0xb45   :  { %vm5897_vm3 = vmmov %vm5895_vm4 }
 0xb48   :  { %3715 = vrot.lane.b32.xlu0 %v3659_v11, %s3930_s27  ;;  %3705 = vrot.lane.b32.xlu1 %v3704_v16, %s3930_s27  ;;  %v3719_v11 = vpack.i.bf16 %v1383_v36, %v4939_v20 }
 0xb4c   :  { %3725 = vrot.lane.b32.xlu0 %v3724_v40, %s3929_s26  ;;  %3710 = vrot.lane.b32.xlu1 %v3664_v54, %s3930_s27 }
 0xb50   :  { %1410 = vrot.lane.b32.xlu0 %v4939_v20, %s3930_s27  ;;  %3720 = vrot.lane.b32.xlu1 %v3719_v11, %s3929_s26 }
 0xb54   :  { %3730 = vrot.lane.b32.xlu1 %v3729_v7, %s3930_s27 }
 0xb58   :  { %1416 = vrot.lane.b32.xlu1 %v1385_v37, %s3930_s27 }
 0xbb2   :  { %v3691_v27 = vpop.permute.xlu0 %3690  ;;  %v3686_v2 = vpop.permute.xlu1 %3685 }
 0xbb3   :  { %v3693_v3 = vunpack.i.h.bf16 %v3691_v27  ;;  %v3692_v28 = vunpack.i.l.bf16 %v3691_v27  ;;  %v3688_v0 = vunpack.i.h.bf16 %v3686_v2  ;;  %v3687_v54 = vunpack.i.l.bf16 %v3686_v2 }
 0xbb5   :  { %v1290_v17 = vsel %vm5894_vm13, %v3693_v3, %v3692_v28  ;;  %v1291_v38 = vsel %vm5895_vm4, %v3688_v0, %v3693_v3  ;;  %v1292_v4 = vsel %vm5896_vm10, %v3687_v54, %v3688_v0  ;;  %v1293_v16 = vsel %vm5897_vm3, %v3692_v28, %v3687_v54  ;;  %vm5900_vm10 = vmmov %vm5897_vm3 }
 0xbb6   :  { %v3255_v37 = vpack.c.bf16 %v4893_v57, %v1290_v17  ;;  %v3258_v40 = vpack.c.bf16 %v4897_v55, %v1291_v38  ;;  %v3225_v36 = vpack.c.bf16 %v1276_v41, %v1292_v4  ;;  %v3228_v11 = vpack.c.bf16 %v4903_v45, %v1293_v16  ;;  %v3696_v7 = vpop.permute.xlu0 %3695  ;;  %v3701_v43 = vpop.permute.xlu1 %3700 }
 0xbb7   :  { %v3703_v27 = vunpack.i.h.bf16 %v3701_v43  ;;  %v3702_v2 = vunpack.i.l.bf16 %v3701_v43  ;;  %v3698_v10 = vunpack.i.h.bf16 %v3696_v7  ;;  %v3697_v29 = vunpack.i.l.bf16 %v3696_v7 }
 0xbb8   :  { %vm5898_vm13 = vnez %v5712_v53  ;;  %vm5899_vm4 = vnez %v5722_v15  ;;  %v1332_v57 = vsel %vm5900_vm10, %v3682_v34, %v3683_v25  ;;  %vm5901_vm3 = vcmp.lt.s32.totalorder %v4053_v52, 127 }
 0xbb9   :  { %3226 = vmatprep.subr.msk.bf16.mxu0 %vm5898_vm13, %v3225_v36  ;;  %3256 = vmatprep.subr.msk.bf16.mxu1 %vm5899_vm4, %v3255_v37  ;;  %v1315_v55 = vsel %vm5901_vm3, %v3702_v2, %v3703_v27  ;;  %vm5904_vm4 = vmmov %vm5900_vm10 }
 0xbba   :  { %3229 = vmatpush1.bf16.msk.msra.mxu0 %vm5902_vm11, %v3228_v11  ;;  %v3231_v41 = vpack.c.bf16 %v1332_v57, %v1315_v55  ;;  %3259 = vmatpush1.bf16.msk.msra.mxu1 %vm5903_vm2, %v3258_v40  ;;  %v3716_v45 = vpop.permute.xlu0 %3715  ;;  %v3706_v3 = vpop.permute.xlu1 %3705  ;;  %v1331_v38 = vsel %vm5904_vm4, %v3683_v25, %v3698_v10  ;;  %vm5905_vm10 = vmmov %vm5904_vm4  ;;  %vm5907_vm2 = vcmp.lt.s32.totalorder %v4053_v52, 127 }
 0xbbb   :  { %v3718_v28 = vunpack.i.h.bf16 %v3716_v45  ;;  %v3717_v0 = vunpack.i.l.bf16 %v3716_v45  ;;  %v3708_v54 = vunpack.i.h.bf16 %v3706_v3  ;;  %v3707_v17 = vunpack.i.l.bf16 %v3706_v3  ;;  %vm5906_vm3 = vmmov %vm5904_vm4 }
 0xbbc   :  { %v1330_v4 = vsel %vm5905_vm10, %v3698_v10, %v3697_v29  ;;  %v1333_v16 = vsel %vm5906_vm3, %v3697_v29, %v3682_v34  ;;  %3232 = vmatprep.subr.msk.bf16.mxu0 %vm5805_vm14, %v3231_v41  ;;  %vm5908_vm11 = vmmov %vm5907_vm2 }
 0xbbd   :  { %v1357_v37 = vsel %vm5907_vm2, %v3718_v28, %v3717_v0  ;;  %v1314_v40 = vsel %vm5908_vm11, %v3703_v27, %v3708_v54  ;;  %vm5909_vm13 = vmmov %vm5907_vm2 }
 0xbbe   :  { %v1316_v36 = vsel %vm5909_vm13, %v3707_v17, %v3702_v2  ;;  %vm5910_vm4 = vmmov %vm5907_vm2  ;;  %v3264_v7 = vpack.c.bf16 %v1331_v38, %v1314_v40  ;;  %v3726_v43 = vpop.permute.xlu0 %3725  ;;  %v3711_v29 = vpop.permute.xlu1 %3710  ;;  %v3267_v45 = vpack.c.bf16 %v1357_v37, %v4878_v5 }
 0xbbf   :  { %v1317_v25 = vsel %vm5910_vm4, %v3708_v54, %v3707_v17  ;;  %v3234_v11 = vpack.c.bf16 %v1333_v16, %v1316_v36  ;;  %v3728_v34 = vunpack.i.h.bf16 %v3726_v43  ;;  %v3727_v57 = vunpack.i.l.bf16 %v3726_v43  ;;  %vm5911_vm11 = vmmov %vm5906_vm3 }
 0xbc0   :  { %v3261_v10 = vpack.c.bf16 %v1330_v4, %v1317_v25  ;;  %v3713_v55 = vunpack.i.h.bf16 %v3711_v29  ;;  %v3712_v41 = vunpack.i.l.bf16 %v3711_v29  ;;  %vm5912_vm13 = vmmov %vm5907_vm2 }
 0xbc1   :  { %3235 = vmatpush1.bf16.msk.msra.mxu0 %vm5811_vm0, %v3234_v11  ;;  %v1394_v27 = vsel %vm5911_vm11, %v3728_v34, %v3727_v57  ;;  %vm5913_vm10 = vmmov %vm5907_vm2 }
 0xbc2   :  { %3262 = vmatprep.subr.msk.bf16.mxu1 %vm5861_vm6, %v3261_v10  ;;  %v1354_v2 = vsel %vm5907_vm2, %v3713_v55, %v3718_v28  ;;  %v1355_v3 = vsel %vm5912_vm13, %v3712_v41, %v3713_v55  ;;  %v1356_v54 = vsel %vm5913_vm10, %v3717_v0, %v3712_v41  ;;  %v3721_v4 = vpop.permute.xlu1 %3720  ;;  %v3273_v37 = vpack.c.bf16 %v4920_v47, %v1394_v27  ;;  %vm5914_vm4 = vmmov %vm5906_vm3  ;;  %v1411_v10 = vpop.permute.xlu0 %1410  ;;  %v3013_v41 = vld [vmem:[%s5637_s4 + $0xc] sm:$0xf] }
 0xbc3   :  { %3265 = vmatpush1.bf16.msk.msra.mxu1 %vm4279_vm1, %v3264_v7  ;;  %v3270_v5 = vpack.c.bf16 %v1354_v2, %v4876_v49  ;;  %v3237_v17 = vpack.c.bf16 %v1355_v3, %v4874_v59  ;;  %v3240_v38 = vpack.c.bf16 %v1356_v54, %v4872_v32  ;;  %v3723_v28 = vunpack.i.h.bf16 %v3721_v4  ;;  %vm5915_vm11 = vmmov %vm5906_vm3 }
 0xbc4   :  { %3268 = vmatprep.subr.msk.bf16.mxu1 %vm5817_vm12, %v3267_v45  ;;  %v3722_v16 = vunpack.i.l.bf16 %v3721_v4  ;;  %vm5916_vm2 = vnez %v5760_v44  ;;  %vm5917_vm13 = vmmov %vm5913_vm10 }
 0xbc5   :  { %3238 = vmatprep.subr.msk.bf16.mxu0 %vm4298_vm15, %v3237_v17  ;;  %v1395_v0 = vsel %vm5906_vm3, %v3723_v28, %v3728_v34  ;;  %vm5918_vm3 = vnez %v5767_v48 }
 0xbc6   :  { %v1396_v49 = vsel %vm5914_vm4, %v3722_v16, %v3723_v28  ;;  %v1397_v32 = vsel %vm5915_vm11, %v3727_v57, %v3722_v16  ;;  %3241 = vmatpush1.bf16.msk.msra.mxu0 %vm4315_vm9, %v3240_v38  ;;  %v3276_v59 = vpack.c.bf16 %v4925_v6, %v1395_v0  ;;  %v3731_v36 = vpop.permute.xlu1 %3730  ;;  %vm5919_vm4 = vmmov %vm5913_vm10 }
 0xbc7   :  { %3271 = vmatpush1.bf16.msk.msra.mxu1 %vm4326_vm8, %v3270_v5  ;;  %v3243_v47 = vpack.c.bf16 %v4934_v50, %v1396_v49  ;;  %v3246_v40 = vpack.c.bf16 %v4939_v20, %v1397_v32  ;;  %v3733_v25 = vunpack.i.h.bf16 %v3731_v36  ;;  %v3732_v11 = vunpack.i.l.bf16 %v3731_v36  ;;  %vm5920_vm11 = vmmov %vm5919_vm4 }
 0xbc8   :  { %3274 = vmatprep.subr.msk.bf16.mxu1 %vm5869_vm5, %v3273_v37 }
 0xbc9   :  { %3244 = vmatprep.subr.msk.bf16.mxu0 %vm5916_vm2, %v3243_v47  ;;  %v1419_v7 = vsel %vm5917_vm13, %v3732_v11, %v3733_v25  ;;  %v1420_v6 = vsel %vm5913_vm10, %v1411_v10, %v3732_v11  ;;  %vm5921_vm13 = vnez %v5772_v22  ;;  %vm5922_vm10 = vnez %v5775_v63 }
 0xbca   :  { %3247 = vmatpush1.bf16.msk.msra.mxu0 %vm5823_vm7, %v3246_v40  ;;  %v3249_v50 = vpack.c.bf16 %v5873_v33, %v1419_v7  ;;  %v3252_v20 = vpack.c.bf16 %v5873_v33, %v1420_v6  ;;  %v1417_v43 = vpop.permute.xlu1 %1416 }
 0xbcb   :  { %3277 = vmatpush1.bf16.msk.msra.mxu1 %vm5918_vm3, %v3276_v59  ;;  %v1418_v29 = vsel %vm5919_vm4, %v3733_v25, %v1417_v43  ;;  %v1421_v34 = vsel %vm5920_vm11, %v1417_v43, %v1411_v10  ;;  %vm5923_vm3 = vnez %v5779_v12  ;;  %vm5924_vm4 = vnez %v5782_v18 }
 0xbcc   :  { %v3279_v57 = vpack.c.bf16 %v5873_v33, %v1421_v34  ;;  %v3282_v55 = vpack.c.bf16 %v5873_v33, %v1418_v29  ;;  %3250 = vmatprep.subr.msk.bf16.mxu0 %vm5921_vm13, %v3249_v50  ;;  %vm5925_vm11 = vcmask 654336   ;;  %vm5953_vm13 = vnez %v5724_v21 }
 0xbcd   :  { %vm5926_vm7 = vmmov %vm5925_vm11 }
 0xbce   :  { %3253 = vmatpush1.bf16.msk.msra.mxu0 %vm5922_vm10, %v3252_v20  ;;  %3280 = vmatprep.subr.msk.bf16.mxu1 %vm5923_vm3, %v3279_v57  ;;  %v3024_v20 = vld [vmem:[%s5636_s3 + $0x20] sm:$0xff]  ;;  %vm5934_vm10 = vnez %v5708_v9 }
 0xbcf   :  { %3283 = vmatpush1.bf16.msk.msra.mxu1 %vm5924_vm4, %v3282_v55 }
 0xbd1   :  { %3014 = vmatmul.mubr.msk.bf16.vlgmr.msra.gmra.mrb[12].mxu0 %vm5925_vm11, %v3013_v41 }
 0xbd2   :  { %1661 = vmatprep.mubr.f32.mxu0 %v5873_v33  ;;  %3015 = vmatmul.mubr.msk.bf16.vlgmr.msra.gmra.mrb[12].mxu1 %vm5926_vm7, %v3013_v41  ;;  %vm5930_vm7 = vcmp.lt.s32.totalorder %v4053_v52, 16 }
 0xbd3   :  { %1732 = vmatprep.mubr.f32.mxu1 %v5873_v33  ;;  %vm5931_vm11 = vmmov %vm5930_vm7 }
 0xbd4   :  { %vm5932_vm4 = vmmov %vm5930_vm7 }
 0xbd5   :  { %vm5933_vm3 = vmmov %vm5932_vm4 }
 0xca4   :  { %v1491_v45 = vpop.f32.mrb[12].mxu0 }
 0xca5   :  { %v5064_v27 = vadd.f32 %v1491_v45, %v4638_v42  ;;  %v1493_v2 = vpop.f32.mrb[13].mxu0  ;;  %v1532_v5 = vpop.f32.mrb[12].mxu1 }
 0xca6   :  { %v5067_v3 = vadd.f32 %v1493_v2, %v4641_v56  ;;  %v1495_v54 = vpop.f32.mrb[14].mxu0  ;;  %v5070_v17 = vadd.f32 %v1532_v5, %v4644_v60  ;;  %v1534_v4 = vpop.f32.mrb[13].mxu1  ;;  %v3023_v60 = vld [vmem:[%s5635_s2 + $0x20] sm:$0xff] }
 0xca7   :  { %v1496_v38 = vpop.f32.mrb[15].mxu0  ;;  %v1536_v16 = vpop.f32.mrb[14].mxu1  ;;  %v5075_v0 = vadd.f32 %v1534_v4, %v4649_v26 }
 0xca8   :  { %5927 = vst [vmem:[#allocation8_spill] sm:$0xff] %v5067_v3  ;;  %5928 = vst [vmem:[#allocation9_spill] sm:$0xff] %v5070_v17  ;;  %v1543_v28 = vadd.f32 %v5067_v3, %v5064_v27  ;;  %v1537_v37 = vpop.f32.mrb[15].mxu1 }
 0xca9   :  { %5929 = vst [vmem:[#allocation10_spill] sm:$0xff] %v5075_v0 }
 0xcaa   :  { %v1544_v42 = vadd.f32 %v1543_v28, %v5070_v17 }
 0xcac   :  { %v1545_v56 = vadd.f32 %v1544_v42, %v5075_v0 }
 0xcae   :  { %1546 = vadd.xlane.f32.xlu0 %v1545_v56 }
 0xcc4   :  { %1890 = vperm.xlu0 %3508, %v3023_v60  }
 0xd3b   :  { %v1547_v49 = vpop.xlane.xlu0 %1546 }
 0xd3c   :  { %v1548_v32 = vmul.f32 0.001953125, %v1547_v49 }
 0xd3e   :  { %v1549_v59 = vsub.f32 %v5064_v27, %v1548_v32  ;;  %v1550_v47 = vsub.f32 %v5067_v3, %v1548_v32  ;;  %v1551_v40 = vsub.f32 %v5070_v17, %v1548_v32  ;;  %v1552_v26 = vsub.f32 %v5075_v0, %v1548_v32 }
 0xd40   :  { %v1553_v36 = vmul.f32 %v1549_v59, %v1549_v59  ;;  %v1554_v25 = vmul.f32 %v1550_v47, %v1550_v47  ;;  %v1555_v11 = vmul.f32 %v1551_v40, %v1551_v40  ;;  %v1556_v7 = vmul.f32 %v1552_v26, %v1552_v26 }
 0xd42   :  { %v1557_v10 = vadd.f32 %v1554_v25, %v1553_v36  ;;  %v3017_v36 = vld [vmem:[%s5639_s6 + $0x8] sm:$0xff] }
 0xd43   :  { %v1891_v54 = vpop.permute.xlu0 %1890  ;;  %v3016_v25 = vld [vmem:[%s5638_s5 + $0x8] sm:$0xff] }
 0xd44   :  { %v1558_v6 = vadd.f32 %v1557_v10, %v1555_v11  ;;  %v861_v11 = vld [vmem:[%s5639_s6] sm:$0xff] }
 0xd45   :  { %v860_v10 = vld [vmem:[%s5638_s5] sm:$0xff] }
 0xd46   :  { %v1559_v50 = vadd.f32 %v1558_v6, %v1556_v7 }
 0xd48   :  { %1560 = vadd.xlane.f32.xlu1 %v1559_v50 }
 0xd59   :  { %1899 = vperm.xlu1 %3432, %v3024_v20  }
 0xdd5   :  { %v1561_v43 = vpop.xlane.xlu1 %1560 }
 0xdd6   :  { %v1562_v29 = vmul.f32 0.001953125, %v1561_v43 }
 0xdd8   :  { %v1563_v34 = vadd.f32 1e-05, %v1562_v29 }
 0xdd9   :  { %v1900_v16 = vpop.permute.xlu1 %1899 }
 0xdda   :  { %3892 = vrsqrt.f32 %v1563_v34 }
 0xde4   :  { %v3893_v57 = vpop.eup %3892 }
 0xde5   :  { %v5089_v55 = vmul.f32 %v3893_v57, %v1549_v59  ;;  %v5091_v41 = vmul.f32 %v3893_v57, %v1550_v47  ;;  %v5093_v45 = vmul.f32 %v3893_v57, %v1551_v40  ;;  %v5095_v2 = vmul.f32 %v3893_v57, %v1552_v26 }
 0xde7   :  { %v1893_v5 = vmul.f32 %v1891_v54, %v5089_v55  ;;  %v1894_v38 = vmul.f32 %v1891_v54, %v5091_v41  ;;  %v1895_v4 = vmul.f32 %v1891_v54, %v5093_v45  ;;  %v1896_v28 = vmul.f32 %v1891_v54, %v5095_v2 }
 0xde9   :  { %v1902_v37 = vadd.f32 %v1900_v16, %v1893_v5  ;;  %v1903_v42 = vadd.f32 %v1900_v16, %v1894_v38  ;;  %v1904_v56 = vadd.f32 %v1900_v16, %v1895_v4  ;;  %v1905_v60 = vadd.f32 %v1900_v16, %v1896_v28 }
 0xdeb   :  { %v5101_v49 = vmax.f32 %v1902_v37, 0.0  ;;  %v5103_v32 = vmax.f32 %v1903_v42, 0.0  ;;  %v5105_v59 = vmax.f32 %v1904_v56, 0.0  ;;  %v5107_v47 = vmax.f32 %v1905_v60, 0.0 }
 0xded   :  { %v3739_v40 = vpack.i.bf16 %v5105_v59, %v5103_v32  ;;  %v3734_v26 = vpack.i.bf16 %v5107_v47, %v5101_v49  ;;  %v3754_v7 = vpack.i.bf16 %v5103_v32, %v5101_v49 }
 0xdef   :  { %3740 = vrot.lane.b32.xlu1 %v3739_v40, %s3927_s24  ;;  %3735 = vrot.lane.b32.xlu0 %v3734_v26, %s3927_s24 }
 0xdf3   :  { %3750 = vrot.lane.b32.xlu1 %v3734_v26, %s3928_s25  ;;  %3745 = vrot.lane.b32.xlu0 %v3739_v40, %s3928_s25 }
 0xdf7   :  { %1580 = vperm.xlu1 %3432, %v3017_v36   ;;  %1571 = vperm.xlu0 %3508, %v3016_v25   ;;  %v3769_v25 = vpack.i.bf16 %v5105_v59, %v5107_v47 }
 0xdfb   :  { %899 = vperm.xlu1 %3432, %v861_v11   ;;  %890 = vperm.xlu0 %3508, %v860_v10  }
 0xdff   :  { %3755 = vrot.lane.b32.xlu1 %v3754_v7, %s3929_s26 }
 0xe61   :  { %v3741_v6 = vpop.permute.xlu1 %3740  ;;  %v3736_v50 = vpop.permute.xlu0 %3735 }
 0xe62   :  { %v3743_v20 = vunpack.i.h.bf16 %v3741_v6  ;;  %v3742_v43 = vunpack.i.l.bf16 %v3741_v6  ;;  %v3738_v29 = vunpack.i.h.bf16 %v3736_v50  ;;  %v3737_v34 = vunpack.i.l.bf16 %v3736_v50 }
 0xe64   :  { %v5134_v57 = vsel %vm5930_vm7, %v3742_v43, %v3743_v20  ;;  %v5138_v54 = vsel %vm5931_vm11, %v3743_v20, %v3738_v29  ;;  %v5142_v5 = vsel %vm5932_vm4, %v3737_v34, %v3742_v43  ;;  %v5146_v38 = vsel %vm5933_vm3, %v3738_v29, %v3737_v34 }
 0xe65   :  { %v1926_v4 = vsel %vm5934_vm10, %v5134_v57, 0.0  ;;  %vm5935_vm7 = vnez %v5706_v58  ;;  %v3751_v16 = vpop.permute.xlu1 %3750  ;;  %v3746_v36 = vpop.permute.xlu0 %3745  ;;  %vm5936_vm3 = vcmp.lt.s32.totalorder %v4053_v52, 112  ;;  %vm5937_vm4 = vcmp.lt.s32.totalorder %v4089_v13, 256 }
 0xe66   :  { %v1924_v28 = vsel %vm5935_vm7, %v5146_v38, 0.0  ;;  %v3764_v37 = vpack.i.bf16 %v1926_v4, %v5138_v54  ;;  %v3753_v56 = vunpack.i.h.bf16 %v3751_v16  ;;  %v3752_v60 = vunpack.i.l.bf16 %v3751_v16  ;;  %vm5938_vm11 = vmmov %vm5936_vm3 }
 0xe67   :  { %v3759_v42 = vpack.i.bf16 %v5142_v5, %v1924_v28  ;;  %v3774_v11 = vpack.i.bf16 %v1926_v4, %v5142_v5  ;;  %v3748_v10 = vunpack.i.h.bf16 %v3746_v36  ;;  %v3747_v7 = vunpack.i.l.bf16 %v3746_v36  ;;  %vm5939_vm7 = vmmov %vm5936_vm3 }
 0xe68   :  { %3765 = vrot.lane.b32.xlu1 %v3764_v37, %s3929_s26  ;;  %v5163_v6 = vsel %vm5936_vm3, %v3753_v56, %v3752_v60  ;;  %v3779_v50 = vpack.i.bf16 %v5138_v54, %v1924_v28  ;;  %vm5952_vm10 = vnez %v5720_v1 }
 0xe69   :  { %3760 = vrot.lane.b32.xlu0 %v3759_v42, %s3929_s26  ;;  %v2031_v20 = vsel %vm5937_vm4, %v5163_v6, 0.0  ;;  %v5173_v43 = vsel %vm5938_vm11, %v3748_v10, %v3753_v56  ;;  %v5177_v29 = vsel %vm5939_vm7, %v3747_v7, %v3748_v10  ;;  %v5184_v4 = vsel %vm5936_vm3, %v3752_v60, %v3747_v7 }
 0xe6a   :  { %v3799_v34 = vpack.i.bf16 %v5173_v43, %v2031_v20  ;;  %vm5940_vm4 = vcmp.lt.s32.totalorder %v4120_v30, 256  ;;  %vm5704_vm7 = vcmask 64512   ;;  %vm5944_vm11 = vcmp.lt.s32.totalorder %v4053_v52, 1 }
 0xe6b   :  { %v2029_v28 = vsel %vm5940_vm4, %v5177_v29, 0.0  ;;  %vm5945_vm3 = vmmov %vm5944_vm11 }
 0xe6c   :  { %3770 = vrot.lane.b32.xlu1 %v3769_v25, %s3929_s26  ;;  %v3804_v7 = vpack.i.bf16 %v5173_v43, %v2029_v28  ;;  %vm5946_vm4 = vmmov %vm5945_vm3 }
 0xe6d   :  { %3775 = vrot.lane.b32.xlu0 %v3774_v11, %s3930_s27 }
 0xe70   :  { %3790 = vrot.lane.b32.xlu1 %v3734_v26, %s3930_s27  ;;  %v3794_v26 = vpack.i.bf16 %v2029_v28, %v5184_v4 }
 0xe71   :  { %3780 = vrot.lane.b32.xlu0 %v3779_v50, %s3930_s27 }
 0xe74   :  { %3800 = vrot.lane.b32.xlu1 %v3799_v34, %s3929_s26 }
 0xe75   :  { %3785 = vrot.lane.b32.xlu0 %v3739_v40, %s3930_s27 }
 0xe76   :  { %v1581_v16 = vpop.permute.xlu1 %1580  ;;  %v1572_v37 = vpop.permute.xlu0 %1571 }
 0xe77   :  { %v1574_v42 = vmul.f32 %v1572_v37, %v5089_v55  ;;  %v1575_v56 = vmul.f32 %v1572_v37, %v5091_v41  ;;  %v1576_v36 = vmul.f32 %v1572_v37, %v5093_v45  ;;  %v1577_v60 = vmul.f32 %v1572_v37, %v5095_v2  ;;  %v5941_v45 = vld [vmem:[#allocation6_spill] sm:$0xff]  ;;  %v5942_v2 = vld [vmem:[#allocation7_spill] sm:$0xff] }
 0xe78   :  { %2056 = vrot.lane.b32.xlu1 %v5184_v4, %s3930_s27 }
 0xe79   :  { %v1583_v25 = vadd.f32 %v1581_v16, %v1574_v42  ;;  %v1585_v11 = vadd.f32 %v1581_v16, %v1576_v36  ;;  %3795 = vrot.lane.b32.xlu0 %v3794_v26, %s3929_s26  ;;  %v1584_v40 = vadd.f32 %v1581_v16, %v1575_v56  ;;  %v1586_v50 = vadd.f32 %v1581_v16, %v1577_v60 }
 0xe7a   :  { %v891_v10 = vpop.permute.xlu0 %890  ;;  %v900_v42 = vpop.permute.xlu1 %899 }
 0xe7b   :  { %v893_v55 = vmul.f32 %v891_v10, %v4663_v31  ;;  %v894_v41 = vmul.f32 %v891_v10, %v4665_v61  ;;  %v895_v34 = vmul.f32 %v891_v10, %v5941_v45  ;;  %v896_v37 = vmul.f32 %v891_v10, %v5942_v2  ;;  %v3018_v31 = vld [vmem:[%s5640_s7 + $0x8] sm:$0xff] }
 0xe7c   :  { %v1588_v36 = vmax.f32 %v1584_v40, 0.0  ;;  %v1590_v0 = vmax.f32 %v1586_v50, 0.0  ;;  %v1587_v17 = vmax.f32 %v1583_v25, 0.0  ;;  %v1589_v3 = vmax.f32 %v1585_v11, 0.0 }
 0xe7d   :  { %v902_v26 = vadd.f32 %v900_v42, %v893_v55  ;;  %v904_v56 = vadd.f32 %v900_v42, %v895_v34  ;;  %3805 = vrot.lane.b32.xlu0 %v3804_v7, %s3930_s27  ;;  %v903_v28 = vadd.f32 %v900_v42, %v894_v41  ;;  %v905_v16 = vadd.f32 %v900_v42, %v896_v37 }
 0xe7e   :  { %1597 = vmatprep.subr.mxu0 %v1588_v36  ;;  %1668 = vmatprep.subr.mxu1 %v1590_v0  ;;  %v3756_v0 = vpop.permute.xlu1 %3755 }
 0xe7f   :  { %1598 = vmatpush1.msra.mxu0 %v1587_v17  ;;  %1669 = vmatpush1.msra.mxu1 %v1589_v3  ;;  %v907_v61 = vmax.f32 %v903_v28, 0.0  ;;  %v909_v60 = vmax.f32 %v905_v16, 0.0  ;;  %v906_v25 = vmax.f32 %v902_v26, 0.0  ;;  %v908_v11 = vmax.f32 %v904_v56, 0.0  ;;  %v910_v3 = vld [vmem:[%s5640_s7] sm:$0xff] }
 0xe80   :  { %3019 = vmatmul.mubr.msk.f32.vlgmr.msra.gmra.mrb[16].mxu0 %vm5704_vm7, %v3018_v31  ;;  %3020 = vmatmul.mubr.msk.f32.vlgmr.msra.gmra.mrb[16].mxu1 %vm5704_vm7, %v3018_v31  ;;  %v5943_v17 = vmov 0   ;;  %v3758_v41 = vunpack.i.h.bf16 %v3756_v0  ;;  %v3757_v45 = vunpack.i.l.bf16 %v3756_v0 }
 0xe81   :  { %2062 = vrot.lane.b32.xlu0 %v2031_v20, %s3930_s27  ;;  %1742 = vmatprep.subr.mxu0 %v907_v61 }
 0xe82   :  { %1813 = vmatprep.subr.mxu1 %v909_v60  ;;  %1743 = vmatpush1.msra.mxu0 %v906_v25 }
 0xe83   :  { %1814 = vmatpush1.msra.mxu1 %v908_v11  ;;  %1806 = vmatprep.mubr.f32.mxu0 %v5873_v33 }
 0xe84   :  { %1877 = vmatprep.mubr.f32.mxu1 %v5873_v33 }
 0xe88   :  { %3021 = vmatmul.mubr.msk.f32.vlgmr.msra.gmra.mrb[16].mxu0 %vm5704_vm7, %v910_v3  ;;  %3022 = vmatmul.mubr.msk.f32.vlgmr.msra.gmra.mrb[16].mxu1 %vm5704_vm7, %v910_v3  ;;  %vm5947_vm7 = vmmov %vm5945_vm3 }
 0xe89   :  { %2135 = vmatprep.mubr.bf16.mxu0 %v5943_v17  ;;  %2176 = vmatprep.mubr.bf16.mxu1 %v5943_v17 }
 0xeda   :  { %v3766_v20 = vpop.permute.xlu1 %3765 }
 0xedb   :  { %v3761_v40 = vpop.permute.xlu0 %3760  ;;  %v3768_v10 = vunpack.i.h.bf16 %v3766_v20  ;;  %v3767_v7 = vunpack.i.l.bf16 %v3766_v20 }
 0xedc   :  { %v3763_v50 = vunpack.i.h.bf16 %v3761_v40  ;;  %v3762_v55 = vunpack.i.l.bf16 %v3761_v40 }
 0xedd   :  { %v1936_v34 = vsel %vm5944_vm11, %v3768_v10, %v3767_v7  ;;  %vm5948_vm11 = vnez %v5712_v53 }
 0xede   :  { %v1937_v2 = vsel %vm5945_vm3, %v3763_v50, %v3768_v10  ;;  %v1938_v37 = vsel %vm5946_vm4, %v3762_v55, %v3763_v50  ;;  %v1939_v42 = vsel %vm5947_vm7, %v3767_v7, %v3762_v55  ;;  %v3315_v36 = vpack.c.bf16 %v5138_v54, %v1936_v34  ;;  %v3771_v16 = vpop.permute.xlu1 %3770  ;;  %vm5950_vm7 = vmmov %vm5946_vm4 }
 0xedf   :  { %v3318_v26 = vpack.c.bf16 %v5134_v57, %v1937_v2  ;;  %v3285_v56 = vpack.c.bf16 %v5142_v5, %v1938_v37  ;;  %v3288_v28 = vpack.c.bf16 %v5146_v38, %v1939_v42  ;;  %v3776_v31 = vpop.permute.xlu0 %3775  ;;  %v3773_v25 = vunpack.i.h.bf16 %v3771_v16 }
 0xee0   :  { %v3778_v61 = vunpack.i.h.bf16 %v3776_v31  ;;  %v3777_v60 = vunpack.i.l.bf16 %v3776_v31  ;;  %v3772_v11 = vunpack.i.l.bf16 %v3771_v16  ;;  %vm5949_vm3 = vnez %v5722_v15 }
 0xee1   :  { %3286 = vmatprep.subr.msk.bf16.mxu0 %vm5948_vm11, %v3285_v56  ;;  %3316 = vmatprep.subr.msk.bf16.mxu1 %vm5949_vm3, %v3315_v36  ;;  %v1978_v54 = vsel %vm5950_vm7, %v3757_v45, %v3758_v41  ;;  %vm5951_vm4 = vcmp.lt.s32.totalorder %v4053_v52, 127  ;;  %vm5954_vm3 = vmmov %vm5950_vm7 }
 0xee2   :  { %v1961_v57 = vsel %vm5951_vm4, %v3777_v60, %v3778_v61  ;;  %3289 = vmatpush1.bf16.msk.msra.mxu0 %vm5952_vm10, %v3288_v28  ;;  %3319 = vmatpush1.bf16.msk.msra.mxu1 %vm5953_vm13, %v3318_v26  ;;  %v3791_v38 = vpop.permute.xlu1 %3790  ;;  %v1977_v7 = vsel %vm5954_vm3, %v3758_v41, %v3773_v25  ;;  %vm5955_vm7 = vmmov %vm5954_vm3  ;;  %vm5957_vm13 = vcmp.lt.s32.totalorder %v4053_v52, 127 }
 0xee3   :  { %v3291_v5 = vpack.c.bf16 %v1978_v54, %v1961_v57  ;;  %v3781_v3 = vpop.permute.xlu0 %3780  ;;  %v3793_v0 = vunpack.i.h.bf16 %v3791_v38  ;;  %v3792_v20 = vunpack.i.l.bf16 %v3791_v38  ;;  %v1976_v50 = vsel %vm5955_vm7, %v3773_v25, %v3772_v11  ;;  %vm5956_vm4 = vmmov %vm5954_vm3 }
 0xee4   :  { %v3783_v40 = vunpack.i.h.bf16 %v3781_v3  ;;  %v3782_v10 = vunpack.i.l.bf16 %v3781_v3  ;;  %v1979_v55 = vsel %vm5956_vm4, %v3772_v11, %v3757_v45  ;;  %vm5958_vm10 = vmmov %vm5957_vm13 }
 0xee5   :  { %3292 = vmatprep.subr.msk.bf16.mxu0 %vm5805_vm14, %v3291_v5  ;;  %v2003_v34 = vsel %vm5957_vm13, %v3793_v0, %v3792_v20  ;;  %vm5959_vm11 = vmmov %vm5958_vm10 }
 0xee6   :  { %v1960_v2 = vsel %vm5958_vm10, %v3778_v61, %v3783_v40  ;;  %v1962_v37 = vsel %vm5959_vm11, %v3782_v10, %v3777_v60  ;;  %vm5960_vm3 = vmmov %vm5958_vm10  ;;  %v3801_v56 = vpop.permute.xlu1 %3800  ;;  %v3327_v11 = vpack.c.bf16 %v2003_v34, %v5107_v47 }
 0xee7   :  { %v1963_v41 = vsel %vm5960_vm3, %v3783_v40, %v3782_v10  ;;  %v3294_v42 = vpack.c.bf16 %v1979_v55, %v1962_v37  ;;  %v3324_v26 = vpack.c.bf16 %v1977_v7, %v1960_v2  ;;  %v3786_v45 = vpop.permute.xlu0 %3785  ;;  %v3803_v28 = vunpack.i.h.bf16 %v3801_v56  ;;  %vm5961_vm13 = vmmov %vm5956_vm4 }
 0xee8   :  { %v3321_v36 = vpack.c.bf16 %v1976_v50, %v1963_v41  ;;  %v3802_v16 = vunpack.i.l.bf16 %v3801_v56  ;;  %v3788_v31 = vunpack.i.h.bf16 %v3786_v45  ;;  %v3787_v25 = vunpack.i.l.bf16 %v3786_v45  ;;  %vm5962_vm10 = vmmov %vm5960_vm3  ;;  %v3025_v45 = vld [vmem:[%s5637_s4 + $0x10] sm:$0xf] }
 0xee9   :  { %3295 = vmatpush1.bf16.msk.msra.mxu0 %vm5811_vm0, %v3294_v42  ;;  %vm5963_vm11 = vmmov %vm5960_vm3 }
 0xeea   :  { %3322 = vmatprep.subr.msk.bf16.mxu1 %vm5861_vm6, %v3321_v36  ;;  %v2040_v61 = vsel %vm5961_vm13, %v3803_v28, %v3802_v16  ;;  %v2000_v60 = vsel %vm5962_vm10, %v3788_v31, %v3793_v0  ;;  %v2001_v54 = vsel %vm5963_vm11, %v3787_v25, %v3788_v31  ;;  %vm5964_vm7 = vmmov %vm5960_vm3  ;;  %v2057_v2 = vpop.permute.xlu1 %2056 }
 0xeeb   :  { %v2002_v57 = vsel %vm5964_vm7, %v3792_v20, %v3787_v25  ;;  %3325 = vmatpush1.bf16.msk.msra.mxu1 %vm4279_vm1, %v3324_v26  ;;  %v3330_v47 = vpack.c.bf16 %v2000_v60, %v5105_v59  ;;  %v3297_v5 = vpack.c.bf16 %v2001_v54, %v5103_v32  ;;  %v3796_v3 = vpop.permute.xlu0 %3795  ;;  %v3333_v10 = vpack.c.bf16 %v5163_v6, %v2040_v61  ;;  %vm5965_vm3 = vmmov %vm5956_vm4 }
 0xeec   :  { %v3300_v38 = vpack.c.bf16 %v2002_v57, %v5101_v49  ;;  %3328 = vmatprep.subr.msk.bf16.mxu1 %vm5817_vm12, %v3327_v11  ;;  %v3798_v0 = vunpack.i.h.bf16 %v3796_v3  ;;  %v3797_v40 = vunpack.i.l.bf16 %v3796_v3  ;;  %vm5966_vm13 = vmmov %vm5965_vm3 }
 0xeed   :  { %3298 = vmatprep.subr.msk.bf16.mxu0 %vm4298_vm15, %v3297_v5  ;;  %vm5967_vm10 = vmmov %vm5964_vm7 }
 0xeee   :  { %v2041_v20 = vsel %vm5956_vm4, %v3798_v0, %v3803_v28  ;;  %v2042_v59 = vsel %vm5965_vm3, %v3797_v40, %v3798_v0  ;;  %v2043_v49 = vsel %vm5966_vm13, %v3802_v16, %v3797_v40  ;;  %3301 = vmatpush1.bf16.msk.msra.mxu0 %vm4315_vm9, %v3300_v38  ;;  %vm5968_vm11 = vmmov %vm5964_vm7  ;;  %vm5969_vm7 = vnez %v5765_v23  ;;  %v3029_v38 = vld [vmem:[%s5636_s3 + $0x28] sm:$0xff] }
 0xeef   :  { %3331 = vmatpush1.bf16.msk.msra.mxu1 %vm4326_vm8, %v3330_v47  ;;  %v3336_v32 = vpack.c.bf16 %v5173_v43, %v2041_v20  ;;  %v3303_v6 = vpack.c.bf16 %v5177_v29, %v2042_v59  ;;  %v3306_v7 = vpack.c.bf16 %v5184_v4, %v2043_v49  ;;  %v3806_v50 = vpop.permute.xlu0 %3805  ;;  %vm5970_vm4 = vnez %v5767_v48  ;;  %vm5971_vm3 = vmmov %vm5967_vm10 }
 0xef0   :  { %3334 = vmatprep.subr.msk.bf16.mxu1 %vm5869_vm5, %v3333_v10  ;;  %v3808_v55 = vunpack.i.h.bf16 %v3806_v50  ;;  %v3807_v34 = vunpack.i.l.bf16 %v3806_v50  ;;  %vm5972_vm13 = vmmov %vm5971_vm3 }
 0xef1   :  { %3304 = vmatprep.subr.msk.bf16.mxu0 %vm5916_vm2, %v3303_v6 }
 0xef2   :  { %v2065_v37 = vsel %vm5967_vm10, %v3807_v34, %v3808_v55  ;;  %v2066_v43 = vsel %vm5968_vm11, %v2057_v2, %v3807_v34  ;;  %3307 = vmatpush1.bf16.msk.msra.mxu0 %vm5969_vm7, %v3306_v7  ;;  %vm5973_vm10 = vnez %v5772_v22  ;;  %vm5974_vm11 = vnez %v5775_v63  ;;  %v3028_v34 = vld [vmem:[%s5635_s2 + $0x28] sm:$0xff] }
 0xef3   :  { %3337 = vmatpush1.bf16.msk.msra.mxu1 %vm5970_vm4, %v3336_v32  ;;  %v3309_v29 = vpack.c.bf16 %v5873_v33, %v2065_v37  ;;  %v3312_v4 = vpack.c.bf16 %v5873_v33, %v2066_v43  ;;  %v2063_v41 = vpop.permute.xlu0 %2062  ;;  %vm5975_vm4 = vnez %v5779_v12 }
 0xef4   :  { %v2064_v42 = vsel %vm5971_vm3, %v3808_v55, %v2063_v41  ;;  %v2067_v36 = vsel %vm5972_vm13, %v2063_v41, %v2057_v2  ;;  %vm5976_vm3 = vnez %v5782_v18  ;;  %vm5977_vm13 = vcmask 654336  }
 0xef5   :  { %v3339_v26 = vpack.c.bf16 %v5873_v33, %v2067_v36  ;;  %v3342_v56 = vpack.c.bf16 %v5873_v33, %v2064_v42  ;;  %3310 = vmatprep.subr.msk.bf16.mxu0 %vm5973_vm10, %v3309_v29  ;;  %vm5978_vm7 = vmmov %vm5977_vm13  ;;  %vm5999_vm10 = vnez %v5724_v21 }
 0xef6   :  { %3313 = vmatpush1.bf16.msk.msra.mxu0 %vm5974_vm11, %v3312_v4  ;;  %vm5983_vm11 = vnez %v5708_v9 }
 0xef7   :  { %3340 = vmatprep.subr.msk.bf16.mxu1 %vm5975_vm4, %v3339_v26 }
 0xef8   :  { %3343 = vmatpush1.bf16.msk.msra.mxu1 %vm5976_vm3, %v3342_v56 }
 0xef9   :  { %3026 = vmatmul.mubr.msk.bf16.vlgmr.msra.gmra.mrb[20].mxu0 %vm5977_vm13, %v3025_v45 }
 0xefa   :  { %2462 = vmatprep.mubr.bf16.mxu0 %v5943_v17 }
 0xefb   :  { %3027 = vmatmul.mubr.msk.bf16.vlgmr.msra.gmra.mrb[20].mxu1 %vm5978_vm7, %v3025_v45  ;;  %vm5979_vm7 = vcmp.lt.s32.totalorder %v4053_v52, 16 }
 0xefc   :  { %2503 = vmatprep.mubr.bf16.mxu1 %v5943_v17  ;;  %vm5980_vm13 = vmmov %vm5979_vm7 }
 0xefd   :  { %vm5981_vm3 = vmmov %vm5979_vm7 }
 0xefe   :  { %vm5982_vm4 = vmmov %vm5981_vm3 }
 0xfcc   :  { %v2137_v28 = vpop.f32.mrb[20].mxu0 }
 0xfcd   :  { %v2139_v16 = vpop.f32.mrb[21].mxu0 }
 0xfce   :  { %v2189_v31 = vadd.f32 %v2139_v16, %v2137_v28  ;;  %v2141_v25 = vpop.f32.mrb[22].mxu0  ;;  %v2178_v11 = vpop.f32.mrb[20].mxu1 }
 0xfcf   :  { %v2142_v61 = vpop.f32.mrb[23].mxu0  ;;  %v2180_v60 = vpop.f32.mrb[21].mxu1 }
 0xfd0   :  { %v2190_v54 = vadd.f32 %v2189_v31, %v2178_v11  ;;  %v2182_v57 = vpop.f32.mrb[22].mxu1 }
 0xfd1   :  { %v2183_v47 = vpop.f32.mrb[23].mxu1 }
 0xfd2   :  { %v2191_v5 = vadd.f32 %v2190_v54, %v2180_v60 }
 0xfd4   :  { %2192 = vadd.xlane.f32.xlu1 %v2191_v5 }
 0xfe5   :  { %2226 = vperm.xlu1 %3432, %v3029_v38  }
0x1061   :  { %v2193_v3 = vpop.xlane.xlu1 %2192 }
0x1062   :  { %v2194_v0 = vmul.f32 0.001953125, %v2193_v3 }
0x1064   :  { %v2195_v17 = vsub.f32 %v2137_v28, %v2194_v0  ;;  %v2196_v40 = vsub.f32 %v2139_v16, %v2194_v0  ;;  %v2197_v10 = vsub.f32 %v2178_v11, %v2194_v0  ;;  %v2198_v20 = vsub.f32 %v2180_v60, %v2194_v0 }
0x1065   :  { %v2227_v31 = vpop.permute.xlu1 %2226 }
0x1066   :  { %v2199_v59 = vmul.f32 %v2195_v17, %v2195_v17  ;;  %v2200_v49 = vmul.f32 %v2196_v40, %v2196_v40  ;;  %v2201_v32 = vmul.f32 %v2197_v10, %v2197_v10  ;;  %v2202_v7 = vmul.f32 %v2198_v20, %v2198_v20 }
0x1068   :  { %v2203_v6 = vadd.f32 %v2200_v49, %v2199_v59 }
0x106a   :  { %v2204_v50 = vadd.f32 %v2203_v6, %v2201_v32 }
0x106c   :  { %v2205_v55 = vadd.f32 %v2204_v50, %v2202_v7 }
0x106e   :  { %2206 = vadd.xlane.f32.xlu0 %v2205_v55 }
0x1084   :  { %2217 = vperm.xlu0 %3508, %v3028_v34  }
0x10fb   :  { %v2207_v2 = vpop.xlane.xlu0 %2206 }
0x10fc   :  { %v2208_v37 = vmul.f32 0.001953125, %v2207_v2 }
0x10fe   :  { %v2209_v43 = vadd.f32 1e-05, %v2208_v37 }
0x1100   :  { %3894 = vrsqrt.f32 %v2209_v43 }
0x1103   :  { %v2218_v26 = vpop.permute.xlu0 %2217 }
0x110a   :  { %v3895_v29 = vpop.eup %3894 }
0x110b   :  { %v2211_v4 = vmul.f32 %v3895_v29, %v2195_v17  ;;  %v2212_v41 = vmul.f32 %v3895_v29, %v2196_v40  ;;  %v2213_v42 = vmul.f32 %v3895_v29, %v2197_v10  ;;  %v2214_v36 = vmul.f32 %v3895_v29, %v2198_v20 }
0x110d   :  { %v2220_v56 = vmul.f32 %v2218_v26, %v2211_v4  ;;  %v2221_v45 = vmul.f32 %v2218_v26, %v2212_v41  ;;  %v2222_v28 = vmul.f32 %v2218_v26, %v2213_v42  ;;  %v2223_v16 = vmul.f32 %v2218_v26, %v2214_v36 }
0x110f   :  { %v2229_v25 = vadd.f32 %v2227_v31, %v2220_v56  ;;  %v2230_v11 = vadd.f32 %v2227_v31, %v2221_v45  ;;  %v2231_v61 = vadd.f32 %v2227_v31, %v2222_v28  ;;  %v2232_v60 = vadd.f32 %v2227_v31, %v2223_v16 }
0x1111   :  { %v5337_v54 = vmax.f32 %v2229_v25, 0.0  ;;  %v5339_v57 = vmax.f32 %v2230_v11, 0.0  ;;  %v5341_v47 = vmax.f32 %v2231_v61, 0.0  ;;  %v5343_v5 = vmax.f32 %v2232_v60, 0.0 }
0x1113   :  { %v3814_v38 = vpack.i.bf16 %v5341_v47, %v5339_v57  ;;  %v3809_v3 = vpack.i.bf16 %v5343_v5, %v5337_v54  ;;  %v3829_v0 = vpack.i.bf16 %v5339_v57, %v5337_v54  ;;  %v3844_v9 = vpack.i.bf16 %v5341_v47, %v5343_v5 }
0x1115   :  { %3815 = vrot.lane.b32.xlu0 %v3814_v38, %s3927_s24  ;;  %3810 = vrot.lane.b32.xlu1 %v3809_v3, %s3927_s24 }
0x1119   :  { %3825 = vrot.lane.b32.xlu0 %v3809_v3, %s3928_s25  ;;  %3820 = vrot.lane.b32.xlu1 %v3814_v38, %s3928_s25 }
0x111d   :  { %3830 = vrot.lane.b32.xlu0 %v3829_v0, %s3929_s26 }
0x1187   :  { %v3816_v17 = vpop.permute.xlu0 %3815  ;;  %v3811_v40 = vpop.permute.xlu1 %3810 }
0x1188   :  { %v3818_v10 = vunpack.i.h.bf16 %v3816_v17  ;;  %v3817_v20 = vunpack.i.l.bf16 %v3816_v17  ;;  %v3813_v59 = vunpack.i.h.bf16 %v3811_v40  ;;  %v3812_v49 = vunpack.i.l.bf16 %v3811_v40 }
0x118a   :  { %v5358_v32 = vsel %vm5979_vm7, %v3817_v20, %v3818_v10  ;;  %v5362_v6 = vsel %vm5980_vm13, %v3818_v10, %v3813_v59  ;;  %v5366_v7 = vsel %vm5981_vm3, %v3812_v49, %v3817_v20  ;;  %v5370_v50 = vsel %vm5982_vm4, %v3813_v59, %v3812_v49 }
0x118b   :  { %v2253_v55 = vsel %vm5983_vm11, %v5358_v32, 0.0  ;;  %vm5984_vm7 = vnez %v5706_v58  ;;  %v3826_v2 = vpop.permute.xlu0 %3825  ;;  %v3821_v41 = vpop.permute.xlu1 %3820  ;;  %vm5985_vm4 = vcmp.lt.s32.totalorder %v4053_v52, 112  ;;  %vm5986_vm11 = vcmp.lt.s32.totalorder %v4089_v13, 256 }
0x118c   :  { %v2251_v34 = vsel %vm5984_vm7, %v5370_v50, 0.0  ;;  %v3839_v37 = vpack.i.bf16 %v2253_v55, %v5362_v6  ;;  %v3828_v29 = vunpack.i.h.bf16 %v3826_v2  ;;  %v3827_v4 = vunpack.i.l.bf16 %v3826_v2  ;;  %vm5987_vm3 = vmmov %vm5985_vm4 }
0x118d   :  { %v3834_v43 = vpack.i.bf16 %v5366_v7, %v2251_v34  ;;  %v3849_v42 = vpack.i.bf16 %v2253_v55, %v5366_v7  ;;  %v3823_v36 = vunpack.i.h.bf16 %v3821_v41  ;;  %v3822_v26 = vunpack.i.l.bf16 %v3821_v41  ;;  %vm5988_vm13 = vmmov %vm5987_vm3 }
0x118e   :  { %3840 = vrot.lane.b32.xlu0 %v3839_v37, %s3929_s26  ;;  %v5387_v58 = vsel %vm5985_vm4, %v3828_v29, %v3827_v4  ;;  %v3854_v56 = vpack.i.bf16 %v5362_v6, %v2251_v34  ;;  %vm5989_vm7 = vmmov %vm5987_vm3  ;;  %vm5990_vm4 = vcmp.lt.s32.totalorder %v4120_v30, 256  ;;  %v5425_v30 = vld [vmem:[%s5634_s1] sm:$0xff] }
0x118f   :  { %3835 = vrot.lane.b32.xlu1 %v3834_v43, %s3929_s26  ;;  %v2358_v45 = vsel %vm5986_vm11, %v5387_v58, 0.0  ;;  %v5397_v28 = vsel %vm5987_vm3, %v3823_v36, %v3828_v29  ;;  %v5401_v16 = vsel %vm5988_vm13, %v3822_v26, %v3823_v36  ;;  %v5408_v25 = vsel %vm5989_vm7, %v3827_v4, %v3822_v26  ;;  %v3831_v59 = vpop.permute.xlu0 %3830 }
0x1190   :  { %v3874_v31 = vpack.i.bf16 %v5397_v28, %v2358_v45  ;;  %v2356_v13 = vsel %vm5990_vm4, %v5401_v16, 0.0  ;;  %v2717_v60 = vunpack.c.l.bf16 %v5425_v30  ;;  %v3833_v29 = vunpack.i.h.bf16 %v3831_v59 }
0x1191   :  { %v3869_v11 = vpack.i.bf16 %v2356_v13, %v5408_v25  ;;  %v3879_v61 = vpack.i.bf16 %v5397_v28, %v2356_v13  ;;  %v3832_v4 = vunpack.i.l.bf16 %v3831_v59  ;;  %vm5991_vm11 = vcmp.lt.s32.totalorder %v4053_v52, 1 }
0x1192   :  { %3845 = vrot.lane.b32.xlu0 %v3844_v9, %s3929_s26  ;;  %vm5992_vm3 = vmmov %vm5991_vm11  ;;  %vm5995_vm4 = vnez %v5712_v53 }
0x1193   :  { %3850 = vrot.lane.b32.xlu1 %v3849_v42, %s3930_s27  ;;  %vm5993_vm13 = vmmov %vm5992_vm3 }
0x1194   :  { %vm5994_vm7 = vmmov %vm5992_vm3 }
0x1196   :  { %3865 = vrot.lane.b32.xlu0 %v3809_v3, %s3930_s27  ;;  %v5432_v3 = vld [vmem:[%s5634_s1 + $0x8] sm:$0xff] }
0x1197   :  { %3855 = vrot.lane.b32.xlu1 %v3854_v56, %s3930_s27  ;;  %v2719_v0 = vunpack.c.l.bf16 %v5432_v3  ;;  %v2720_v40 = vunpack.c.h.bf16 %v5432_v3  ;;  %v3033_v3 = vld [vmem:[%s5638_s5 + $0x10] sm:$0xff] }
0x119a   :  { %3875 = vrot.lane.b32.xlu0 %v3874_v31, %s3929_s26 }
0x119b   :  { %3860 = vrot.lane.b32.xlu1 %v3814_v38, %s3930_s27  ;;  %v2718_v38 = vunpack.c.h.bf16 %v5425_v30 }
0x119d   :  { %v2723_v17 = vadd.f32 %v2718_v38, %v2717_v60 }
0x119e   :  { %2383 = vrot.lane.b32.xlu0 %v5408_v25, %s3930_s27 }
0x119f   :  { %3870 = vrot.lane.b32.xlu1 %v3869_v11, %s3929_s26  ;;  %v2724_v10 = vadd.f32 %v2723_v17, %v2719_v0 }
0x11a1   :  { %v2725_v20 = vadd.f32 %v2724_v10, %v2720_v40 }
0x11a3   :  { %3880 = vrot.lane.b32.xlu1 %v3879_v61, %s3930_s27 }
0x11a7   :  { %2389 = vrot.lane.b32.xlu1 %v2358_v45, %s3930_s27 }
0x11cb   :  { %2726 = vadd.xlane.f32.xlu1 %v2725_v20 }
0x1200   :  { %v3841_v49 = vpop.permute.xlu0 %3840 }
0x1201   :  { %v3836_v55 = vpop.permute.xlu1 %3835  ;;  %v3843_v34 = vunpack.i.h.bf16 %v3841_v49  ;;  %v3842_v2 = vunpack.i.l.bf16 %v3841_v49 }
0x1202   :  { %v3838_v37 = vunpack.i.h.bf16 %v3836_v55  ;;  %v3837_v43 = vunpack.i.l.bf16 %v3836_v55 }
0x1203   :  { %v2263_v41 = vsel %vm5991_vm11, %v3843_v34, %v3842_v2  ;;  %vm5996_vm11 = vnez %v5722_v15 }
0x1204   :  { %v2264_v9 = vsel %vm5992_vm3, %v3838_v37, %v3843_v34  ;;  %v2265_v42 = vsel %vm5993_vm13, %v3837_v43, %v3838_v37  ;;  %v2266_v36 = vsel %vm5994_vm7, %v3842_v2, %v3837_v43  ;;  %v3375_v26 = vpack.c.bf16 %v5362_v6, %v2263_v41  ;;  %v3846_v13 = vpop.permute.xlu0 %3845 }
0x1205   :  { %v3378_v56 = vpack.c.bf16 %v5358_v32, %v2264_v9  ;;  %v3345_v45 = vpack.c.bf16 %v5366_v7, %v2265_v42  ;;  %v3348_v31 = vpack.c.bf16 %v5370_v50, %v2266_v36  ;;  %v3851_v11 = vpop.permute.xlu1 %3850  ;;  %v3848_v10 = vunpack.i.h.bf16 %v3846_v13 }
0x1206   :  { %v3853_v61 = vunpack.i.h.bf16 %v3851_v11  ;;  %v3852_v17 = vunpack.i.l.bf16 %v3851_v11  ;;  %v3847_v20 = vunpack.i.l.bf16 %v3846_v13  ;;  %3376 = vmatprep.subr.msk.bf16.mxu1 %vm5996_vm11, %v3375_v26  ;;  %v2305_v6 = vsel %vm5992_vm3, %v3832_v4, %v3833_v29  ;;  %vm6001_vm11 = vmmov %vm5992_vm3 }
0x1207   :  { %3346 = vmatprep.subr.msk.bf16.mxu0 %vm5995_vm4, %v3345_v45  ;;  %vm5997_vm13 = vcmp.lt.s32.totalorder %v4053_v52, 127  ;;  %vm5998_vm7 = vnez %v5720_v1  ;;  %3379 = vmatpush1.bf16.msk.msra.mxu1 %vm5999_vm10, %v3378_v56  ;;  %vm6000_vm4 = vmmov %vm5992_vm3 }
0x1208   :  { %v2288_v32 = vsel %vm5997_vm13, %v3852_v17, %v3853_v61  ;;  %3349 = vmatpush1.bf16.msk.msra.mxu0 %vm5998_vm7, %v3348_v31  ;;  %v3866_v50 = vpop.permute.xlu0 %3865  ;;  %v2304_v34 = vsel %vm6000_vm4, %v3833_v29, %v3848_v10  ;;  %v2303_v2 = vsel %vm6001_vm11, %v3848_v10, %v3847_v20  ;;  %v2306_v1 = vsel %vm5992_vm3, %v3847_v20, %v3832_v4  ;;  %vm6002_vm10 = vmmov %vm5997_vm13 }
0x1209   :  { %v3351_v7 = vpack.c.bf16 %v2305_v6, %v2288_v32  ;;  %v3856_v59 = vpop.permute.xlu1 %3855  ;;  %v3868_v53 = vunpack.i.h.bf16 %v3866_v50  ;;  %v3867_v49 = vunpack.i.l.bf16 %v3866_v50  ;;  %vm6003_vm13 = vmmov %vm6002_vm10 }
0x120a   :  { %v3858_v55 = vunpack.i.h.bf16 %v3856_v59  ;;  %v3857_v15 = vunpack.i.l.bf16 %v3856_v59  ;;  %vm6004_vm7 = vmmov %vm6002_vm10 }
0x120b   :  { %3352 = vmatprep.subr.msk.bf16.mxu0 %vm5805_vm14, %v3351_v7  ;;  %v2330_v21 = vsel %vm6002_vm10, %v3868_v53, %v3867_v49  ;;  %vm6005_vm4 = vmmov %vm6004_vm7 }
0x120c   :  { %v2287_v37 = vsel %vm6003_vm13, %v3853_v61, %v3858_v55  ;;  %v2289_v43 = vsel %vm6004_vm7, %v3857_v15, %v3852_v17  ;;  %v2290_v29 = vsel %vm6005_vm4, %v3858_v55, %v3857_v15  ;;  %v3876_v36 = vpop.permute.xlu0 %3875  ;;  %v3387_v31 = vpack.c.bf16 %v2330_v21, %v5343_v5  ;;  %vm6006_vm14 = vmmov %vm5992_vm3  ;;  %v3038_v21 = vld [vmem:[%s5634_s1 + $0x10] sm:$0xff] }
0x120d   :  { %v3354_v41 = vpack.c.bf16 %v2306_v1, %v2289_v43  ;;  %v3381_v9 = vpack.c.bf16 %v2303_v2, %v2290_v29  ;;  %v3384_v42 = vpack.c.bf16 %v2304_v34, %v2287_v37  ;;  %v3861_v4 = vpop.permute.xlu1 %3860  ;;  %v3878_v26 = vunpack.i.h.bf16 %v3876_v36  ;;  %vm6007_vm11 = vmmov %vm6005_vm4  ;;  %v3040_v2 = vld [vmem:[%s5641_s8 + $0x8] sm:$0xff]  ;;  %v3039_v29 = vld [vmem:[%s5634_s1 + $0x18] sm:$0xff] }
0x120e   :  { %v3877_v35 = vunpack.i.l.bf16 %v3876_v36  ;;  %v3863_v56 = vunpack.i.h.bf16 %v3861_v4  ;;  %v3862_v45 = vunpack.i.l.bf16 %v3861_v4  ;;  %vm6008_vm3 = vmmov %vm6005_vm4  ;;  %vm6019_vm13 = vnez %v5772_v22  ;;  %v3041_v1 = vld [vmem:[%s5642_s9 + $0x8] sm:$0xff]  ;;  %v6025_v36 = vld [vmem:[#allocation8_spill] sm:$0xff] }
0x120f   :  { %3355 = vmatpush1.bf16.msk.msra.mxu0 %vm5811_vm0, %v3354_v41  ;;  %3382 = vmatprep.subr.msk.bf16.mxu1 %vm5861_vm6, %v3381_v9  ;;  %vm6009_vm10 = vmmov %vm6008_vm3  ;;  %vm6020_vm7 = vnez %v5775_v63  ;;  %vm6021_vm4 = vnez %v5779_v12  ;;  %v2774_v37 = vunpack.c.l.bf16 %v3038_v21  ;;  %v2775_v43 = vunpack.c.h.bf16 %v3038_v21 }
0x1210   :  { %v2367_v13 = vsel %vm6006_vm14, %v3878_v26, %v3877_v35  ;;  %v2327_v11 = vsel %vm6007_vm11, %v3863_v56, %v3868_v53  ;;  %v2328_v61 = vsel %vm6008_vm3, %v3862_v45, %v3863_v56  ;;  %v2329_v17 = vsel %vm6009_vm10, %v3867_v49, %v3862_v45  ;;  %3385 = vmatpush1.bf16.msk.msra.mxu1 %vm4279_vm1, %v3384_v42  ;;  %vm6010_vm0 = vmmov %vm6006_vm14  ;;  %v2384_v59 = vpop.permute.xlu0 %2383 }
0x1211   :  { %v3390_v51 = vpack.c.bf16 %v2327_v11, %v5341_v47  ;;  %v3357_v62 = vpack.c.bf16 %v2328_v61, %v5339_v57  ;;  %v3360_v5 = vpack.c.bf16 %v2329_v17, %v5337_v54  ;;  %v3871_v10 = vpop.permute.xlu1 %3870  ;;  %3388 = vmatprep.subr.msk.bf16.mxu1 %vm5817_vm12, %v3387_v31  ;;  %v3393_v32 = vpack.c.bf16 %v5387_v58, %v2367_v13  ;;  %vm6011_vm1 = vmmov %vm6010_vm0  ;;  %v6026_v31 = vld [vmem:[#allocation9_spill] sm:$0xff] }
0x1212   :  { %v3873_v20 = vunpack.i.h.bf16 %v3871_v10  ;;  %v3872_v6 = vunpack.i.l.bf16 %v3871_v10  ;;  %vm6012_vm6 = vmmov %vm6010_vm0  ;;  %vm6016_vm12 = vnez %v5767_v48  ;;  %vm6022_vm14 = vnez %v5782_v18  ;;  %v6027_v10 = vld [vmem:[#allocation10_spill] sm:$0xff] }
0x1213   :  { %3358 = vmatprep.subr.msk.bf16.mxu0 %vm4298_vm15, %v3357_v62  ;;  %vm6014_vm15 = vmmov %vm6008_vm3  ;;  %vm6023_vm11 = vcmask 654336   ;;  %v2776_v56 = vunpack.c.l.bf16 %v3039_v29  ;;  %v2782_v45 = vadd.f32 %v2775_v43, %v2774_v37  ;;  %vm6028_vm10 = vcmask 64512  }
0x1214   :  { %v2368_v8 = vsel %vm6010_vm0, %v3873_v20, %v3878_v26  ;;  %v2369_v47 = vsel %vm6011_vm1, %v3872_v6, %v3873_v20  ;;  %v2370_v54 = vsel %vm6012_vm6, %v3877_v35, %v3872_v6  ;;  %3361 = vmatpush1.bf16.msk.msra.mxu0 %vm4315_vm9, %v3360_v5  ;;  %3391 = vmatpush1.bf16.msk.msra.mxu1 %vm4326_vm8, %v3390_v51  ;;  %vm6013_vm9 = vmmov %vm6008_vm3  ;;  %v2777_v6 = vunpack.c.h.bf16 %v3039_v29 }
0x1215   :  { %v3396_v19 = vpack.c.bf16 %v5397_v28, %v2368_v8  ;;  %v3363_v24 = vpack.c.bf16 %v5401_v16, %v2369_v47  ;;  %v3366_v57 = vpack.c.bf16 %v5408_v25, %v2370_v54  ;;  %v3881_v58 = vpop.permute.xlu1 %3880  ;;  %3394 = vmatprep.subr.msk.bf16.mxu1 %vm5869_vm5, %v3393_v32  ;;  %vm6015_vm8 = vnez %v5765_v23  ;;  %vm6017_vm5 = vmmov %vm6008_vm3  ;;  %v3030_v23 = vld [vmem:[%s5637_s4 + $0x14] sm:$0xf] }
0x1216   :  { %v3883_v7 = vunpack.i.h.bf16 %v3881_v58  ;;  %v3882_v50 = vunpack.i.l.bf16 %v3881_v58  ;;  %v2783_v32 = vadd.f32 %v2782_v45, %v2776_v56  ;;  %vm6029_vm0 = vmmov %vm6028_vm10  ;;  %vm2831_vm1 = vcmask 130048  }
0x1217   :  { %3364 = vmatprep.subr.msk.bf16.mxu0 %vm5916_vm2, %v3363_v24  ;;  %vm6018_vm2 = vmmov %vm6008_vm3 }
0x1218   :  { %v2392_v46 = vsel %vm6013_vm9, %v3882_v50, %v3883_v7  ;;  %v2393_v14 = vsel %vm6014_vm15, %v2384_v59, %v3882_v50  ;;  %3367 = vmatpush1.bf16.msk.msra.mxu0 %vm6015_vm8, %v3366_v57  ;;  %3397 = vmatpush1.bf16.msk.msra.mxu1 %vm6016_vm12, %v3396_v19  ;;  %vm6024_vm3 = vmmov %vm6023_vm11  ;;  %v2784_v8 = vadd.f32 %v2783_v32, %v2777_v6 }
0x1219   :  { %v3369_v39 = vpack.c.bf16 %v5873_v33, %v2392_v46  ;;  %v3372_v28 = vpack.c.bf16 %v5873_v33, %v2393_v14  ;;  %v2390_v16 = vpop.permute.xlu1 %2389 }
0x121a   :  { %v2391_v44 = vsel %vm6017_vm5, %v3883_v7, %v2390_v16  ;;  %v2394_v25 = vsel %vm6018_vm2, %v2390_v16, %v2384_v59 }
0x121b   :  { %v3399_v53 = vpack.c.bf16 %v5873_v33, %v2394_v25  ;;  %v3402_v49 = vpack.c.bf16 %v5873_v33, %v2391_v44  ;;  %3370 = vmatprep.subr.msk.bf16.mxu0 %vm6019_vm13, %v3369_v39  ;;  %v3034_v44 = vld [vmem:[%s5639_s6 + $0x10] sm:$0xff] }
0x121c   :  { %3373 = vmatpush1.bf16.msk.msra.mxu0 %vm6020_vm7, %v3372_v28 }
0x121d   :  { %3400 = vmatprep.subr.msk.bf16.mxu1 %vm6021_vm4, %v3399_v53 }
0x121e   :  { %3403 = vmatpush1.bf16.msk.msra.mxu1 %vm6022_vm14, %v3402_v49 }
0x121f   :  { %3031 = vmatmul.mubr.msk.bf16.vlgmr.msra.gmra.mrb[24].mxu0 %vm6023_vm11, %v3030_v23 }
0x1220   :  { %2633 = vmatprep.mubr.f32.mxu0 %v5873_v33 }
0x1221   :  { %3032 = vmatmul.mubr.msk.bf16.vlgmr.msra.gmra.mrb[24].mxu1 %vm6024_vm3, %v3030_v23 }
0x1222   :  { %2704 = vmatprep.mubr.f32.mxu1 %v5873_v33 }
0x1258   :  { %v2727_v52 = vpop.xlane.xlu1 %2726 }
0x1259   :  { %v2728_v48 = vmul.f32 0.001953125, %v2727_v52 }
0x125b   :  { %v5557_v22 = vsub.f32 %v2717_v60, %v2728_v48  ;;  %v5561_v63 = vsub.f32 %v2718_v38, %v2728_v48  ;;  %v5565_v12 = vsub.f32 %v2719_v0, %v2728_v48  ;;  %v5569_v18 = vsub.f32 %v2720_v40, %v2728_v48  ;;  %v2721_v40 = vld [vmem:[%s5641_s8] sm:$0xff] }
0x125d   :  { %v2733_v55 = vmul.f32 %v5557_v22, %v5557_v22  ;;  %v2734_v15 = vmul.f32 %v5561_v63, %v5561_v63  ;;  %v2735_v60 = vmul.f32 %v5565_v12, %v5565_v12  ;;  %v2736_v30 = vmul.f32 %v5569_v18, %v5569_v18 }
0x125f   :  { %v2737_v38 = vadd.f32 %v2734_v15, %v2733_v55 }
0x1261   :  { %v2738_v34 = vadd.f32 %v2737_v38, %v2735_v60 }
0x1263   :  { %v2739_v0 = vadd.f32 %v2738_v34, %v2736_v30 }
0x1265   :  { %2740 = vadd.xlane.f32.xlu1 %v2739_v0  ;;  %v2722_v0 = vld [vmem:[%s5642_s9] sm:$0xff] }
0x1276   :  { %2544 = vperm.xlu1 %3432, %v3033_v3  }
0x127a   :  { %2751 = vperm.xlu1 %3432, %v2721_v40  }
0x127e   :  { %2810 = vperm.xlu1 %3432, %v3040_v2  }
0x1282   :  { %2819 = vperm.xlu1 %3432, %v3041_v1  }
0x12f2   :  { %v2464_v41 = vpop.f32.mrb[24].mxu0  ;;  %v2741_v3 = vpop.xlane.xlu1 %2740 }
0x12f3   :  { %v2465_v9 = vadd.f32 %v2464_v41, %v5064_v27  ;;  %v2466_v42 = vpop.f32.mrb[25].mxu0  ;;  %v2742_v2 = vmul.f32 0.001953125, %v2741_v3 }
0x12f4   :  { %v2467_v4 = vadd.f32 %v2466_v42, %v6025_v36  ;;  %v2468_v26 = vpop.f32.mrb[26].mxu0  ;;  %v2505_v35 = vpop.f32.mrb[24].mxu1 }
0x12f5   :  { %v2506_v13 = vadd.f32 %v2505_v35, %v6026_v31  ;;  %v2469_v11 = vpop.f32.mrb[27].mxu0  ;;  %v2507_v61 = vpop.f32.mrb[25].mxu1  ;;  %v2743_v21 = vadd.f32 1e-05, %v2742_v2 }
0x12f6   :  { %v2516_v17 = vadd.f32 %v2467_v4, %v2465_v9  ;;  %v2509_v51 = vpop.f32.mrb[26].mxu1  ;;  %v2508_v20 = vadd.f32 %v2507_v61, %v6027_v10  ;;  %v2545_v29 = vpop.permute.xlu1 %2544 }
0x12f7   :  { %v2510_v62 = vpop.f32.mrb[27].mxu1  ;;  %3896 = vrsqrt.f32 %v2743_v21 }
0x12f8   :  { %v2517_v5 = vadd.f32 %v2516_v17, %v2506_v13 }
0x12fa   :  { %v2518_v27 = vadd.f32 %v2517_v5, %v2508_v20  ;;  %v2752_v36 = vpop.permute.xlu1 %2751 }
0x12fc   :  { %2519 = vadd.xlane.f32.xlu0 %v2518_v27 }
0x12fe   :  { %v2811_v51 = vpop.permute.xlu1 %2810 }
0x1300   :  { %2785 = vadd.xlane.f32.xlu0 %v2784_v8 }
0x1389   :  { %v2520_v47 = vpop.xlane.xlu0 %2519 }
0x138a   :  { %v2521_v25 = vmul.f32 0.001953125, %v2520_v47 }
0x138c   :  { %v2522_v53 = vsub.f32 %v2465_v9, %v2521_v25  ;;  %v2523_v49 = vsub.f32 %v2467_v4, %v2521_v25  ;;  %v2524_v48 = vsub.f32 %v2506_v13, %v2521_v25  ;;  %v2525_v15 = vsub.f32 %v2508_v20, %v2521_v25  ;;  %v3897_v4 = vpop.eup %3896 }
0x138d   :  { %v2786_v54 = vpop.xlane.xlu0 %2785  ;;  %v2745_v35 = vmul.f32 %v3897_v4, %v5557_v22  ;;  %v2747_v45 = vmul.f32 %v3897_v4, %v5565_v12  ;;  %v2748_v31 = vmul.f32 %v3897_v4, %v5569_v18 }
0x138e   :  { %v2787_v19 = vmul.f32 0.001953125, %v2786_v54  ;;  %v2526_v23 = vmul.f32 %v2522_v53, %v2522_v53  ;;  %v2527_v52 = vmul.f32 %v2523_v49, %v2523_v49  ;;  %v2528_v60 = vmul.f32 %v2524_v48, %v2524_v48 }
0x138f   :  { %v2529_v38 = vmul.f32 %v2525_v15, %v2525_v15  ;;  %v2754_v62 = vmul.f32 %v2752_v36, %v2745_v35  ;;  %v2756_v10 = vmul.f32 %v2752_v36, %v2747_v45  ;;  %v2757_v20 = vmul.f32 %v2752_v36, %v2748_v31 }
0x1390   :  { %v2788_v24 = vsub.f32 %v2774_v37, %v2787_v19  ;;  %v2789_v57 = vsub.f32 %v2775_v43, %v2787_v19  ;;  %v2790_v58 = vsub.f32 %v2776_v56, %v2787_v19  ;;  %v2791_v7 = vsub.f32 %v2777_v6, %v2787_v19 }
0x1391   :  { %v2530_v55 = vadd.f32 %v2527_v52, %v2526_v23  ;;  %v2746_v56 = vmul.f32 %v3897_v4, %v5561_v63 }
0x1392   :  { %v2792_v50 = vmul.f32 %v2788_v24, %v2788_v24  ;;  %v2793_v59 = vmul.f32 %v2789_v57, %v2789_v57  ;;  %v2794_v46 = vmul.f32 %v2790_v58, %v2790_v58  ;;  %v2795_v39 = vmul.f32 %v2791_v7, %v2791_v7 }
0x1393   :  { %v2531_v30 = vadd.f32 %v2530_v55, %v2528_v60  ;;  %v2755_v5 = vmul.f32 %v2752_v36, %v2746_v56 }
0x1394   :  { %v2796_v14 = vadd.f32 %v2793_v59, %v2792_v50 }
0x1395   :  { %v2532_v34 = vadd.f32 %v2531_v30, %v2529_v38 }
0x1396   :  { %v2797_v28 = vadd.f32 %v2796_v14, %v2794_v46 }
0x1398   :  { %v2798_v16 = vadd.f32 %v2797_v28, %v2795_v39 }
0x139a   :  { %2799 = vadd.xlane.f32.xlu0 %v2798_v16 }
0x13b0   :  { %2553 = vperm.xlu0 %3508, %v3034_v44  }
0x13cf   :  { %2533 = vadd.xlane.f32.xlu0 %v2532_v34 }
0x13e5   :  { %2760 = vperm.xlu0 %3508, %v2722_v0   ;;  %v3035_v0 = vld [vmem:[%s5640_s7 + $0x10] sm:$0xff] }
0x1427   :  { %v2800_v40 = vpop.xlane.xlu0 %2799 }
0x1428   :  { %v2801_v1 = vmul.f32 0.001953125, %v2800_v40 }
0x142a   :  { %v2802_v37 = vadd.f32 1e-05, %v2801_v1 }
0x142c   :  { %3898 = vrsqrt.f32 %v2802_v37 }
0x142f   :  { %v2554_v43 = vpop.permute.xlu0 %2553 }
0x1436   :  { %v3899_v26 = vpop.eup %3898 }
0x1437   :  { %v2804_v13 = vmul.f32 %v3899_v26, %v2788_v24  ;;  %v2806_v11 = vmul.f32 %v3899_v26, %v2790_v58  ;;  %v2805_v61 = vmul.f32 %v3899_v26, %v2789_v57  ;;  %v2807_v17 = vmul.f32 %v3899_v26, %v2791_v7  ;;  %v2820_v7 = vpop.permute.xlu1 %2819 }
0x1439   :  { %v2813_v27 = vmul.f32 %v2811_v51, %v2804_v13  ;;  %v2815_v8 = vmul.f32 %v2811_v51, %v2806_v11  ;;  %v2814_v22 = vmul.f32 %v2811_v51, %v2805_v61  ;;  %v2816_v47 = vmul.f32 %v2811_v51, %v2807_v17 }
0x143b   :  { %v2822_v39 = vadd.f32 %v2820_v7, %v2813_v27  ;;  %v2824_v28 = vadd.f32 %v2820_v7, %v2815_v8  ;;  %v2823_v16 = vadd.f32 %v2820_v7, %v2814_v22  ;;  %v2825_v44 = vadd.f32 %v2820_v7, %v2816_v47 }
0x143d   :  { %v2827_v3 = vmax.f32 %v2823_v16, 0.0  ;;  %v2829_v40 = vmax.f32 %v2825_v44, 0.0  ;;  %v2826_v2 = vmax.f32 %v2822_v39, 0.0  ;;  %v2828_v1 = vmax.f32 %v2824_v28, 0.0 }
0x145c   :  { %v2534_v41 = vpop.xlane.xlu0 %2533 }
0x145d   :  { %v2535_v9 = vmul.f32 0.001953125, %v2534_v41  ;;  %v2830_v41 = vld [vmem:[%s5643_s10] sm:$0xff] }
0x145f   :  { %v2536_v42 = vadd.f32 1e-05, %v2535_v9 }
0x1461   :  { %3900 = vrsqrt.f32 %v2536_v42 }
0x1464   :  { %v2761_v6 = vpop.permute.xlu0 %2760 }
0x1465   :  { %v2763_v18 = vadd.f32 %v2761_v6, %v2754_v62  ;;  %v2764_v24 = vadd.f32 %v2761_v6, %v2755_v5  ;;  %v2765_v58 = vadd.f32 %v2761_v6, %v2756_v10  ;;  %v2766_v57 = vadd.f32 %v2761_v6, %v2757_v20 }
0x1467   :  { %v2767_v55 = vmax.f32 %v2763_v18, 0.0 }
0x146b   :  { %v3901_v32 = vpop.eup %3900 }
0x146c   :  { %v2539_v63 = vmul.f32 %v3901_v32, %v2523_v49  ;;  %v2541_v54 = vmul.f32 %v3901_v32, %v2525_v15  ;;  %v2538_v12 = vmul.f32 %v3901_v32, %v2522_v53  ;;  %v2540_v19 = vmul.f32 %v3901_v32, %v2524_v48 }
0x146d   :  { %v2768_v53 = vmax.f32 %v2764_v24, 0.0  ;;  %v2769_v48 = vmax.f32 %v2765_v58, 0.0  ;;  %v2770_v15 = vmax.f32 %v2766_v57, 0.0 }
0x146e   :  { %v2548_v50 = vmul.f32 %v2545_v29, %v2539_v63  ;;  %v2550_v59 = vmul.f32 %v2545_v29, %v2541_v54  ;;  %v2547_v46 = vmul.f32 %v2545_v29, %v2538_v12  ;;  %v2549_v14 = vmul.f32 %v2545_v29, %v2540_v19 }
0x146f   :  { %v3404_v21 = vpack.c.bf16 %v2827_v3, %v2768_v53  ;;  %v3408_v37 = vpack.c.bf16 %v2829_v40, %v2770_v15  ;;  %v3410_v29 = vpack.c.bf16 %v2828_v1, %v2769_v48 }
0x1470   :  { %v2557_v25 = vadd.f32 %v2554_v43, %v2548_v50  ;;  %v2559_v23 = vadd.f32 %v2554_v43, %v2550_v59  ;;  %v2556_v52 = vadd.f32 %v2554_v43, %v2547_v46  ;;  %v2558_v49 = vadd.f32 %v2554_v43, %v2549_v14 }
0x1471   :  { %v3406_v43 = vpack.c.bf16 %v2826_v2, %v2767_v55 }
0x1472   :  { %v2561_v60 = vmax.f32 %v2557_v25, 0.0  ;;  %v2563_v30 = vmax.f32 %v2559_v23, 0.0  ;;  %v2560_v38 = vmax.f32 %v2556_v52, 0.0  ;;  %v2562_v34 = vmax.f32 %v2558_v49, 0.0 }
0x1474   :  { %2569 = vmatprep.subr.mxu0 %v2561_v60  ;;  %2640 = vmatprep.subr.mxu1 %v2563_v30 }
0x1475   :  { %2570 = vmatpush1.msra.mxu0 %v2560_v38  ;;  %2641 = vmatpush1.msra.mxu1 %v2562_v34 }
0x1476   :  { %3036 = vmatmul.mubr.msk.f32.vlgmr.msra.gmra.mrb[16].mxu0 %vm6028_vm10, %v3035_v0  ;;  %3037 = vmatmul.mubr.msk.f32.vlgmr.msra.gmra.mrb[16].mxu1 %vm6029_vm0, %v3035_v0 }
0x1477   :  { %3405 = vmatprep.subr.bf16.mxu0 %v3404_v21  ;;  %3409 = vmatprep.subr.bf16.mxu1 %v3408_v37 }
0x1478   :  { %3407 = vmatpush1.bf16.msra.mxu0 %v3406_v43  ;;  %3411 = vmatpush1.bf16.msra.mxu1 %v3410_v29 }
0x1479   :  { %2899 = vmatprep.mubr.f32.mxu0 %v5873_v33  ;;  %2970 = vmatprep.mubr.f32.mxu1 %v5873_v33 }
0x147e   :  { %3042 = vmatmul.mubr.msk.f32.vlgmr.msra.gmra.mrb[16].mxu0 %vm2831_vm1, %v2830_v41  ;;  %3043 = vmatmul.mubr.msk.f32.vlgmr.msra.gmra.mrb[16].mxu1 %vm2831_vm1, %v2830_v41 }
0x1551   :  { %v2901_v9 = vpop.f32.mrb[16].mxu0  ;;  %v2972_v42 = vpop.f32.mrb[16].mxu1 }
0x1552   :  { %2981 = vst [vmem:[#allocation3] sm:$0xff] %v2901_v9  ;;  %2983 = vst [vmem:[#allocation3 + $0x10] sm:$0xff] %v2972_v42  ;;  %v2903_v36 = vpop.f32.mrb[17].mxu0  ;;  %v2974_v4 = vpop.f32.mrb[17].mxu1 }
0x1553   :  { %2982 = vst [vmem:[#allocation3 + $0x8] sm:$0xff] %v2903_v36  ;;  %2984 = vst [vmem:[#allocation3 + $0x18] sm:$0xff] %v2974_v4 }
0x1554   :  { %3913 = shalt.err (!%p3910_p4)
}
0x1555   :  { %s3914_s3 = scalar_lea.hbm %s5644_s11, 512 }
0x1556   :  { %p3915_p5 = scmp.ne.s32.totalorder %s5644_s11, %s3914_s3  ;;  %p3918_p6 = scmp.lt.u32.totalorder %s3914_s3, %s5644_s11 }
0x1558   :  { %p3920_p7 = pnand %p3918_p6, %p3915_p5 }
0x155a   :  { %3923 = shalt.err (!%p3920_p7)
}
0x155b   :  { %2994 = dma.vmem_to_hbm [thread:$0]  %s2992_s17, 512, %s5644_s11, [#allocation4]  }
0x155c   :  { %3924 = dma.done.wait [#allocation4], 512  }
0x155d   :  { %3925 = vsyncadd [#allocation4], 4294966784 }
0x155e   :  { %2998 = vsyncpa [#allocation4], 1 }

</bundles_post_ra>
